<compile_context>
chip_gen: v6e
topology: v6e:2x2x1
jax: 0.10.0
libtpu: 0.0.40
codegen_flags: <defaults>
</compile_context>

<pallas_src>
import math

import jax
import jax.numpy as jnp
from jax.experimental import pallas as pl
from jax.experimental.pallas import tpu as pltpu

# (F.normalize eps = 1e-12)^2 :  h * rsqrt(max(||h||^2, eps^2)) == h / max(||h||, eps)
_EPS_SQ = 1e-24


# --------------------------------------------------------------------------------------
# small helpers
# --------------------------------------------------------------------------------------
def _round_up(x, m):
    return ((x + m - 1) // m) * m


def _pow2_tile(t, n_al):
    """Round t to a power-of-two multiple of 128 in [128, n_al] so tiles divide n_pad."""
    t = max(128, min(int(t), n_al))
    v = 128
    while v * 2 <= t:
        v *= 2
    return v


def _vmem_capacity_bytes():
    try:
        return int(pltpu.get_tpu_info().vmem_capacity_bytes)
    except Exception:
        pass
    try:
        kind = jax.devices()[0].device_kind.lower()
        if "v7" in kind:
            return 64 << 20          # v7x: 64 MiB per TensorCore
        return 128 << 20             # v4 / v5e / v5p / v6e: 128 MiB
    except Exception:
        return 64 << 20              # unknown -> be conservative


def _usable_vmem():
    # leave ~15% headroom for Mosaic internal scratch
    return int(_vmem_capacity_bytes() * 0.85)


def _bytes_fused(n_al, f_in, h, f_out):
    weights = (2 * f_in * h + h + h * 2 * f_out + f_out + f_out * 2 + 2) * 4
    return (n_al * n_al * 2                              # adjacency (bf16, resident)
            + n_al * f_in * (2 + 4)                      # x (bf16 + f32)
            + n_al * 4                                   # 1/deg
            + n_al * (2 * f_in + h + 3 * f_out + 2) * 4  # f32 intermediates
            + weights)


def _bytes_stream(tm, tk, f_in, h, f_out):
    w1 = (2 * f_in * h + h + h * 2 * f_out) * 4
    w2 = (f_out + 2 * f_out + 2) * 4
    l1 = (2 * tm * tk                 # A tile (int8), double-buffered
          + 2 * tk * f_in * 2         # x K-tile (bf16)
          + 2 * tm * f_in * 4         # x row tile (f32)
          + 2 * tm * 4                # 1/deg row tile
          + 2 * tm * 2 * f_out * 4    # fused projection output tile
          + tm * f_in * 4             # accumulator scratch
          + 2 * w1)
    l2 = (2 * tm * tk + 2 * tk * f_out * 2 + 2 * tm * f_out * 4 + 2 * tm * 4
          + 2 * tm * 2 * 4 + tm * f_out * 4 + 2 * w2)
    return max(l1, l2)


def _choose_tiles(n_al, f_in, h, f_out, usable):
    """Pick (TM, TK) as powers-of-two multiples of 128 that fit the VMEM budget."""
    budget = usable - (4 << 20)
    tm, tk = 128, 128
    # grow the contraction tile first (fewer accumulator passes over A's columns) ...
    while tk < min(n_al, 4096) and _bytes_stream(tm, tk * 2, f_in, h, f_out) <= budget:
        tk *= 2
    # ... then the row tile, keeping >= 4 row tiles so both v7x TensorCores stay busy
    row_cap = min(1024, max(128, n_al // 4))
    while tm < row_cap and _bytes_stream(tm * 2, tk, f_in, h, f_out) <= budget:
        tm *= 2
    return tm, tk


# --------------------------------------------------------------------------------------
# Kernels
# --------------------------------------------------------------------------------------
def _fused_kernel(a_ref, dinv_ref, xbf_ref, xf_ref, w1_ref, b1_ref, w2_ref,
                  b2_ref, wfc_ref, bfc_ref, out_ref):
    """Fast path: whole graph resident in VMEM; adjacency read from HBM once."""
    f_out = b2_ref.shape[-1]
    a = a_ref[...]                                    # bf16 edge counts
    dinv = dinv_ref[...]                              # (N,1) f32, 1/in-degree

    # ---- layer 1: mean aggregation, fused lin_l/lin_r, L2-normalize, ReLU ----
    agg = jnp.dot(a, xbf_ref[...], preferred_element_type=jnp.float32) * dinv
    h1 = jnp.dot(jnp.concatenate([agg, xf_ref[...]], axis=-1), w1_ref[...],
                 preferred_element_type=jnp.float32) + b1_ref[...]
    h1 = h1 * jax.lax.rsqrt(
        jnp.maximum(jnp.sum(h1 * h1, axis=-1, keepdims=True), jnp.float32(_EPS_SQ)))
    h1 = jnp.maximum(h1, 0.0)

    # ---- layer 2 (reassociated): A @ (h1 @ W2l) + h1 @ W2r ----
    p = jnp.dot(h1, w2_ref[...], preferred_element_type=jnp.float32)
    agg2 = jnp.dot(a, p[:, :f_out].astype(jnp.bfloat16),
                   preferred_element_type=jnp.float32) * dinv
    h2 = agg2 + p[:, f_out:] + b2_ref[...]
    h2 = h2 * jax.lax.rsqrt(
        jnp.maximum(jnp.sum(h2 * h2, axis=-1, keepdims=True), jnp.float32(_EPS_SQ)))

    # ---- fc + softmax ----
    logits = jnp.dot(h2, wfc_ref[...], preferred_element_type=jnp.float32) + bfc_ref[...]
    e = jnp.exp(logits - jnp.max(logits, axis=-1, keepdims=True))
    out_ref[...] = e / jnp.sum(e, axis=-1, keepdims=True)


def _layer1_stream_kernel(a_ref, xk_ref, xr_ref, dinv_ref, w1_ref, b1_ref, w2_ref,
                          p_ref, acc_ref):
    """conv1 + relu + fused layer-2 projections for one (row-tile, K-tile) grid cell."""
    k = pl.program_id(1)

    @pl.when(k == 0)
    def _():
        acc_ref[...] = jnp.zeros_like(acc_ref)

    # int8 adjacency tile -> bf16 on the VPU (free filler), MXU runs at bf16 rate
    acc_ref[...] += jnp.dot(a_ref[...].astype(jnp.bfloat16), xk_ref[...],
                            preferred_element_type=jnp.float32)

    @pl.when(k == pl.num_programs(1) - 1)
    def _():
        agg = acc_ref[...] * dinv_ref[...]            # exact mean: f32 post-scale by 1/deg
        fused_in = jnp.concatenate([agg, xr_ref[...]], axis=-1)
        h1 = jnp.dot(fused_in, w1_ref[...],
                     preferred_element_type=jnp.float32) + b1_ref[...]
        h1 = h1 * jax.lax.rsqrt(
            jnp.maximum(jnp.sum(h1 * h1, axis=-1, keepdims=True), jnp.float32(_EPS_SQ)))
        h1 = jnp.maximum(h1, 0.0)
        # one lane-dense store of [h1@W2l | h1@W2r]; the wrapper splits it
        p_ref[...] = jnp.dot(h1, w2_ref[...], preferred_element_type=jnp.float32)


def _layer2_stream_kernel(a_ref, projk_ref, side_ref, dinv_ref, b2_ref, wfc_ref,
                          bfc_ref, out_ref, acc_ref):
    """Reassociated conv2 aggregation + normalize + fc + softmax for one grid cell."""
    k = pl.program_id(1)

    @pl.when(k == 0)
    def _():
        acc_ref[...] = jnp.zeros_like(acc_ref)

    acc_ref[...] += jnp.dot(a_ref[...].astype(jnp.bfloat16), projk_ref[...],
                            preferred_element_type=jnp.float32)

    @pl.when(k == pl.num_programs(1) - 1)
    def _():
        h2 = acc_ref[...] * dinv_ref[...] + side_ref[...] + b2_ref[...]
        h2 = h2 * jax.lax.rsqrt(
            jnp.maximum(jnp.sum(h2 * h2, axis=-1, keepdims=True), jnp.float32(_EPS_SQ)))
        logits = jnp.dot(h2, wfc_ref[...], preferred_element_type=jnp.float32) + bfc_ref[...]
        e = jnp.exp(logits - jnp.max(logits, axis=-1, keepdims=True))
        out_ref[...] = e / jnp.sum(e, axis=-1, keepdims=True)


# --------------------------------------------------------------------------------------
# Wrapper
# --------------------------------------------------------------------------------------
def graphsage_forward(params, feat, edge_index, *, tm=None, tk=None, force_streaming=False):
    """feat: (N, in_size) f32; edge_index: (2, E) int32 (row0 = src j, row1 = dst i)."""
    n, f_in = feat.shape
    h = params["w1l"].shape[1]
    f_out = params["w2l"].shape[1]
    usable = _usable_vmem()

    n_al = _round_up(n, 128)
    use_fused = (not force_streaming) and (_bytes_fused(n_al, f_in, h, f_out) * 2 <= usable)

    if use_fused:
        n_pad = n_al
    else:
        if tm is None or tk is None:
            tm_auto, tk_auto = _choose_tiles(n_al, f_in, h, f_out, usable)
            tm = tm_auto if tm is None else tm
            tk = tk_auto if tk is None else tk
        tm = _pow2_tile(tm, n_al)
        tk = _pow2_tile(tk, n_al)
        n_pad = _round_up(n, max(tm, tk))

    # --- glue: dense adjacency of edge counts (duplicates add, matching scatter-mean);
    #     deg from an O(E) segment-sum; the mean (1/deg) is applied in-kernel, in f32.
    # TODO(synk): for very large sparse graphs replace the dense (N,N) adjacency with a
    #     CSR / scalar-prefetch gather-DMA formulation instead of materializing N^2.
    src = edge_index[0].astype(jnp.int32)
    dst = edge_index[1].astype(jnp.int32)
    ones = jnp.ones(src.shape, jnp.bfloat16)
    adj = jnp.zeros((n_pad, n_pad), jnp.bfloat16).at[dst, src].add(ones)  # small counts: exact
    deg = jnp.zeros((n_pad,), jnp.float32).at[dst].add(1.0)
    deg_inv = (1.0 / jnp.maximum(deg, 1.0)).reshape(n_pad, 1)

    x = feat if n_pad == n else jnp.pad(feat, ((0, n_pad - n), (0, 0)))
    x_bf16 = x.astype(jnp.bfloat16)

    # fused weights (built once, outside the kernels)
    w1 = jnp.concatenate([params["w1l"], params["w1r"]], axis=0)   # (2*Fin, H)
    w2 = jnp.concatenate([params["w2l"], params["w2r"]], axis=1)   # (H, 2*Fout)

    # ---------------- fast path: one fused kernel, adjacency resident in VMEM ----------
    if use_fused:
        full = lambda shape: pl.BlockSpec(shape, lambda i: (0, 0))
        out = pl.pallas_call(
            _fused_kernel,
            out_shape=jax.ShapeDtypeStruct((n_pad, 2), jnp.float32),
            grid_spec=pltpu.PrefetchScalarGridSpec(
                num_scalar_prefetch=0,
                grid=(1,),
                in_specs=[full((n_pad, n_pad)), full((n_pad, 1)),
                          full((n_pad, f_in)), full((n_pad, f_in)),
                          full((2 * f_in, h)), full((1, h)), full((h, 2 * f_out)),
                          full((1, f_out)), full((f_out, 2)), full((1, 2))],
                out_specs=full((n_pad, 2)),
            ),
            compiler_params=pltpu.CompilerParams(vmem_limit_bytes=usable),
        )(adj, deg_inv, x_bf16, x, w1, params["b1l"], w2,
          params["b2l"], params["wfc"], params["bfc"])
        return out[:n]

    # ---------------- streaming path: int8 adjacency, (rows x K) tiling ----------------
    # int8 halves A's HBM traffic vs bf16 (both kernels are HBM-roofline bound on A).
    # Per-pair duplicate-edge counts > 127 would overflow int8 (not a concern here).
    a_i8 = adj.astype(jnp.int8)
    grid = (n_pad // tm, n_pad // tk)
    cparams = pltpu.CompilerParams(
        dimension_semantics=("parallel", "arbitrary"),
        vmem_limit_bytes=usable,
    )

    # kernel 1: conv1 + relu + layer-2 projections, accumulated over K tiles of A
    p_full = pl.pallas_call(
        _layer1_stream_kernel,
        out_shape=jax.ShapeDtypeStruct((n_pad, 2 * f_out), jnp.float32),
        grid_spec=pltpu.PrefetchScalarGridSpec(
            num_scalar_prefetch=0,
            grid=grid,
            in_specs=[
                pl.BlockSpec((tm, tk), lambda i, k: (i, k)),        # A tile (int8)
                pl.BlockSpec((tk, f_in), lambda i, k: (k, 0)),      # x K-tile (bf16)
                pl.BlockSpec((tm, f_in), lambda i, k: (i, 0)),      # x row tile (f32, lin_r)
                pl.BlockSpec((tm, 1), lambda i, k: (i, 0)),         # 1/deg row tile
                pl.BlockSpec((2 * f_in, h), lambda i, k: (0, 0)),   # [W1l ; W1r]
                pl.BlockSpec((1, h), lambda i, k: (0, 0)),          # b1l
                pl.BlockSpec((h, 2 * f_out), lambda i, k: (0, 0)),  # [W2l | W2r]
            ],
            out_specs=pl.BlockSpec((tm, 2 * f_out), lambda i, k: (i, 0)),
            scratch_shapes=[pltpu.VMEM((tm, f_in), jnp.float32)],
        ),
        compiler_params=cparams,
    )(a_i8, x_bf16, x, deg_inv, w1, params["b1l"], w2)

    proj = p_full[:, :f_out].astype(jnp.bfloat16)   # aggregated by A in kernel 2
    side = p_full[:, f_out:]                        # lin_r(h1) term (row-local)

    # kernel 2: reassociated conv2 + normalize + fc + softmax
    out = pl.pallas_call(
        _layer2_stream_kernel,
        out_shape=jax.ShapeDtypeStruct((n_pad, 2), jnp.float32),
        grid_spec=pltpu.PrefetchScalarGridSpec(
            num_scalar_prefetch=0,
            grid=grid,
            in_specs=[
                pl.BlockSpec((tm, tk), lambda i, k: (i, k)),        # A tile (int8)
                pl.BlockSpec((tk, f_out), lambda i, k: (k, 0)),     # proj K-tile (bf16)
                pl.BlockSpec((tm, f_out), lambda i, k: (i, 0)),     # side row tile (f32)
                pl.BlockSpec((tm, 1), lambda i, k: (i, 0)),         # 1/deg row tile
                pl.BlockSpec((1, f_out), lambda i, k: (0, 0)),      # b2l
                pl.BlockSpec((f_out, 2), lambda i, k: (0, 0)),      # Wfc
                pl.BlockSpec((1, 2), lambda i, k: (0, 0)),          # bfc
            ],
            out_specs=pl.BlockSpec((tm, 2), lambda i, k: (i, 0)),
            scratch_shapes=[pltpu.VMEM((tm, f_out), jnp.float32)],
        ),
        compiler_params=cparams,
    )(a_i8, proj, side, deg_inv, params["b2l"], params["wfc"], params["bfc"])

    return out[:n]


# --------------------------------------------------------------------------------------
# Pure-JAX f32 reference (matches PyG SAGEConv semantics) for validation
# --------------------------------------------------------------------------------------
def _reference_forward(params, feat, edge_index):
    n = feat.shape[0]
    src, dst = edge_index[0], edge_index[1]
    adj = jnp.zeros((n, n), jnp.float32).at[dst, src].add(1.0)
    a = adj / jnp.maximum(jnp.sum(adj, axis=1, keepdims=True), 1.0)

    def l2norm(v):
        return v / jnp.maximum(jnp.linalg.norm(v, axis=-1, keepdims=True), 1e-12)

    h1 = l2norm((a @ feat) @ params["w1l"] + params["b1l"] + feat @ params["w1r"])
    h1 = jnp.maximum(h1, 0.0)
    h2 = l2norm((a @ h1) @ params["w2l"] + params["b2l"] + h1 @ params["w2r"])
    logits = h2 @ params["wfc"] + params["bfc"]
    return jax.nn.softmax(logits, axis=-1)


# --------------------------------------------------------------------------------------
# Parameter init (torch xavier_uniform_ on (out,in) weight == this (in,out) transpose)
# --------------------------------------------------------------------------------------
def _xavier_uniform(key, fan_in, fan_out):
    bound = math.sqrt(6.0 / (fan_in + fan_out))
    return jax.random.uniform(key, (fan_in, fan_out), jnp.float32, -bound, bound)


def init_params(key, in_size, hidden_size, out_size):
    ks = jax.random.split(key, 5)
    return {
        # conv1: lin_l (bias=True, zero-filled), lin_r (bias=False)
        "w1l": _xavier_uniform(ks[0], in_size, hidden_size),
        "b1l": jnp.zeros((1, hidden_size), jnp.float32),
        "w1r": _xavier_uniform(ks[1], in_size, hidden_size),
        # conv2
        "w2l": _xavier_uniform(ks[2], hidden_size, out_size),
        "b2l": jnp.zeros((1, out_size), jnp.float32),
        "w2r": _xavier_uniform(ks[3], hidden_size, out_size),
        # fc: Linear(out_size, 2)
        "wfc": _xavier_uniform(ks[4], out_size, 2),
        "bfc": jnp.zeros((1, 2), jnp.float32),
    }


if __name__ == "__main__":
    key = jax.random.PRNGKey(0)
    k_feat, k_edge, k_param = jax.random.split(key, 3)

    N, E = 256, 1024
    in_size, hidden_size, out_size = 16, 32, 16

    feat = jax.random.normal(k_feat, (N, in_size), jnp.float32)
    edge_index = jax.random.randint(k_edge, (2, E), 0, N, jnp.int32)
    params = init_params(k_param, in_size, hidden_size, out_size)

    ref = _reference_forward(params, feat, edge_index)

    # fast path: bf16 adjacency resident in VMEM, single fused kernel
    out_fast = jax.block_until_ready(graphsage_forward(params, feat, edge_index))
    # streaming path: int8 adjacency, (row x K) tiled with VMEM accumulator (grid 2x2)
    out_stream = jax.block_until_ready(
        graphsage_forward(params, feat, edge_index, tm=128, tk=128, force_streaming=True))

    for out in (out_fast, out_stream):
        assert out.shape == (N, 2)
        assert bool(jnp.all(jnp.isfinite(out)))
        # softmax rows sum to 1
        assert bool(jnp.allclose(jnp.sum(out, axis=-1), 1.0, atol=1e-5))
        # matches the pure-f32 reference (bf16 feature cast / MXU bf16 passes -> ~1e-3)
        assert bool(jnp.allclose(out, ref, atol=5e-2)), float(jnp.max(jnp.abs(out - ref)))

    print("KERNEL_OK")
</pallas_src>

<mosaic_0001>
module attributes {stable_mosaic.version = 11 : i64} {
  func.func @_fused_kernel(%arg0: i32, %arg1: memref<256x256xbf16, #tpu.memory_space<vmem>>, %arg2: memref<256x1xf32, #tpu.memory_space<vmem>>, %arg3: memref<256x16xbf16, #tpu.memory_space<vmem>>, %arg4: memref<256x16xf32, #tpu.memory_space<vmem>>, %arg5: memref<32x32xf32, #tpu.memory_space<vmem>>, %arg6: memref<1x32xf32, #tpu.memory_space<vmem>>, %arg7: memref<32x32xf32, #tpu.memory_space<vmem>>, %arg8: memref<1x16xf32, #tpu.memory_space<vmem>>, %arg9: memref<16x2xf32, #tpu.memory_space<vmem>>, %arg10: memref<1x2xf32, #tpu.memory_space<vmem>>, %arg11: memref<256x2xf32, #tpu.memory_space<vmem>>) attributes {dimension_semantics = [#tpu.dimension_semantics<arbitrary>], iteration_bounds = array<i64: 1>, scalar_prefetch = 0 : i64, scratch_operands = 0 : i64, tpu.core_type = #tpu.core_type<tc>, window_params = [{pipeline_mode = #tpu.pipeline_mode<synchronous>, transform_indices = @transform_0, window_bounds = array<i64: 256, 256>}, {pipeline_mode = #tpu.pipeline_mode<synchronous>, transform_indices = @transform_1, window_bounds = array<i64: 256, 1>}, {pipeline_mode = #tpu.pipeline_mode<synchronous>, transform_indices = @transform_2, window_bounds = array<i64: 256, 16>}, {pipeline_mode = #tpu.pipeline_mode<synchronous>, transform_indices = @transform_3, window_bounds = array<i64: 256, 16>}, {pipeline_mode = #tpu.pipeline_mode<synchronous>, transform_indices = @transform_4, window_bounds = array<i64: 32, 32>}, {pipeline_mode = #tpu.pipeline_mode<synchronous>, transform_indices = @transform_5, window_bounds = array<i64: 1, 32>}, {pipeline_mode = #tpu.pipeline_mode<synchronous>, transform_indices = @transform_6, window_bounds = array<i64: 32, 32>}, {pipeline_mode = #tpu.pipeline_mode<synchronous>, transform_indices = @transform_7, window_bounds = array<i64: 1, 16>}, {pipeline_mode = #tpu.pipeline_mode<synchronous>, transform_indices = @transform_8, window_bounds = array<i64: 16, 2>}, {pipeline_mode = #tpu.pipeline_mode<synchronous>, transform_indices = @transform_9, window_bounds = array<i64: 1, 2>}, {pipeline_mode = #tpu.pipeline_mode<synchronous>, transform_indices = @transform_10, window_bounds = array<i64: 256, 2>}]} {
    %c0 = arith.constant 0 : index
    %c0_0 = arith.constant 0 : index
    %0 = vector.load %arg1[%c0, %c0_0] : memref<256x256xbf16, #tpu.memory_space<vmem>>, vector<256x256xbf16>
    %c0_1 = arith.constant 0 : index
    %c0_2 = arith.constant 0 : index
    %1 = vector.load %arg2[%c0_1, %c0_2] : memref<256x1xf32, #tpu.memory_space<vmem>>, vector<256x1xf32>
    %c0_3 = arith.constant 0 : index
    %c0_4 = arith.constant 0 : index
    %2 = vector.load %arg3[%c0_3, %c0_4] : memref<256x16xbf16, #tpu.memory_space<vmem>>, vector<256x16xbf16>
    %cst = arith.constant dense<0.000000e+00> : vector<256x16xf32>
    %3 = tpu.matmul %0, %2, %cst {dimension_numbers = #tpu.dot_dimension_numbers<[1], [0], [0], [1], [0, 0, 1, 1], [], []>} : vector<256x256xbf16>, vector<256x16xbf16>, vector<256x16xf32> -> vector<256x16xf32>
    %4 = vector.broadcast %1 : vector<256x1xf32> to vector<256x16xf32>
    %5 = arith.mulf %3, %4 : vector<256x16xf32>
    %c0_5 = arith.constant 0 : index
    %c0_6 = arith.constant 0 : index
    %6 = vector.load %arg4[%c0_5, %c0_6] : memref<256x16xf32, #tpu.memory_space<vmem>>, vector<256x16xf32>
    %7 = tpu.concatenate %5, %6 in 1 : vector<256x16xf32>, vector<256x16xf32> -> vector<256x32xf32>
    %c0_7 = arith.constant 0 : index
    %c0_8 = arith.constant 0 : index
    %8 = vector.load %arg5[%c0_7, %c0_8] : memref<32x32xf32, #tpu.memory_space<vmem>>, vector<32x32xf32>
    %cst_9 = arith.constant dense<0.000000e+00> : vector<256x32xf32>
    %9 = tpu.matmul %7, %8, %cst_9 {dimension_numbers = #tpu.dot_dimension_numbers<[1], [0], [0], [1], [0, 0, 1, 1], [], []>} : vector<256x32xf32>, vector<32x32xf32>, vector<256x32xf32> -> vector<256x32xf32>
    %c0_10 = arith.constant 0 : index
    %c0_11 = arith.constant 0 : index
    %10 = vector.load %arg6[%c0_10, %c0_11] : memref<1x32xf32, #tpu.memory_space<vmem>>, vector<1x32xf32>
    %11 = vector.broadcast %10 : vector<1x32xf32> to vector<256x32xf32>
    %12 = arith.addf %9, %11 : vector<256x32xf32>
    %13 = arith.mulf %12, %12 : vector<256x32xf32>
    %cst_12 = arith.constant dense<0.000000e+00> : vector<256xf32>
    %14 = vector.multi_reduction <add>, %13, %cst_12 [1] : vector<256x32xf32> to vector<256xf32>
    %15 = vector.shape_cast %14 : vector<256xf32> to vector<256x1xf32>
    %cst_13 = arith.constant 1.000000e-24 : f32
    %16 = vector.broadcast %cst_13 : f32 to vector<256x1xf32>
    %17 = arith.maximumf %15, %16 : vector<256x1xf32>
    %18 = math.rsqrt %17 : vector<256x1xf32>
    %19 = vector.broadcast %18 : vector<256x1xf32> to vector<256x32xf32>
    %20 = arith.mulf %12, %19 : vector<256x32xf32>
    %cst_14 = arith.constant 0.000000e+00 : f32
    %21 = vector.broadcast %cst_14 : f32 to vector<256x32xf32>
    %22 = arith.maximumf %20, %21 : vector<256x32xf32>
    %c0_15 = arith.constant 0 : index
    %c0_16 = arith.constant 0 : index
    %23 = vector.load %arg7[%c0_15, %c0_16] : memref<32x32xf32, #tpu.memory_space<vmem>>, vector<32x32xf32>
    %cst_17 = arith.constant dense<0.000000e+00> : vector<256x32xf32>
    %24 = tpu.matmul %22, %23, %cst_17 {dimension_numbers = #tpu.dot_dimension_numbers<[1], [0], [0], [1], [0, 0, 1, 1], [], []>} : vector<256x32xf32>, vector<32x32xf32>, vector<256x32xf32> -> vector<256x32xf32>
    %25 = vector.extract_strided_slice %24 {offsets = [0, 0], sizes = [256, 16], strides = [1, 1]} : vector<256x32xf32> to vector<256x16xf32>
    %26 = arith.truncf %25 : vector<256x16xf32> to vector<256x16xbf16>
    %cst_18 = arith.constant dense<0.000000e+00> : vector<256x16xf32>
    %27 = tpu.matmul %0, %26, %cst_18 {dimension_numbers = #tpu.dot_dimension_numbers<[1], [0], [0], [1], [0, 0, 1, 1], [], []>} : vector<256x256xbf16>, vector<256x16xbf16>, vector<256x16xf32> -> vector<256x16xf32>
    %28 = vector.broadcast %1 : vector<256x1xf32> to vector<256x16xf32>
    %29 = arith.mulf %27, %28 : vector<256x16xf32>
    %30 = vector.extract_strided_slice %24 {offsets = [0, 16], sizes = [256, 16], strides = [1, 1]} : vector<256x32xf32> to vector<256x16xf32>
    %31 = arith.addf %29, %30 : vector<256x16xf32>
    %c0_19 = arith.constant 0 : index
    %c0_20 = arith.constant 0 : index
    %32 = vector.load %arg8[%c0_19, %c0_20] : memref<1x16xf32, #tpu.memory_space<vmem>>, vector<1x16xf32>
    %33 = vector.broadcast %32 : vector<1x16xf32> to vector<256x16xf32>
    %34 = arith.addf %31, %33 : vector<256x16xf32>
    %35 = arith.mulf %34, %34 : vector<256x16xf32>
    %cst_21 = arith.constant dense<0.000000e+00> : vector<256xf32>
    %36 = vector.multi_reduction <add>, %35, %cst_21 [1] : vector<256x16xf32> to vector<256xf32>
    %37 = vector.shape_cast %36 : vector<256xf32> to vector<256x1xf32>
    %cst_22 = arith.constant 1.000000e-24 : f32
    %38 = vector.broadcast %cst_22 : f32 to vector<256x1xf32>
    %39 = arith.maximumf %37, %38 : vector<256x1xf32>
    %40 = math.rsqrt %39 : vector<256x1xf32>
    %41 = vector.broadcast %40 : vector<256x1xf32> to vector<256x16xf32>
    %42 = arith.mulf %34, %41 : vector<256x16xf32>
    %c0_23 = arith.constant 0 : index
    %c0_24 = arith.constant 0 : index
    %43 = vector.load %arg9[%c0_23, %c0_24] : memref<16x2xf32, #tpu.memory_space<vmem>>, vector<16x2xf32>
    %cst_25 = arith.constant dense<0.000000e+00> : vector<256x2xf32>
    %44 = tpu.matmul %42, %43, %cst_25 {dimension_numbers = #tpu.dot_dimension_numbers<[1], [0], [0], [1], [0, 0, 1, 1], [], []>} : vector<256x16xf32>, vector<16x2xf32>, vector<256x2xf32> -> vector<256x2xf32>
    %c0_26 = arith.constant 0 : index
    %c0_27 = arith.constant 0 : index
    %45 = vector.load %arg10[%c0_26, %c0_27] : memref<1x2xf32, #tpu.memory_space<vmem>>, vector<1x2xf32>
    %46 = vector.broadcast %45 : vector<1x2xf32> to vector<256x2xf32>
    %47 = arith.addf %44, %46 : vector<256x2xf32>
    %cst_28 = arith.constant dense<0xFF800000> : vector<256xf32>
    %48 = vector.multi_reduction <maximumf>, %47, %cst_28 [1] : vector<256x2xf32> to vector<256xf32>
    %49 = vector.shape_cast %48 : vector<256xf32> to vector<256x1xf32>
    %50 = vector.broadcast %49 : vector<256x1xf32> to vector<256x2xf32>
    %51 = arith.subf %47, %50 : vector<256x2xf32>
    %52 = math.exp %51 : vector<256x2xf32>
    %cst_29 = arith.constant dense<0.000000e+00> : vector<256xf32>
    %53 = vector.multi_reduction <add>, %52, %cst_29 [1] : vector<256x2xf32> to vector<256xf32>
    %54 = vector.shape_cast %53 : vector<256xf32> to vector<256x1xf32>
    %55 = vector.broadcast %54 : vector<256x1xf32> to vector<256x2xf32>
    %56 = arith.divf %52, %55 : vector<256x2xf32>
    %c0_30 = arith.constant 0 : index
    %c0_31 = arith.constant 0 : index
    %57 = vector.load %arg11[%c0_30, %c0_31] : memref<256x2xf32, #tpu.memory_space<vmem>>, vector<256x2xf32>
    tpu.vector_store %arg11[%c0_30, %c0_31], %56 {strides = array<i32>} : memref<256x2xf32, #tpu.memory_space<vmem>>, vector<256x2xf32>,
    return
  }
  func.func @transform_0(%arg0: i32) -> (i32, i32) {
    %c0_i32 = arith.constant 0 : i32
    %c0_i32_0 = arith.constant 0 : i32
    %c0_i32_1 = arith.constant 0 : i32
    return %c0_i32, %c0_i32_0 : i32, i32
  }
  func.func @transform_1(%arg0: i32) -> (i32, i32) {
    %c0_i32 = arith.constant 0 : i32
    %c0_i32_0 = arith.constant 0 : i32
    %c0_i32_1 = arith.constant 0 : i32
    return %c0_i32, %c0_i32_0 : i32, i32
  }
  func.func @transform_2(%arg0: i32) -> (i32, i32) {
    %c0_i32 = arith.constant 0 : i32
    %c0_i32_0 = arith.constant 0 : i32
    %c0_i32_1 = arith.constant 0 : i32
    return %c0_i32, %c0_i32_0 : i32, i32
  }
  func.func @transform_3(%arg0: i32) -> (i32, i32) {
    %c0_i32 = arith.constant 0 : i32
    %c0_i32_0 = arith.constant 0 : i32
    %c0_i32_1 = arith.constant 0 : i32
    return %c0_i32, %c0_i32_0 : i32, i32
  }
  func.func @transform_4(%arg0: i32) -> (i32, i32) {
    %c0_i32 = arith.constant 0 : i32
    %c0_i32_0 = arith.constant 0 : i32
    %c0_i32_1 = arith.constant 0 : i32
    return %c0_i32, %c0_i32_0 : i32, i32
  }
  func.func @transform_5(%arg0: i32) -> (i32, i32) {
    %c0_i32 = arith.constant 0 : i32
    %c0_i32_0 = arith.constant 0 : i32
    %c0_i32_1 = arith.constant 0 : i32
    return %c0_i32, %c0_i32_0 : i32, i32
  }
  func.func @transform_6(%arg0: i32) -> (i32, i32) {
    %c0_i32 = arith.constant 0 : i32
    %c0_i32_0 = arith.constant 0 : i32
    %c0_i32_1 = arith.constant 0 : i32
    return %c0_i32, %c0_i32_0 : i32, i32
  }
  func.func @transform_7(%arg0: i32) -> (i32, i32) {
    %c0_i32 = arith.constant 0 : i32
    %c0_i32_0 = arith.constant 0 : i32
    %c0_i32_1 = arith.constant 0 : i32
    return %c0_i32, %c0_i32_0 : i32, i32
  }
  func.func @transform_8(%arg0: i32) -> (i32, i32) {
    %c0_i32 = arith.constant 0 : i32
    %c0_i32_0 = arith.constant 0 : i32
    %c0_i32_1 = arith.constant 0 : i32
    return %c0_i32, %c0_i32_0 : i32, i32
  }
  func.func @transform_9(%arg0: i32) -> (i32, i32) {
    %c0_i32 = arith.constant 0 : i32
    %c0_i32_0 = arith.constant 0 : i32
    %c0_i32_1 = arith.constant 0 : i32
    return %c0_i32, %c0_i32_0 : i32, i32
  }
  func.func @transform_10(%arg0: i32) -> (i32, i32) {
    %c0_i32 = arith.constant 0 : i32
    %c0_i32_0 = arith.constant 0 : i32
    %c0_i32_1 = arith.constant 0 : i32
    return %c0_i32, %c0_i32_0 : i32, i32
  }
}

</mosaic_0001>

<bundles_post_ra>
// kernel: tpu_custom_call.1
= control target key start
LH: loop header
LB: loop body
LE: loop exit
PB: predicated region body
PF: predicated region fallthrough
CT: control target
= control target key end

     0   :  { %v4205_v0 = vmov 0   ;;  %s4206_s24 = smov 16   ;;  %vm901_vm0 = vcmask 130048   ;;  %vm945_vm1 = vcmask 261120   ;;  %s4207_s27 = smov 112   ;;  %vm2810_vm2 = vcmask 15360   ;;  %s6061_s1 = inlined_call_operand.vmem [shape: f32[256,1], index: 1, kind: input, shape index: {}]   ;;  %s6062_s2 = inlined_call_operand.vmem [shape: bf16[256,16], index: 2, kind: input, shape index: {}]   ;;  %s6063_s0 = inlined_call_operand.vmem [shape: bf16[256,256], index: 0, kind: input, shape index: {}]   ;;  %s6064_s3 = inlined_call_operand.vmem [shape: f32[256,16], index: 3, kind: input, shape index: {}]   ;;  %s6065_s4 = inlined_call_operand.vmem [shape: f32[32,32], index: 4, kind: input, shape index: {}]   ;;  %s6066_s5 = inlined_call_operand.vmem [shape: f32[1,32], index: 5, kind: input, shape index: {}]   ;;  %s6067_s6 = inlined_call_operand.vmem [shape: f32[32,32], index: 6, kind: input, shape index: {}]   ;;  %s6068_s7 = inlined_call_operand.vmem [shape: f32[1,16], index: 7, kind: input, shape index: {}]   ;;  %s6069_s8 = inlined_call_operand.vmem [shape: f32[16,2], index: 8, kind: input, shape index: {}]   ;;  %s6070_s9 = inlined_call_operand.vmem [shape: f32[1,2], index: 9, kind: input, shape index: {}]   ;;  %s6071_s10 = inlined_call_operand.vmem [shape: f32[256,2], index: 10, kind: output, shape index: {}]  }
   0x1   :  { %3852 = vset.pattern.permute.xlu1 %v4205_v0  ;;  %v70_v1 = vld [vmem:[%s6061_s1 + $0x10] sm:$0xff]  ;;  %3851 = vset.pattern.permute.xlu0 %v4205_v0  ;;  %v3853_v2 = vld [vmem:[%s6062_s2 + $0x78] sm:$0xff]   ;;  %v3857_v7 = vld [vmem:[%s6062_s2 + $0x68] sm:$0xff]  }
   0x2   :  { %561 = vperm.xlu1 %3852, %v70_v1   ;;  %v3854_v3 = vld [vmem:[%s6062_s2 + $0x38] sm:$0xff]   ;;  %3346 = vmatprep.subr.bf16.mxu0 %v3853_v2  ;;  %v3855_v5 = vld [vmem:[%s6062_s2 + $0x70] sm:$0xff]   ;;  %v72_v8 = vld [vmem:[%s6061_s1 + $0x20] sm:$0xff] }
   0x3   :  { %v71_v4 = vld [vmem:[%s6061_s1 + $0x18] sm:$0xff]  ;;  %3347 = vmatpush3.bf16.msra.mxu0 %v3854_v3  ;;  %v3856_v6 = vld [vmem:[%s6062_s2 + $0x30] sm:$0xff]   ;;  %v3858_v9 = vld [vmem:[%s6062_s2 + $0x28] sm:$0xff]  }
   0x4   :  { %3348 = vmatprep.subr.bf16.mxu0 %v3855_v5  ;;  %v3859_v10 = vld [vmem:[%s6062_s2 + $0x60] sm:$0xff]   ;;  %v73_v11 = vld [vmem:[%s6061_s1 + $0x28] sm:$0xff]  ;;  %v3861_v13 = vld [vmem:[%s6062_s2 + $0x58] sm:$0xff]  }
   0x5   :  { %v3860_v12 = vld [vmem:[%s6062_s2 + $0x20] sm:$0xff]   ;;  %v74_v14 = vld [vmem:[%s6061_s1 + $0x30] sm:$0xff]  ;;  %v3862_v15 = vld [vmem:[%s6062_s2 + $0x18] sm:$0xff]  }
   0x6   :  { %566 = vperm.xlu1 %3852, %v71_v4   ;;  %v3863_v16 = vld [vmem:[%s6062_s2 + $0x50] sm:$0xff]   ;;  %v75_v17 = vld [vmem:[%s6061_s1 + $0x38] sm:$0xff]  ;;  %v3871_v19 = vld [vmem:[%s6063_s0 + $0x4] ss:$8 sps:$4 sm:$0xff]  }
   0x7   :  { %3349 = vmatpush3.bf16.msra.mxu0 %v3856_v6  ;;  %v3864_v18 = vld [vmem:[%s6062_s2 + $0x10] sm:$0xff]   ;;  %v3865_v20 = vld [vmem:[%s6062_s2 + $0x48] sm:$0xff]   ;;  %v76_v21 = vld [vmem:[%s6061_s1 + $0x40] sm:$0xff]  ;;  %420 = vmatprep.mubr.bf16.mxu0 %v3871_v19 }
   0x8   :  { %3350 = vmatprep.subr.bf16.mxu0 %v3857_v7  ;;  %v3866_v22 = vld [vmem:[%s6062_s2 + $0x8] sm:$0xff]   ;;  %v3867_v23 = vld [vmem:[%s6062_s2 + $0x40] sm:$0xff]   ;;  %v78_v26 = vld [vmem:[%s6061_s1 + $0x50] sm:$0xff] }
   0x9   :  { %v77_v24 = vld [vmem:[%s6061_s1 + $0x48] sm:$0xff]  ;;  %v3868_v25 = vld [vmem:[%s6062_s2] sm:$0xff]   ;;  %v3872_v28 = vld [vmem:[%s6063_s0 + $0x14] ss:$8 sps:$4 sm:$0xff]  }
   0xa   :  { %571 = vperm.xlu1 %3852, %v72_v8   ;;  %v3869_v27 = vld [vmem:[%s6063_s0] ss:$8 sps:$4 sm:$0xff]   ;;  %v79_v29 = vld [vmem:[%s6061_s1 + $0x58] sm:$0xff]  ;;  %v3875_v34 = vld [vmem:[%s6063_s0 + $0x24] ss:$8 sps:$4 sm:$0xff]  }
   0xb   :  { %3351 = vmatpush3.bf16.msra.mxu0 %v3858_v9  ;;  %v68_v30 = vld [vmem:[%s6061_s1] sm:$0xff]  ;;  %v69_v32 = vld [vmem:[%s6061_s1 + $0x8] sm:$0xff]  ;;  %v3874_v33 = vld [vmem:[%s6063_s0 + $0x10] ss:$8 sps:$4 sm:$0xff]  }
   0xc   :  { %3352 = vmatprep.subr.bf16.mxu0 %v3859_v10  ;;  %551 = vperm.xlu0 %3851, %v68_v30   ;;  %v80_v31 = vld [vmem:[%s6061_s1 + $0x60] sm:$0xff]  ;;  %v81_v35 = vld [vmem:[%s6061_s1 + $0x68] sm:$0xff]  ;;  %v82_v37 = vld [vmem:[%s6061_s1 + $0x70] sm:$0xff] }
   0xd   :  { %v741_v36 = vld [vmem:[%s6064_s3] sm:$0xff]  ;;  %v742_v38 = vld [vmem:[%s6064_s3 + $0x8] sm:$0xff]  ;;  %v3878_v40 = vld [vmem:[%s6063_s0 + $0x34] ss:$8 sps:$4 sm:$0xff]  }
   0xe   :  { %576 = vperm.xlu1 %3852, %v73_v11   ;;  %v3877_v39 = vld [vmem:[%s6063_s0 + $0x20] ss:$8 sps:$4 sm:$0xff]   ;;  %v83_v41 = vld [vmem:[%s6061_s1 + $0x78] sm:$0xff]  ;;  %v743_v42 = vld [vmem:[%s6064_s3 + $0x10] sm:$0xff] }
   0xf   :  { %3353 = vmatpush3.bf16.msra.mxu0 %v3860_v12  ;;  %v84_v43 = vld [vmem:[%s6061_s1 + $0x80] sm:$0xff]  ;;  %v744_v44 = vld [vmem:[%s6064_s3 + $0x18] sm:$0xff]  ;;  %v85_v47 = vld [vmem:[%s6061_s1 + $0x88] sm:$0xff] }
  0x10   :  { %3354 = vmatprep.subr.bf16.mxu0 %v3861_v13  ;;  %556 = vperm.xlu0 %3851, %v69_v32   ;;  %v3880_v45 = vld [vmem:[%s6063_s0 + $0x30] ss:$8 sps:$4 sm:$0xff]   ;;  %v3881_v46 = vld [vmem:[%s6063_s0 + $0x44] ss:$8 sps:$4 sm:$0xff]   ;;  %v3883_v51 = vld [vmem:[%s6063_s0 + $0x40] ss:$8 sps:$4 sm:$0xff]  }
  0x11   :  { %v745_v48 = vld [vmem:[%s6064_s3 + $0x20] sm:$0xff]  ;;  %v86_v49 = vld [vmem:[%s6061_s1 + $0x90] sm:$0xff]  ;;  %v746_v50 = vld [vmem:[%s6064_s3 + $0x28] sm:$0xff] }
  0x12   :  { %581 = vperm.xlu1 %3852, %v74_v14   ;;  %v3884_v52 = vld [vmem:[%s6063_s0 + $0x54] ss:$8 sps:$4 sm:$0xff]   ;;  %v88_v56 = vld [vmem:[%s6061_s1 + $0xa0] sm:$0xff]  ;;  %v3886_v58 = vld [vmem:[%s6063_s0 + $0x50] ss:$8 sps:$4 sm:$0xff]  }
  0x13   :  { %3355 = vmatpush3.bf16.msra.mxu0 %v3862_v15  ;;  %v87_v53 = vld [vmem:[%s6061_s1 + $0x98] sm:$0xff]  ;;  %v747_v54 = vld [vmem:[%s6064_s3 + $0x30] sm:$0xff]  ;;  %v3887_v59 = vld [vmem:[%s6063_s0 + $0x64] ss:$8 sps:$4 sm:$0xff]  }
  0x14   :  { %3356 = vmatprep.subr.bf16.mxu0 %v3863_v16  ;;  %805 = vrot.lane.b32.xlu0 %v741_v36, %s4206_s24  ;;  %v937_v55 = vld [vmem:[%s6065_s4 + $0x18] sm:$0xff]  ;;  %v89_v60 = vld [vmem:[%s6061_s1 + $0xa8] sm:$0xff]  ;;  %v749_v61 = vld [vmem:[%s6064_s3 + $0x40] sm:$0xff] }
  0x15   :  { %v748_v57 = vld [vmem:[%s6064_s3 + $0x38] sm:$0xff]  ;;  %3840 = vmatprep.subr.mxu1 %v937_v55  ;;  %v90_v62 = vld [vmem:[%s6061_s1 + $0xb0] sm:$0xff]  ;;  %v750_v63 = vld [vmem:[%s6064_s3 + $0x48] sm:$0xff] }
  0x16   :  { %586 = vperm.xlu1 %3852, %v75_v17   ;;  %3844 = vmatpush3.msra.mxu1 %v937_v55  ;;  %v3889_v0 = vld [vmem:[%s6063_s0 + $0x60] ss:$8 sps:$4 sm:$0xff]   ;;  %v3890_v1 = vld [vmem:[%s6063_s0 + $0x74] ss:$8 sps:$4 sm:$0xff]   ;;  %v3892_v6 = vld [vmem:[%s6063_s0 + $0x70] ss:$8 sps:$4 sm:$0xff]  }
  0x17   :  { %3357 = vmatpush3.bf16.msra.mxu0 %v3864_v18  ;;  %v91_v2 = vld [vmem:[%s6061_s1 + $0xb8] sm:$0xff]  ;;  %v751_v3 = vld [vmem:[%s6064_s3 + $0x50] sm:$0xff]  ;;  %v92_v4 = vld [vmem:[%s6061_s1 + $0xc0] sm:$0xff] }
  0x18   :  { %3358 = vmatprep.subr.bf16.mxu0 %v3865_v20  ;;  %807 = vrot.lane.b32.xlu0 %v742_v38, %s4206_s24  ;;  %v752_v5 = vld [vmem:[%s6064_s3 + $0x58] sm:$0xff]  ;;  %v3893_v7 = vld [vmem:[%s6063_s0 + $0x84] ss:$8 sps:$4 sm:$0xff]   ;;  %v94_v10 = vld [vmem:[%s6061_s1 + $0xd0] sm:$0xff] }
  0x19   :  { %v93_v8 = vld [vmem:[%s6061_s1 + $0xc8] sm:$0xff]  ;;  %v753_v9 = vld [vmem:[%s6064_s3 + $0x60] sm:$0xff]  ;;  %v3896_v13 = vld [vmem:[%s6063_s0 + $0x94] ss:$8 sps:$4 sm:$0xff]  }
  0x1a   :  { %591 = vperm.xlu1 %3852, %v76_v21   ;;  %v754_v11 = vld [vmem:[%s6064_s3 + $0x68] sm:$0xff]  ;;  %v95_v14 = vld [vmem:[%s6061_s1 + $0xd8] sm:$0xff]  ;;  %v755_v15 = vld [vmem:[%s6064_s3 + $0x70] sm:$0xff] }
  0x1b   :  { %3359 = vmatpush3.bf16.msra.mxu0 %v3866_v22  ;;  %v3895_v12 = vld [vmem:[%s6063_s0 + $0x80] ss:$8 sps:$4 sm:$0xff]   ;;  %v756_v17 = vld [vmem:[%s6064_s3 + $0x78] sm:$0xff]  ;;  %v3899_v19 = vld [vmem:[%s6063_s0 + $0xa4] ss:$8 sps:$4 sm:$0xff]  }
  0x1c   :  { %3360 = vmatprep.subr.bf16.mxu0 %v3867_v23  ;;  %809 = vrot.lane.b32.xlu0 %v743_v42, %s4206_s24  ;;  %v96_v16 = vld [vmem:[%s6061_s1 + $0xe0] sm:$0xff]  ;;  %v3898_v18 = vld [vmem:[%s6063_s0 + $0x90] ss:$8 sps:$4 sm:$0xff]   ;;  %v97_v21 = vld [vmem:[%s6061_s1 + $0xe8] sm:$0xff] }
  0x1d   :  { %v936_v20 = vld [vmem:[%s6065_s4 + $0x10] sm:$0xff]  ;;  %v757_v22 = vld [vmem:[%s6064_s3 + $0x80] sm:$0xff]  ;;  %v935_v23 = vld [vmem:[%s6065_s4 + $0x8] sm:$0xff] }
  0x1e   :  { %596 = vperm.xlu1 %3852, %v77_v24   ;;  %3841 = vmatprep.subr.mxu1 %v936_v20  ;;  %v934_v24 = vld [vmem:[%s6065_s4] sm:$0xff]  ;;  %v759_v30 = vld [vmem:[%s6064_s3 + $0x90] sm:$0xff]  ;;  %v770_v32 = vld [vmem:[%s6064_s3 + $0xe8] sm:$0xff] }
  0x1f   :  { %3361 = vmatpush3.bf16.msra.mxu0 %v3868_v25  ;;  %3845 = vmatpush3.msra.mxu1 %v936_v20  ;;  %v98_v25 = vld [vmem:[%s6061_s1 + $0xf0] sm:$0xff]  ;;  %v772_v36 = vld [vmem:[%s6064_s3 + $0xf8] sm:$0xff]  ;;  %v3907_v38 = vld [vmem:[%s6063_s0 + $0xc0] ss:$8 sps:$4 sm:$0xff]  }
  0x20   :  { %811 = vrot.lane.b32.xlu0 %v744_v44, %s4206_s24  ;;  %3676 = vmatprep.subr.mxu0 %v937_v55  ;;  %v3910_v42 = vld [vmem:[%s6063_s0 + $0xd0] ss:$8 sps:$4 sm:$0xff]   ;;  %v765_v44 = vld [vmem:[%s6064_s3 + $0xc0] sm:$0xff] }
  0x21   :  { %3842 = vmatprep.subr.mxu1 %v935_v23 }
  0x22   :  { %601 = vperm.xlu1 %3852, %v78_v26   ;;  %421 = vmatmul.mubr.bf16.vlgmr.msra.gmra.mxu0 %v3869_v27  ;;  %v758_v26 = vld [vmem:[%s6064_s3 + $0x88] sm:$0xff] }
  0x23   :  { %428 = vmatprep.mubr.bf16.mxu0 %v3872_v28  ;;  %3677 = vmatpush3.msra.mxu0 %v937_v55  ;;  %v3901_v27 = vld [vmem:[%s6063_s0 + $0xa0] ss:$8 sps:$4 sm:$0xff]   ;;  %v3902_v28 = vld [vmem:[%s6063_s0 + $0xb4] ss:$8 sps:$4 sm:$0xff]  }
  0x24   :  { %813 = vrot.lane.b32.xlu0 %v745_v48, %s4206_s24  ;;  %3678 = vmatprep.subr.mxu0 %v936_v20  ;;  %v767_v48 = vld [vmem:[%s6064_s3 + $0xd0] sm:$0xff] }
  0x25   :  { %3679 = vmatpush3.msra.mxu0 %v936_v20  ;;  %3846 = vmatpush3.msra.mxu1 %v935_v23 }
  0x26   :  { %606 = vperm.xlu1 %3852, %v79_v29   ;;  %3680 = vmatprep.subr.mxu0 %v935_v23  ;;  %v99_v29 = vld [vmem:[%s6061_s1 + $0xf8] sm:$0xff] }
  0x27   :  { %3681 = vmatpush3.msra.mxu0 %v935_v23  ;;  %3843 = vmatprep.subr.mxu1 %v934_v24 }
  0x28   :  { %815 = vrot.lane.b32.xlu0 %v746_v50, %s4206_s24  ;;  %3682 = vmatprep.subr.mxu0 %v934_v24  ;;  %v3916_v50 = vld [vmem:[%s6063_s0 + $0xf0] ss:$8 sps:$4 sm:$0xff]  }
  0x29   :  { %3683 = vmatpush3.msra.mxu0 %v934_v24  ;;  %3847 = vmatpush3.msra.mxu1 %v934_v24 }
  0x2a   :  { %611 = vperm.xlu1 %3852, %v80_v31   ;;  %429 = vmatmul.mubr.bf16.gmra.mxu0 %v3874_v33  ;;  %v760_v31 = vld [vmem:[%s6064_s3 + $0x98] sm:$0xff] }
  0x2b   :  { %436 = vmatprep.mubr.bf16.mxu0 %v3875_v34  ;;  %v3904_v33 = vld [vmem:[%s6063_s0 + $0xb0] ss:$8 sps:$4 sm:$0xff]   ;;  %v3905_v34 = vld [vmem:[%s6063_s0 + $0xc4] ss:$8 sps:$4 sm:$0xff]  }
  0x2c   :  { %817 = vrot.lane.b32.xlu0 %v747_v54, %s4206_s24 }
  0x2e   :  { %616 = vperm.xlu1 %3852, %v81_v35   ;;  %v761_v35 = vld [vmem:[%s6064_s3 + $0xa0] sm:$0xff] }
  0x30   :  { %819 = vrot.lane.b32.xlu0 %v748_v57, %s4206_s24 }
  0x32   :  { %621 = vperm.xlu1 %3852, %v82_v37   ;;  %437 = vmatmul.mubr.bf16.gmra.mxu0 %v3877_v39  ;;  %v762_v37 = vld [vmem:[%s6064_s3 + $0xa8] sm:$0xff]  ;;  %v3908_v39 = vld [vmem:[%s6063_s0 + $0xd4] ss:$8 sps:$4 sm:$0xff]  }
  0x33   :  { %444 = vmatprep.mubr.bf16.mxu0 %v3878_v40  ;;  %v763_v40 = vld [vmem:[%s6064_s3 + $0xb0] sm:$0xff] }
  0x34   :  { %821 = vrot.lane.b32.xlu0 %v749_v61, %s4206_s24 }
  0x36   :  { %626 = vperm.xlu1 %3852, %v83_v41   ;;  %v764_v41 = vld [vmem:[%s6064_s3 + $0xb8] sm:$0xff] }
  0x38   :  { %823 = vrot.lane.b32.xlu0 %v750_v63, %s4206_s24 }
  0x3a   :  { %631 = vperm.xlu1 %3852, %v84_v43   ;;  %445 = vmatmul.mubr.bf16.gmra.mxu0 %v3880_v45  ;;  %v3911_v43 = vld [vmem:[%s6063_s0 + $0xe4] ss:$8 sps:$4 sm:$0xff]  }
  0x3b   :  { %452 = vmatprep.mubr.bf16.mxu0 %v3881_v46  ;;  %v766_v45 = vld [vmem:[%s6064_s3 + $0xc8] sm:$0xff] }
  0x3c   :  { %825 = vrot.lane.b32.xlu0 %v751_v3, %s4206_s24  ;;  %v3913_v46 = vld [vmem:[%s6063_s0 + $0xe0] ss:$8 sps:$4 sm:$0xff]  }
  0x3e   :  { %636 = vperm.xlu1 %3852, %v85_v47   ;;  %v3914_v47 = vld [vmem:[%s6063_s0 + $0xf4] ss:$8 sps:$4 sm:$0xff]  }
  0x40   :  { %827 = vrot.lane.b32.xlu0 %v752_v5, %s4206_s24 }
  0x42   :  { %641 = vperm.xlu1 %3852, %v86_v49   ;;  %453 = vmatmul.mubr.bf16.gmra.mxu0 %v3883_v51  ;;  %v768_v49 = vld [vmem:[%s6064_s3 + $0xd8] sm:$0xff]  ;;  %v769_v51 = vld [vmem:[%s6064_s3 + $0xe0] sm:$0xff] }
  0x43   :  { %460 = vmatprep.mubr.bf16.mxu0 %v3884_v52  ;;  %v771_v52 = vld [vmem:[%s6064_s3 + $0xf0] sm:$0xff] }
  0x44   :  { %829 = vrot.lane.b32.xlu0 %v753_v9, %s4206_s24 }
  0x46   :  { %646 = vperm.xlu1 %3852, %v87_v53  }
  0x48   :  { %831 = vrot.lane.b32.xlu0 %v754_v11, %s4206_s24 }
  0x4a   :  { %651 = vperm.xlu1 %3852, %v88_v56   ;;  %461 = vmatmul.mubr.bf16.gmra.mxu0 %v3886_v58 }
  0x4b   :  { %468 = vmatprep.mubr.bf16.mxu0 %v3887_v59 }
  0x4c   :  { %833 = vrot.lane.b32.xlu0 %v755_v15, %s4206_s24 }
  0x4e   :  { %656 = vperm.xlu1 %3852, %v89_v60  }
  0x50   :  { %835 = vrot.lane.b32.xlu0 %v756_v17, %s4206_s24 }
  0x52   :  { %661 = vperm.xlu1 %3852, %v90_v62   ;;  %469 = vmatmul.mubr.bf16.gmra.mxu0 %v3889_v0 }
  0x53   :  { %476 = vmatprep.mubr.bf16.mxu0 %v3890_v1 }
  0x54   :  { %837 = vrot.lane.b32.xlu0 %v757_v22, %s4206_s24 }
  0x56   :  { %666 = vperm.xlu1 %3852, %v91_v2  }
  0x58   :  { %839 = vrot.lane.b32.xlu0 %v758_v26, %s4206_s24 }
  0x5a   :  { %671 = vperm.xlu1 %3852, %v92_v4   ;;  %477 = vmatmul.mubr.bf16.gmra.mxu0 %v3892_v6 }
  0x5b   :  { %484 = vmatprep.mubr.bf16.mxu0 %v3893_v7 }
  0x5c   :  { %841 = vrot.lane.b32.xlu0 %v759_v30, %s4206_s24 }
  0x5e   :  { %676 = vperm.xlu1 %3852, %v93_v8  }
  0x60   :  { %843 = vrot.lane.b32.xlu0 %v760_v31, %s4206_s24 }
  0x62   :  { %681 = vperm.xlu1 %3852, %v94_v10   ;;  %485 = vmatmul.mubr.bf16.gmra.mxu0 %v3895_v12 }
  0x63   :  { %492 = vmatprep.mubr.bf16.mxu0 %v3896_v13 }
  0x64   :  { %845 = vrot.lane.b32.xlu0 %v761_v35, %s4206_s24 }
  0x66   :  { %686 = vperm.xlu1 %3852, %v95_v14  }
  0x68   :  { %847 = vrot.lane.b32.xlu0 %v762_v37, %s4206_s24 }
  0x6a   :  { %691 = vperm.xlu1 %3852, %v96_v16   ;;  %493 = vmatmul.mubr.bf16.gmra.mxu0 %v3898_v18 }
  0x6b   :  { %500 = vmatprep.mubr.bf16.mxu0 %v3899_v19 }
  0x6c   :  { %849 = vrot.lane.b32.xlu0 %v763_v40, %s4206_s24 }
  0x6e   :  { %696 = vperm.xlu1 %3852, %v97_v21  }
  0x70   :  { %851 = vrot.lane.b32.xlu0 %v764_v41, %s4206_s24 }
  0x72   :  { %701 = vperm.xlu1 %3852, %v98_v25   ;;  %501 = vmatmul.mubr.bf16.gmra.mxu0 %v3901_v27 }
  0x73   :  { %508 = vmatprep.mubr.bf16.mxu0 %v3902_v28 }
  0x74   :  { %853 = vrot.lane.b32.xlu0 %v765_v44, %s4206_s24 }
  0x76   :  { %706 = vperm.xlu1 %3852, %v99_v29  }
  0x78   :  { %855 = vrot.lane.b32.xlu0 %v766_v45, %s4206_s24 }
  0x7a   :  { %863 = vrot.lane.b32.xlu1 %v770_v32, %s4206_s24  ;;  %509 = vmatmul.mubr.bf16.gmra.mxu0 %v3904_v33 }
  0x7b   :  { %516 = vmatprep.mubr.bf16.mxu0 %v3905_v34 }
  0x7c   :  { %857 = vrot.lane.b32.xlu0 %v767_v48, %s4206_s24 }
  0x7d   :  { %v4645_v54 = vpop.permute.xlu1 %561 }
  0x7e   :  { %867 = vrot.lane.b32.xlu1 %v772_v36, %s4206_s24 }
  0x80   :  { %859 = vrot.lane.b32.xlu0 %v768_v49, %s4206_s24 }
  0x81   :  { %v4649_v56 = vpop.permute.xlu1 %566 }
  0x82   :  { %517 = vmatmul.mubr.bf16.gmra.mxu0 %v3907_v38 }
  0x83   :  { %524 = vmatprep.mubr.bf16.mxu0 %v3908_v39 }
  0x84   :  { %861 = vrot.lane.b32.xlu0 %v769_v51, %s4206_s24 }
  0x85   :  { %v4651_v58 = vpop.permute.xlu1 %571 }
  0x87   :  { %v4643_v53 = vpop.permute.xlu0 %551 }
  0x88   :  { %865 = vrot.lane.b32.xlu0 %v771_v52, %s4206_s24 }
  0x89   :  { %v4653_v60 = vpop.permute.xlu1 %576 }
  0x8a   :  { %525 = vmatmul.mubr.bf16.gmra.mxu0 %v3910_v42 }
  0x8b   :  { %532 = vmatprep.mubr.bf16.mxu0 %v3911_v43  ;;  %v4647_v55 = vpop.permute.xlu0 %556 }
  0x8d   :  { %v4655_v62 = vpop.permute.xlu1 %581 }
  0x8f   :  { %v806_v57 = vpop.permute.xlu0 %805 }
  0x91   :  { %v4657_v0 = vpop.permute.xlu1 %586 }
  0x92   :  { %533 = vmatmul.mubr.bf16.gmra.mxu0 %v3913_v46 }
  0x93   :  { %540 = vmatprep.mubr.bf16.mxu0 %v3914_v47  ;;  %v808_v59 = vpop.permute.xlu0 %807 }
  0x95   :  { %v4659_v2 = vpop.permute.xlu1 %591 }
  0x97   :  { %v810_v61 = vpop.permute.xlu0 %809 }
  0x99   :  { %v4661_v4 = vpop.permute.xlu1 %596 }
  0x9a   :  { %541 = vmatmul.mubr.bf16.gmra.mxu0 %v3916_v50 }
  0x9b   :  { %v812_v63 = vpop.permute.xlu0 %811 }
  0x9d   :  { %v4663_v6 = vpop.permute.xlu1 %601 }
  0x9f   :  { %v814_v1 = vpop.permute.xlu0 %813 }
  0xa1   :  { %v4667_v8 = vpop.permute.xlu1 %606 }
  0xa3   :  { %v816_v3 = vpop.permute.xlu0 %815 }
  0xa5   :  { %v4671_v11 = vpop.permute.xlu1 %611 }
  0xa7   :  { %v818_v5 = vpop.permute.xlu0 %817 }
  0xa9   :  { %v4676_v18 = vpop.permute.xlu1 %616 }
  0xab   :  { %v4665_v7 = vpop.permute.xlu0 %819 }
  0xad   :  { %v4685_v28 = vpop.permute.xlu1 %621 }
  0xaf   :  { %v4669_v9 = vpop.permute.xlu0 %821 }
  0xb1   :  { %v4693_v37 = vpop.permute.xlu1 %626 }
  0xb3   :  { %v4673_v13 = vpop.permute.xlu0 %823 }
  0xb5   :  { %v4702_v47 = vpop.permute.xlu1 %631 }
  0xb7   :  { %v4680_v22 = vpop.permute.xlu0 %825 }
  0xbb   :  { %v4688_v31 = vpop.permute.xlu0 %827 }
  0xbf   :  { %v4697_v41 = vpop.permute.xlu0 %829 }
  0xc3   :  { %v832_v50 = vpop.permute.xlu0 %831 }
  0xe2   :  { %v3362_v10 = vpop.f32.mrf.mxu0 }
  0xe4   :  { %v3363_v12 = vpop.f32.mrf.mxu0 }
  0xe5   :  { %v3364_v14 = vadd.f32 %v3363_v12, %v3362_v10 }
  0xe6   :  { %v3365_v15 = vpop.f32.mrf.mxu0 }
  0xe7   :  { %v709_v16 = vmul.f32 %v3364_v14, %v4643_v53  ;;  %v834_v14 = vpop.permute.xlu0 %833 }
  0xe8   :  { %v3366_v17 = vpop.f32.mrf.mxu0 }
  0xe9   :  { %v902_v19 = vsel %vm901_vm0, %v709_v16, %v806_v57  ;;  %v3367_v20 = vadd.f32 %v3366_v17, %v3365_v15 }
  0xea   :  { %v3368_v21 = vpop.f32.mrf.mxu0  ;;  %3684 = vmatprep.mubr.msk.f32.mxu0 %vm945_vm1, %v902_v19 }
  0xeb   :  { %v710_v23 = vmul.f32 %v3367_v20, %v4647_v55 }
  0xec   :  { %v3369_v24 = vpop.f32.mrf.mxu0 }
  0xed   :  { %v903_v25 = vsel %vm901_vm0, %v710_v23, %v808_v59  ;;  %v3370_v26 = vadd.f32 %v3369_v24, %v3368_v21  ;;  %v836_v23 = vpop.permute.xlu0 %835 }
  0xee   :  { %v3371_v27 = vpop.f32.mrf.mxu0  ;;  %3685 = vmatmul.mubr.msk.f32.vlgmr.msra.gmra.mxu0 %vm945_vm1, %v903_v25 }
  0xef   :  { %v711_v29 = vmul.f32 %v3370_v26, %v4645_v54 }
  0xf0   :  { %v3372_v30 = vpop.f32.mrf.mxu0 }
  0xf1   :  { %v904_v32 = vsel %vm901_vm0, %v711_v29, %v810_v61  ;;  %v3373_v33 = vadd.f32 %v3372_v30, %v3371_v27 }
  0xf2   :  { %v3374_v34 = vpop.f32.mrf.mxu0  ;;  %3687 = vmatprep.mubr.msk.f32.mxu0 %vm945_vm1, %v904_v32 }
  0xf3   :  { %v712_v35 = vmul.f32 %v3373_v33, %v4649_v56 }
  0xf4   :  { %v3375_v36 = vpop.f32.mrf.mxu0 }
  0xf5   :  { %v905_v38 = vsel %vm901_vm0, %v712_v35, %v812_v63  ;;  %v3376_v39 = vadd.f32 %v3375_v36, %v3374_v34  ;;  %v4708_v63 = vpop.permute.xlu1 %636  ;;  %v838_v34 = vpop.permute.xlu0 %837 }
  0xf6   :  { %v3377_v40 = vpop.f32.mrf.mxu0  ;;  %3688 = vmatmul.mubr.msk.f32.gmra.mxu0 %vm945_vm1, %v905_v38  ;;  %6087 = vst [vmem:[#allocation2_spill] sm:$0xff] %v4708_v63 }
  0xf7   :  { %v713_v42 = vmul.f32 %v3376_v39, %v4651_v58 }
  0xf8   :  { %v3378_v43 = vpop.f32.mrf.mxu0 }
  0xf9   :  { %v906_v44 = vsel %vm901_vm0, %v713_v42, %v814_v1  ;;  %v3379_v45 = vadd.f32 %v3378_v43, %v3377_v40  ;;  %v4716_v20 = vpop.permute.xlu1 %641  ;;  %v840_v43 = vpop.permute.xlu0 %839 }
  0xfa   :  { %v3380_v46 = vpop.f32.mrf.mxu0  ;;  %3690 = vmatprep.mubr.msk.f32.mxu0 %vm945_vm1, %v906_v44  ;;  %6088 = vst [vmem:[#allocation3_spill] sm:$0xff] %v4716_v20 }
  0xfb   :  { %v714_v48 = vmul.f32 %v3379_v45, %v4653_v60 }
  0xfc   :  { %v3381_v49 = vpop.f32.mrf.mxu0 }
  0xfd   :  { %v907_v51 = vsel %vm901_vm0, %v714_v48, %v816_v3  ;;  %v3382_v52 = vadd.f32 %v3381_v49, %v3380_v46  ;;  %v4723_v29 = vpop.permute.xlu1 %646 }
  0xfe   :  { %v3383_v57 = vpop.f32.mrf.mxu0  ;;  %3691 = vmatmul.mubr.msk.f32.gmra.mxu0 %vm945_vm1, %v907_v51  ;;  %6089 = vst [vmem:[#allocation4_spill] sm:$0xff] %v4723_v29 }
  0xff   :  { %v715_v59 = vmul.f32 %v3382_v52, %v4655_v62 }
 0x100   :  { %v3384_v61 = vpop.f32.mrf.mxu0 }
 0x101   :  { %v908_v1 = vsel %vm901_vm0, %v715_v59, %v818_v5  ;;  %v3385_v10 = vadd.f32 %v3384_v61, %v3383_v57  ;;  %v4732_v40 = vpop.permute.xlu1 %651  ;;  %v842_v59 = vpop.permute.xlu0 %841 }
 0x102   :  { %v3386_v12 = vpop.f32.mrf.mxu0  ;;  %3693 = vmatprep.mubr.msk.f32.mxu0 %vm945_vm1, %v908_v1  ;;  %6090 = vst [vmem:[#allocation5_spill] sm:$0xff] %v4732_v40 }
 0x103   :  { %v716_v15 = vmul.f32 %v3385_v10, %v4657_v0 }
 0x104   :  { %v3387_v16 = vpop.f32.mrf.mxu0 }
 0x105   :  { %v909_v3 = vsel %vm901_vm0, %v716_v15, %v4665_v7  ;;  %v3388_v17 = vadd.f32 %v3387_v16, %v3386_v12 }
 0x106   :  { %v3389_v19 = vpop.f32.mrf.mxu0  ;;  %3694 = vmatmul.mubr.msk.f32.gmra.mxu0 %vm945_vm1, %v909_v3 }
 0x107   :  { %v717_v21 = vmul.f32 %v3388_v17, %v4659_v2 }
 0x108   :  { %v3390_v5 = vpop.f32.mrf.mxu0 }
 0x109   :  { %v910_v24 = vsel %vm901_vm0, %v717_v21, %v4669_v9  ;;  %v3391_v25 = vadd.f32 %v3390_v5, %v3389_v19 }
 0x10a   :  { %v3392_v26 = vpop.f32.mrf.mxu0  ;;  %3696 = vmatprep.mubr.msk.f32.mxu0 %vm945_vm1, %v910_v24 }
 0x10b   :  { %v718_v27 = vmul.f32 %v3391_v25, %v4661_v4 }
 0x10c   :  { %v3393_v7 = vpop.f32.mrf.mxu0 }
 0x10d   :  { %v911_v30 = vsel %vm901_vm0, %v718_v27, %v4673_v13  ;;  %v3394_v32 = vadd.f32 %v3393_v7, %v3392_v26 }
 0x10e   :  { %v3395_v33 = vpop.f32.mrf.mxu0  ;;  %3697 = vmatmul.mubr.msk.f32.gmra.mxu0 %vm945_vm1, %v911_v30 }
 0x10f   :  { %v719_v35 = vmul.f32 %v3394_v32, %v4663_v6 }
 0x110   :  { %v3396_v9 = vpop.f32.mrf.mxu0 }
 0x111   :  { %v3397_v36 = vadd.f32 %v3396_v9, %v3395_v33  ;;  %v912_v38 = vsel %vm901_vm0, %v719_v35, %v4680_v22  ;;  %v4739_v22 = vpop.permute.xlu1 %656 }
 0x112   :  { %v3398_v39 = vpop.f32.mrf.mxu0  ;;  %3699 = vmatprep.mubr.msk.f32.mxu1 %vm945_vm1, %v912_v38  ;;  %6091 = vst [vmem:[#allocation6_spill] sm:$0xff] %v4739_v22 }
 0x113   :  { %v720_v42 = vmul.f32 %v3397_v36, %v4667_v8 }
 0x114   :  { %v3399_v13 = vpop.f32.mrf.mxu0 }
 0x115   :  { %v913_v44 = vsel %vm901_vm0, %v720_v42, %v4688_v31  ;;  %v3400_v45 = vadd.f32 %v3399_v13, %v3398_v39  ;;  %v4747_v15 = vpop.permute.xlu1 %661 }
 0x116   :  { %v3401_v46 = vpop.f32.mrf.mxu0  ;;  %3700 = vmatmul.mubr.msk.f32.vlgmr.msra.gmra.mxu1 %vm945_vm1, %v913_v44  ;;  %6092 = vst [vmem:[#allocation7_spill] sm:$0xff] %v4747_v15 }
 0x117   :  { %v721_v48 = vmul.f32 %v3400_v45, %v4671_v11 }
 0x118   :  { %v3402_v49 = vpop.f32.mrf.mxu0 }
 0x119   :  { %v914_v51 = vsel %vm901_vm0, %v721_v48, %v4697_v41  ;;  %v3403_v52 = vadd.f32 %v3402_v49, %v3401_v46  ;;  %v844_v41 = vpop.permute.xlu0 %843 }
 0x11a   :  { %v3404_v57 = vpop.f32.mrf.mxu0  ;;  %3702 = vmatprep.mubr.msk.f32.mxu1 %vm945_vm1, %v914_v51 }
 0x11b   :  { %v722_v61 = vmul.f32 %v3403_v52, %v4676_v18 }
 0x11c   :  { %v3405_v31 = vpop.f32.mrf.mxu0 }
 0x11d   :  { %v915_v1 = vsel %vm901_vm0, %v722_v61, %v832_v50  ;;  %v3406_v10 = vadd.f32 %v3405_v31, %v3404_v57  ;;  %v4753_v50 = vpop.permute.xlu1 %666  ;;  %v846_v7 = vpop.permute.xlu0 %845 }
 0x11e   :  { %v3407_v12 = vpop.f32.mrf.mxu0  ;;  %3703 = vmatmul.mubr.msk.f32.gmra.mxu1 %vm945_vm1, %v915_v1  ;;  %6093 = vst [vmem:[#allocation8_spill] sm:$0xff] %v4753_v50 }
 0x11f   :  { %v723_v16 = vmul.f32 %v3406_v10, %v4685_v28 }
 0x120   :  { %v3408_v3 = vpop.f32.mrf.mxu0 }
 0x121   :  { %v916_v17 = vsel %vm901_vm0, %v723_v16, %v834_v14  ;;  %v3409_v19 = vadd.f32 %v3408_v3, %v3407_v12  ;;  %v4760_v9 = vpop.permute.xlu1 %671 }
 0x122   :  { %v3410_v21 = vpop.f32.mrf.mxu0  ;;  %3705 = vmatprep.mubr.msk.f32.mxu1 %vm945_vm1, %v916_v17  ;;  %6094 = vst [vmem:[#allocation9_spill] sm:$0xff] %v4760_v9 }
 0x123   :  { %v724_v5 = vmul.f32 %v3409_v19, %v4693_v37 }
 0x124   :  { %v3411_v24 = vpop.f32.mrf.mxu0 }
 0x125   :  { %v917_v25 = vsel %vm901_vm0, %v724_v5, %v836_v23  ;;  %v3412_v26 = vadd.f32 %v3411_v24, %v3410_v21  ;;  %v848_v23 = vpop.permute.xlu0 %847 }
 0x126   :  { %v3413_v27 = vpop.f32.mrf.mxu0  ;;  %3706 = vmatmul.mubr.msk.f32.gmra.mxu1 %vm945_vm1, %v917_v25 }
 0x127   :  { %v725_v30 = vmul.f32 %v3412_v26, %v4702_v47 }
 0x128   :  { %v3414_v32 = vpop.f32.mrf.mxu0 }
 0x129   :  { %v918_v14 = vsel %vm901_vm0, %v725_v30, %v838_v34  ;;  %v3415_v33 = vadd.f32 %v3414_v32, %v3413_v27  ;;  %v4766_v34 = vpop.permute.xlu1 %676  ;;  %v850_v51 = vpop.permute.xlu0 %849 }
 0x12a   :  { %v3416_v35 = vpop.f32.mrf.mxu0  ;;  %3708 = vmatprep.mubr.msk.f32.mxu1 %vm945_vm1, %v918_v14  ;;  %6095 = vst [vmem:[#allocation10_spill] sm:$0xff] %v4766_v34 }
 0x12b   :  { %v726_v36 = vmul.f32 %v3415_v33, %v4708_v63 }
 0x12c   :  { %v3417_v38 = vpop.f32.mrf.mxu0 }
 0x12d   :  { %v919_v39 = vsel %vm901_vm0, %v726_v36, %v840_v43  ;;  %v3418_v42 = vadd.f32 %v3417_v38, %v3416_v35  ;;  %v4773_v1 = vpop.permute.xlu1 %681 }
 0x12e   :  { %v3419_v13 = vpop.f32.mrf.mxu0  ;;  %3709 = vmatmul.mubr.msk.f32.gmra.mxu1 %vm945_vm1, %v919_v39  ;;  %6096 = vst [vmem:[#allocation11_spill] sm:$0xff] %v4773_v1 }
 0x12f   :  { %v727_v44 = vmul.f32 %v3418_v42, %v4716_v20 }
 0x130   :  { %v3420_v45 = vpop.f32.mrf.mxu0 }
 0x131   :  { %v920_v46 = vsel %vm901_vm0, %v727_v44, %v842_v59  ;;  %v3421_v48 = vadd.f32 %v3420_v45, %v3419_v13  ;;  %v852_v59 = vpop.permute.xlu0 %851 }
 0x132   :  { %v3422_v49 = vpop.f32.mrf.mxu0  ;;  %3711 = vmatprep.mubr.msk.f32.mxu1 %vm945_vm1, %v920_v46 }
 0x133   :  { %v728_v52 = vmul.f32 %v3421_v48, %v4723_v29 }
 0x134   :  { %v3423_v57 = vpop.f32.mrf.mxu0 }
 0x135   :  { %v921_v43 = vsel %vm901_vm0, %v728_v52, %v844_v41  ;;  %v3424_v61 = vadd.f32 %v3423_v57, %v3422_v49  ;;  %v4779_v41 = vpop.permute.xlu1 %686  ;;  %v854_v26 = vpop.permute.xlu0 %853 }
 0x136   :  { %v3425_v31 = vpop.f32.mrf.mxu0  ;;  %3712 = vmatmul.mubr.msk.f32.gmra.mxu1 %vm945_vm1, %v921_v43  ;;  %6097 = vst [vmem:[#allocation12_spill] sm:$0xff] %v4779_v41 }
 0x137   :  { %v729_v10 = vmul.f32 %v3424_v61, %v4732_v40 }
 0x138   :  { %v3426_v12 = vpop.f32.mrf.mxu0 }
 0x139   :  { %v922_v16 = vsel %vm901_vm0, %v729_v10, %v846_v7  ;;  %v3427_v3 = vadd.f32 %v3426_v12, %v3425_v31  ;;  %v4786_v33 = vpop.permute.xlu1 %691  ;;  %v856_v38 = vpop.permute.xlu0 %855 }
 0x13a   :  { %v3428_v17 = vpop.f32.mrf.mxu0  ;;  %3714 = vmatprep.mubr.msk.f32.mxu1 %vm945_vm1, %v922_v16  ;;  %6098 = vst [vmem:[#allocation13_spill] sm:$0xff] %v4786_v33 }
 0x13b   :  { %v730_v19 = vmul.f32 %v3427_v3, %v4739_v22 }
 0x13c   :  { %v3429_v21 = vpop.f32.mrf.mxu0 }
 0x13d   :  { %v923_v5 = vsel %vm901_vm0, %v730_v19, %v848_v23  ;;  %v3430_v24 = vadd.f32 %v3429_v21, %v3428_v17  ;;  %v4792_v45 = vpop.permute.xlu1 %696 }
 0x13e   :  { %v3431_v25 = vpop.f32.mrf.mxu0  ;;  %3715 = vmatmul.mubr.msk.f32.gmra.mxu1 %vm945_vm1, %v923_v5  ;;  %6099 = vst [vmem:[#allocation14_spill] sm:$0xff] %v4792_v45 }
 0x13f   :  { %v731_v27 = vmul.f32 %v3430_v24, %v4747_v15 }
 0x140   :  { %v3432_v30 = vpop.f32.mrf.mxu0 }
 0x141   :  { %v924_v7 = vsel %vm901_vm0, %v731_v27, %v850_v51  ;;  %v3433_v32 = vadd.f32 %v3432_v30, %v3431_v25  ;;  %v858_v51 = vpop.permute.xlu0 %857  ;;  %v4799_v10 = vpop.permute.xlu1 %701 }
 0x142   :  { %v3434_v14 = vpop.f32.mrf.mxu0  ;;  %3717 = vmatprep.mubr.msk.f32.mxu1 %vm945_vm1, %v924_v7  ;;  %6100 = vst [vmem:[#allocation15_spill] sm:$0xff] %v4799_v10 }
 0x143   :  { %v732_v35 = vmul.f32 %v3433_v32, %v4753_v50 }
 0x144   :  { %v3435_v36 = vpop.f32.mrf.mxu0 }
 0x145   :  { %v925_v23 = vsel %vm901_vm0, %v732_v35, %v852_v59  ;;  %v3436_v39 = vadd.f32 %v3435_v36, %v3434_v14  ;;  %v860_v16 = vpop.permute.xlu0 %859  ;;  %v4805_v24 = vpop.permute.xlu1 %706 }
 0x146   :  { %v3437_v42 = vpop.f32.mrf.mxu0  ;;  %3718 = vmatmul.mubr.msk.f32.gmra.mxu1 %vm945_vm1, %v925_v23  ;;  %6101 = vst [vmem:[#allocation16_spill] sm:$0xff] %v4805_v24 }
 0x147   :  { %v733_v13 = vmul.f32 %v3436_v39, %v4760_v9 }
 0x148   :  { %v3438_v44 = vpop.f32.mrf.mxu0 }
 0x149   :  { %v926_v46 = vsel %vm901_vm0, %v733_v13, %v854_v26  ;;  %v3439_v48 = vadd.f32 %v3438_v44, %v3437_v42  ;;  %v862_v30 = vpop.permute.xlu0 %861 }
 0x14a   :  { %v3440_v49 = vpop.f32.mrf.mxu0  ;;  %3720 = vmatprep.mubr.msk.f32.mxu1 %vm945_vm1, %v926_v46 }
 0x14b   :  { %v734_v52 = vmul.f32 %v3439_v48, %v4766_v34 }
 0x14c   :  { %v3441_v57 = vpop.f32.mrf.mxu0 }
 0x14d   :  { %v927_v43 = vsel %vm901_vm0, %v734_v52, %v856_v38  ;;  %v3442_v61 = vadd.f32 %v3441_v57, %v3440_v49  ;;  %v864_v38 = vpop.permute.xlu1 %863  ;;  %v866_v46 = vpop.permute.xlu0 %865 }
 0x14e   :  { %v3443_v31 = vpop.f32.mrf.mxu0  ;;  %3721 = vmatmul.mubr.msk.f32.gmra.mxu1 %vm945_vm1, %v927_v43 }
 0x14f   :  { %v735_v12 = vmul.f32 %v3442_v61, %v4773_v1 }
 0x150   :  { %v3444_v59 = vpop.f32.mrf.mxu0 }
 0x151   :  { %v928_v3 = vsel %vm901_vm0, %v735_v12, %v858_v51  ;;  %v3445_v17 = vadd.f32 %v3444_v59, %v3443_v31  ;;  %v868_v57 = vpop.permute.xlu1 %867  ;;  %v4824_v31 = vld [vmem:[%s6066_s5] ss:$0 sm:$0xff] }
 0x152   :  { %v3446_v19 = vpop.f32.mrf.mxu0  ;;  %3723 = vmatprep.mubr.msk.f32.mxu1 %vm945_vm1, %v928_v3 }
 0x153   :  { %v736_v21 = vmul.f32 %v3445_v17, %v4779_v41 }
 0x154   :  { %v3447_v5 = vpop.f32.mrf.mxu0 }
 0x155   :  { %v929_v25 = vsel %vm901_vm0, %v736_v21, %v860_v16  ;;  %v3448_v26 = vadd.f32 %v3447_v5, %v3446_v19 }
 0x156   :  { %v3449_v27 = vpop.f32.mrf.mxu0  ;;  %3724 = vmatmul.mubr.msk.f32.gmra.mxu1 %vm945_vm1, %v929_v25 }
 0x157   :  { %v737_v7 = vmul.f32 %v3448_v26, %v4786_v33 }
 0x158   :  { %v3450_v32 = vpop.f32.mrf.mxu0 }
 0x159   :  { %v930_v14 = vsel %vm901_vm0, %v737_v7, %v862_v30  ;;  %v3451_v35 = vadd.f32 %v3450_v32, %v3449_v27 }
 0x15a   :  { %v3452_v36 = vpop.f32.mrf.mxu0  ;;  %3726 = vmatprep.mubr.msk.f32.mxu1 %vm945_vm1, %v930_v14 }
 0x15b   :  { %v738_v23 = vmul.f32 %v3451_v35, %v4792_v45 }
 0x15c   :  { %v3453_v39 = vpop.f32.mrf.mxu0 }
 0x15d   :  { %v931_v42 = vsel %vm901_vm0, %v738_v23, %v864_v38  ;;  %v3454_v13 = vadd.f32 %v3453_v39, %v3452_v36 }
 0x15e   :  { %v3455_v44 = vpop.f32.mrf.mxu0  ;;  %3727 = vmatmul.mubr.msk.f32.gmra.mxu1 %vm945_vm1, %v931_v42 }
 0x15f   :  { %v739_v48 = vmul.f32 %v3454_v13, %v4799_v10 }
 0x160   :  { %v3456_v49 = vpop.f32.mrf.mxu0 }
 0x161   :  { %v932_v51 = vsel %vm901_vm0, %v739_v48, %v866_v46  ;;  %v3457_v52 = vadd.f32 %v3456_v49, %v3455_v44 }
 0x162   :  { %3729 = vmatprep.mubr.msk.f32.mxu1 %vm945_vm1, %v932_v51 }
 0x163   :  { %v740_v43 = vmul.f32 %v3457_v52, %v4805_v24 }
 0x165   :  { %v933_v61 = vsel %vm901_vm0, %v740_v43, %v868_v57 }
 0x166   :  { %3730 = vmatmul.mubr.msk.f32.gmra.mxu1 %vm945_vm1, %v933_v61 }
 0x1ae   :  { %v3686_v12 = vpop.f32.mrf.mxu0 }
 0x1af   :  { %v4827_v59 = vadd.f32 %v3686_v12, %v4824_v31  ;;  %v1526_v12 = vld [vmem:[%s6067_s6 + $0x18] sm:$0xff] }
 0x1b0   :  { %v1108_v16 = vpop.f32.mrf.mxu0  ;;  %3732 = vmatprep.subr.mxu1 %v1526_v12 }
 0x1b1   :  { %v4830_v3 = vadd.f32 %v4824_v31, %v1108_v16  ;;  %v1268_v17 = vmul.f32 %v4827_v59, %v4827_v59  ;;  %3733 = vmatpush3.msra.mxu1 %v1526_v12 }
 0x1b3   :  { %v1302_v19 = vsel %vm945_vm1, %v1268_v17, 0.0  ;;  %v1267_v21 = vmul.f32 %v4830_v3, %v4830_v3 }
 0x1b4   :  { %1303 = vadd.xlane.f32.xlu1 %v1302_v19  ;;  %v1525_v19 = vld [vmem:[%s6067_s6 + $0x10] sm:$0xff] }
 0x1b5   :  { %v1299_v5 = vsel %vm945_vm1, %v1267_v21, 0.0  ;;  %3734 = vmatprep.subr.mxu1 %v1525_v19 }
 0x1b6   :  { %v3689_v25 = vpop.f32.mrf.mxu0  ;;  %1300 = vadd.xlane.f32.xlu0 %v1299_v5  ;;  %3735 = vmatpush3.msra.mxu1 %v1525_v19 }
 0x1b7   :  { %v4839_v27 = vadd.f32 %v3689_v25, %v4824_v31 }
 0x1b8   :  { %v1118_v26 = vpop.f32.mrf.mxu0 }
 0x1b9   :  { %v4842_v30 = vadd.f32 %v4824_v31, %v1118_v26  ;;  %v1270_v14 = vmul.f32 %v4839_v27, %v4839_v27 }
 0x1bb   :  { %v1269_v7 = vmul.f32 %v4842_v30, %v4842_v30  ;;  %v1308_v39 = vsel %vm945_vm1, %v1270_v14, 0.0 }
 0x1bd   :  { %v1305_v32 = vsel %vm945_vm1, %v1269_v7, 0.0  ;;  %v1524_v7 = vld [vmem:[%s6067_s6 + $0x8] sm:$0xff] }
 0x1be   :  { %v3692_v35 = vpop.f32.mrf.mxu0  ;;  %1306 = vadd.xlane.f32.xlu0 %v1305_v32  ;;  %3736 = vmatprep.subr.mxu1 %v1524_v7 }
 0x1bf   :  { %v4850_v36 = vadd.f32 %v3692_v35, %v4824_v31  ;;  %3737 = vmatpush3.msra.mxu1 %v1524_v7  ;;  %v1523_v35 = vld [vmem:[%s6067_s6] sm:$0xff] }
 0x1c0   :  { %v1128_v38 = vpop.f32.mrf.mxu0  ;;  %3738 = vmatprep.subr.mxu1 %v1523_v35 }
 0x1c1   :  { %v4853_v23 = vadd.f32 %v4824_v31, %v1128_v38  ;;  %v1272_v42 = vmul.f32 %v4850_v36, %v4850_v36  ;;  %3739 = vmatpush3.msra.mxu1 %v1523_v35 }
 0x1c2   :  { %1309 = vadd.xlane.f32.xlu0 %v1308_v39 }
 0x1c3   :  { %v1271_v13 = vmul.f32 %v4853_v23, %v4853_v23  ;;  %v1314_v46 = vsel %vm945_vm1, %v1272_v42, 0.0 }
 0x1c5   :  { %v1311_v44 = vsel %vm945_vm1, %v1271_v13, 0.0 }
 0x1c6   :  { %v3695_v48 = vpop.f32.mrf.mxu0  ;;  %1312 = vadd.xlane.f32.xlu1 %v1311_v44  ;;  %1315 = vadd.xlane.f32.xlu0 %v1314_v46 }
 0x1c7   :  { %v4863_v49 = vadd.f32 %v3695_v48, %v4824_v31 }
 0x1c8   :  { %v1138_v51 = vpop.f32.mrf.mxu0 }
 0x1c9   :  { %v4866_v52 = vadd.f32 %v4824_v31, %v1138_v51  ;;  %v1274_v57 = vmul.f32 %v4863_v49, %v4863_v49 }
 0x1cb   :  { %v1320_v43 = vsel %vm945_vm1, %v1274_v57, 0.0  ;;  %v1273_v61 = vmul.f32 %v4866_v52, %v4866_v52 }
 0x1cc   :  { %1321 = vadd.xlane.f32.xlu0 %v1320_v43 }
 0x1cd   :  { %v1317_v16 = vsel %vm945_vm1, %v1273_v61, 0.0 }
 0x1ce   :  { %v3698_v17 = vpop.f32.mrf.mxu0  ;;  %1318 = vadd.xlane.f32.xlu1 %v1317_v16 }
 0x1cf   :  { %v4881_v21 = vadd.f32 %v3698_v17, %v4824_v31 }
 0x1d0   :  { %v1148_v5 = vpop.f32.mrf.mxu0 }
 0x1d1   :  { %v4884_v25 = vadd.f32 %v4824_v31, %v1148_v5  ;;  %v1276_v26 = vmul.f32 %v4881_v21, %v4881_v21 }
 0x1d3   :  { %v1326_v32 = vsel %vm945_vm1, %v1276_v26, 0.0  ;;  %v1275_v14 = vmul.f32 %v4884_v25, %v4884_v25 }
 0x1d4   :  { %1327 = vadd.xlane.f32.xlu0 %v1326_v32 }
 0x1d5   :  { %v1323_v38 = vsel %vm945_vm1, %v1275_v14, 0.0 }
 0x1d6   :  { %v3701_v39 = vpop.f32.mrf.mxu1  ;;  %1324 = vadd.xlane.f32.xlu1 %v1323_v38 }
 0x1d7   :  { %v4899_v42 = vadd.f32 %v3701_v39, %v4824_v31 }
 0x1d8   :  { %v1158_v13 = vpop.f32.mrf.mxu1 }
 0x1d9   :  { %v4902_v44 = vadd.f32 %v4824_v31, %v1158_v13  ;;  %v1278_v46 = vmul.f32 %v4899_v42, %v4899_v42 }
 0x1db   :  { %v1332_v48 = vsel %vm945_vm1, %v1278_v46, 0.0  ;;  %v1277_v51 = vmul.f32 %v4902_v44, %v4902_v44 }
 0x1dc   :  { %1333 = vadd.xlane.f32.xlu0 %v1332_v48 }
 0x1dd   :  { %v1329_v57 = vsel %vm945_vm1, %v1277_v51, 0.0 }
 0x1de   :  { %v3704_v43 = vpop.f32.mrf.mxu1  ;;  %1330 = vadd.xlane.f32.xlu1 %v1329_v57 }
 0x1df   :  { %v4911_v61 = vadd.f32 %v3704_v43, %v4824_v31 }
 0x1e0   :  { %v1168_v12 = vpop.f32.mrf.mxu1 }
 0x1e1   :  { %v4914_v16 = vadd.f32 %v4824_v31, %v1168_v12  ;;  %v1280_v17 = vmul.f32 %v4911_v61, %v4911_v61 }
 0x1e3   :  { %v1338_v19 = vsel %vm945_vm1, %v1280_v17, 0.0  ;;  %v1279_v5 = vmul.f32 %v4914_v16, %v4914_v16 }
 0x1e4   :  { %1339 = vadd.xlane.f32.xlu0 %v1338_v19 }
 0x1e5   :  { %v1335_v26 = vsel %vm945_vm1, %v1279_v5, 0.0 }
 0x1e6   :  { %v3707_v7 = vpop.f32.mrf.mxu1  ;;  %1336 = vadd.xlane.f32.xlu1 %v1335_v26 }
 0x1e7   :  { %v4923_v32 = vadd.f32 %v3707_v7, %v4824_v31 }
 0x1e8   :  { %v1178_v14 = vpop.f32.mrf.mxu1 }
 0x1e9   :  { %v4926_v35 = vadd.f32 %v4824_v31, %v1178_v14  ;;  %v1282_v38 = vmul.f32 %v4923_v32, %v4923_v32 }
 0x1eb   :  { %v1344_v39 = vsel %vm945_vm1, %v1282_v38, 0.0  ;;  %v1281_v13 = vmul.f32 %v4926_v35, %v4926_v35 }
 0x1ec   :  { %1345 = vadd.xlane.f32.xlu0 %v1344_v39 }
 0x1ed   :  { %v1341_v46 = vsel %vm945_vm1, %v1281_v13, 0.0 }
 0x1ee   :  { %v3710_v48 = vpop.f32.mrf.mxu1  ;;  %1342 = vadd.xlane.f32.xlu1 %v1341_v46 }
 0x1ef   :  { %v4935_v51 = vadd.f32 %v3710_v48, %v4824_v31 }
 0x1f0   :  { %v1188_v57 = vpop.f32.mrf.mxu1 }
 0x1f1   :  { %v4938_v43 = vadd.f32 %v4824_v31, %v1188_v57  ;;  %v1284_v12 = vmul.f32 %v4935_v51, %v4935_v51 }
 0x1f3   :  { %v1350_v17 = vsel %vm945_vm1, %v1284_v12, 0.0  ;;  %v1283_v19 = vmul.f32 %v4938_v43, %v4938_v43 }
 0x1f4   :  { %1351 = vadd.xlane.f32.xlu0 %v1350_v17 }
 0x1f5   :  { %v1347_v5 = vsel %vm945_vm1, %v1283_v19, 0.0 }
 0x1f6   :  { %v3713_v26 = vpop.f32.mrf.mxu1  ;;  %1348 = vadd.xlane.f32.xlu1 %v1347_v5 }
 0x1f7   :  { %v4947_v7 = vadd.f32 %v3713_v26, %v4824_v31 }
 0x1f8   :  { %v1198_v14 = vpop.f32.mrf.mxu1 }
 0x1f9   :  { %v4950_v38 = vadd.f32 %v4824_v31, %v1198_v14  ;;  %v1286_v39 = vmul.f32 %v4947_v7, %v4947_v7 }
 0x1fb   :  { %v1356_v13 = vsel %vm945_vm1, %v1286_v39, 0.0  ;;  %v1285_v46 = vmul.f32 %v4950_v38, %v4950_v38 }
 0x1fc   :  { %1357 = vadd.xlane.f32.xlu0 %v1356_v13 }
 0x1fd   :  { %v1353_v48 = vsel %vm945_vm1, %v1285_v46, 0.0 }
 0x1fe   :  { %v3716_v57 = vpop.f32.mrf.mxu1  ;;  %1354 = vadd.xlane.f32.xlu1 %v1353_v48 }
 0x1ff   :  { %v4959_v12 = vadd.f32 %v3716_v57, %v4824_v31 }
 0x200   :  { %v1208_v17 = vpop.f32.mrf.mxu1 }
 0x201   :  { %v4962_v19 = vadd.f32 %v4824_v31, %v1208_v17  ;;  %v1288_v5 = vmul.f32 %v4959_v12, %v4959_v12 }
 0x203   :  { %v1362_v26 = vsel %vm945_vm1, %v1288_v5, 0.0  ;;  %v1287_v14 = vmul.f32 %v4962_v19, %v4962_v19 }
 0x204   :  { %1363 = vadd.xlane.f32.xlu0 %v1362_v26 }
 0x205   :  { %v1359_v39 = vsel %vm945_vm1, %v1287_v14, 0.0 }
 0x206   :  { %v3719_v13 = vpop.f32.mrf.mxu1  ;;  %1360 = vadd.xlane.f32.xlu1 %v1359_v39 }
 0x207   :  { %v4971_v46 = vadd.f32 %v3719_v13, %v4824_v31 }
 0x208   :  { %v1218_v48 = vpop.f32.mrf.mxu1 }
 0x209   :  { %v4974_v57 = vadd.f32 %v4824_v31, %v1218_v48  ;;  %v1290_v17 = vmul.f32 %v4971_v46, %v4971_v46 }
 0x20b   :  { %v1368_v5 = vsel %vm945_vm1, %v1290_v17, 0.0  ;;  %v1289_v24 = vmul.f32 %v4974_v57, %v4974_v57 }
 0x20c   :  { %1369 = vadd.xlane.f32.xlu0 %v1368_v5 }
 0x20d   :  { %v1365_v26 = vsel %vm945_vm1, %v1289_v24, 0.0 }
 0x20e   :  { %v3722_v14 = vpop.f32.mrf.mxu1  ;;  %1366 = vadd.xlane.f32.xlu1 %v1365_v26 }
 0x20f   :  { %v4983_v39 = vadd.f32 %v3722_v14, %v4824_v31 }
 0x210   :  { %v1228_v13 = vpop.f32.mrf.mxu1 }
 0x211   :  { %v4986_v48 = vadd.f32 %v4824_v31, %v1228_v13  ;;  %v1292_v10 = vmul.f32 %v4983_v39, %v4983_v39 }
 0x213   :  { %v1374_v17 = vsel %vm945_vm1, %v1292_v10, 0.0  ;;  %v1291_v45 = vmul.f32 %v4986_v48, %v4986_v48 }
 0x214   :  { %1375 = vadd.xlane.f32.xlu0 %v1374_v17 }
 0x215   :  { %v1371_v24 = vsel %vm945_vm1, %v1291_v45, 0.0 }
 0x216   :  { %v3725_v5 = vpop.f32.mrf.mxu1  ;;  %1372 = vadd.xlane.f32.xlu1 %v1371_v24 }
 0x217   :  { %v4995_v26 = vadd.f32 %v3725_v5, %v4824_v31 }
 0x218   :  { %v1238_v14 = vpop.f32.mrf.mxu1 }
 0x219   :  { %v4998_v13 = vadd.f32 %v4824_v31, %v1238_v14  ;;  %v1294_v33 = vmul.f32 %v4995_v26, %v4995_v26 }
 0x21b   :  { %v1380_v10 = vsel %vm945_vm1, %v1294_v33, 0.0  ;;  %v1293_v41 = vmul.f32 %v4998_v13, %v4998_v13 }
 0x21c   :  { %1381 = vadd.xlane.f32.xlu0 %v1380_v10 }
 0x21d   :  { %v1377_v45 = vsel %vm945_vm1, %v1293_v41, 0.0 }
 0x21e   :  { %v3728_v17 = vpop.f32.mrf.mxu1  ;;  %1378 = vadd.xlane.f32.xlu1 %v1377_v45 }
 0x21f   :  { %v5007_v24 = vadd.f32 %v3728_v17, %v4824_v31 }
 0x220   :  { %v1248_v5 = vpop.f32.mrf.mxu1 }
 0x221   :  { %v5010_v14 = vadd.f32 %v4824_v31, %v1248_v5  ;;  %v1296_v1 = vmul.f32 %v5007_v24, %v5007_v24 }
 0x223   :  { %v1386_v33 = vsel %vm945_vm1, %v1296_v1, 0.0  ;;  %v1295_v34 = vmul.f32 %v5010_v14, %v5010_v14 }
 0x224   :  { %1387 = vadd.xlane.f32.xlu0 %v1386_v33 }
 0x225   :  { %v1383_v41 = vsel %vm945_vm1, %v1295_v34, 0.0 }
 0x226   :  { %v3731_v10 = vpop.f32.mrf.mxu1  ;;  %1384 = vadd.xlane.f32.xlu1 %v1383_v41 }
 0x227   :  { %v5019_v45 = vadd.f32 %v3731_v10, %v4824_v31 }
 0x228   :  { %v1258_v17 = vpop.f32.mrf.mxu1 }
 0x229   :  { %v5022_v5 = vadd.f32 %v4824_v31, %v1258_v17  ;;  %v1298_v9 = vmul.f32 %v5019_v45, %v5019_v45 }
 0x22b   :  { %v1392_v1 = vsel %vm945_vm1, %v1298_v9, 0.0  ;;  %v1297_v50 = vmul.f32 %v5022_v5, %v5022_v5 }
 0x22c   :  { %1393 = vadd.xlane.f32.xlu0 %v1392_v1 }
 0x22d   :  { %v1389_v34 = vsel %vm945_vm1, %v1297_v50, 0.0 }
 0x22e   :  { %1390 = vadd.xlane.f32.xlu1 %v1389_v34 }
 0x23d   :  { %v1304_v33 = vpop.xlane.xlu1 %1303 }
 0x23e   :  { %v1396_v41 = vmax.f32 %v1304_v33, 1e-24 }
 0x23f   :  { %v1301_v10 = vpop.xlane.xlu0 %1300 }
 0x240   :  { %3917 = vrsqrt.f32 %v1396_v41  ;;  %v1395_v15 = vmax.f32 %v1301_v10, 1e-24 }
 0x242   :  { %3919 = vrsqrt.f32 %v1395_v15 }
 0x247   :  { %v1307_v31 = vpop.xlane.xlu0 %1306 }
 0x248   :  { %v1397_v17 = vmax.f32 %v1307_v31, 1e-24 }
 0x24a   :  { %3921 = vrsqrt.f32 %v1397_v17 }
 0x24b   :  { %v1310_v22 = vpop.xlane.xlu0 %1309 }
 0x24c   :  { %v1398_v40 = vmax.f32 %v1310_v22, 1e-24 }
 0x24d   :  { %v3918_v29 = vpop.eup %3917 }
 0x24e   :  { %3923 = vrsqrt.f32 %v1398_v40  ;;  %v1460_v20 = vmul.f32 %v3918_v29, %v4827_v59 }
 0x24f   :  { %v3920_v9 = vpop.eup %3919  ;;  %v1313_v1 = vpop.xlane.xlu1 %1312 }
 0x250   :  { %v1316_v63 = vpop.xlane.xlu0 %1315  ;;  %v1399_v50 = vmax.f32 %v1313_v1, 1e-24  ;;  %v1459_v33 = vmul.f32 %v3920_v9, %v4830_v3  ;;  %v1492_v10 = vmax.f32 %v1460_v20, 0.0 }
 0x251   :  { %v1400_v34 = vmax.f32 %v1316_v63, 1e-24 }
 0x252   :  { %3925 = vrsqrt.f32 %v1399_v50  ;;  %v1491_v41 = vmax.f32 %v1459_v33, 0.0 }
 0x253   :  { %3927 = vrsqrt.f32 %v1400_v34 }
 0x254   :  { %3740 = vmatprep.mubr.msk.f32.mxu1 %vm945_vm1, %v1491_v41 }
 0x255   :  { %3741 = vmatmul.mubr.msk.f32.vlgmr.msra.gmra.mxu1 %vm945_vm1, %v1492_v10  ;;  %v1322_v22 = vpop.xlane.xlu0 %1321 }
 0x256   :  { %v1402_v15 = vmax.f32 %v1322_v22, 1e-24 }
 0x257   :  { %v3922_v40 = vpop.eup %3921  ;;  %v1319_v31 = vpop.xlane.xlu1 %1318 }
 0x258   :  { %3929 = vrsqrt.f32 %v1402_v15  ;;  %v1401_v29 = vmax.f32 %v1319_v31, 1e-24  ;;  %v1461_v59 = vmul.f32 %v3922_v40, %v4842_v30 }
 0x25a   :  { %3931 = vrsqrt.f32 %v1401_v29  ;;  %v1493_v63 = vmax.f32 %v1461_v59, 0.0 }
 0x25b   :  { %v3924_v17 = vpop.eup %3923 }
 0x25c   :  { %3743 = vmatprep.mubr.msk.f32.mxu1 %vm945_vm1, %v1493_v63  ;;  %v1462_v20 = vmul.f32 %v3924_v17, %v4839_v27 }
 0x25d   :  { %v1328_v3 = vpop.xlane.xlu0 %1327 }
 0x25e   :  { %v1404_v9 = vmax.f32 %v1328_v3, 1e-24  ;;  %v1494_v1 = vmax.f32 %v1462_v20, 0.0 }
 0x25f   :  { %v3926_v50 = vpop.eup %3925  ;;  %v1325_v34 = vpop.xlane.xlu1 %1324 }
 0x260   :  { %v3928_v33 = vpop.eup %3927  ;;  %3933 = vrsqrt.f32 %v1404_v9  ;;  %v1403_v41 = vmax.f32 %v1325_v34, 1e-24  ;;  %3744 = vmatmul.mubr.msk.f32.gmra.mxu1 %vm945_vm1, %v1494_v1  ;;  %v1463_v10 = vmul.f32 %v3926_v50, %v4853_v23 }
 0x261   :  { %v1464_v30 = vmul.f32 %v3928_v33, %v4850_v36 }
 0x262   :  { %3935 = vrsqrt.f32 %v1403_v41  ;;  %v1495_v22 = vmax.f32 %v1463_v10, 0.0 }
 0x263   :  { %v1496_v15 = vmax.f32 %v1464_v30, 0.0 }
 0x264   :  { %3746 = vmatprep.mubr.msk.f32.mxu1 %vm945_vm1, %v1495_v22 }
 0x265   :  { %v3930_v27 = vpop.eup %3929  ;;  %3747 = vmatmul.mubr.msk.f32.gmra.mxu1 %vm945_vm1, %v1496_v15  ;;  %v1334_v40 = vpop.xlane.xlu0 %1333 }
 0x266   :  { %v1406_v31 = vmax.f32 %v1334_v40, 1e-24  ;;  %v1466_v63 = vmul.f32 %v3930_v27, %v4863_v49 }
 0x267   :  { %v3932_v29 = vpop.eup %3931  ;;  %v1331_v59 = vpop.xlane.xlu1 %1330 }
 0x268   :  { %3937 = vrsqrt.f32 %v1406_v31  ;;  %v1405_v17 = vmax.f32 %v1331_v59, 1e-24  ;;  %v1465_v23 = vmul.f32 %v3932_v29, %v4866_v52  ;;  %v1498_v20 = vmax.f32 %v1466_v63, 0.0 }
 0x26a   :  { %3939 = vrsqrt.f32 %v1405_v17  ;;  %v1497_v36 = vmax.f32 %v1465_v23, 0.0 }
 0x26c   :  { %3749 = vmatprep.mubr.msk.f32.mxu1 %vm945_vm1, %v1497_v36 }
 0x26d   :  { %v3934_v3 = vpop.eup %3933  ;;  %3750 = vmatmul.mubr.msk.f32.gmra.mxu1 %vm945_vm1, %v1498_v20  ;;  %v1340_v9 = vpop.xlane.xlu0 %1339 }
 0x26e   :  { %v1408_v1 = vmax.f32 %v1340_v9, 1e-24  ;;  %v1468_v33 = vmul.f32 %v3934_v3, %v4881_v21 }
 0x26f   :  { %v3936_v50 = vpop.eup %3935  ;;  %v1337_v34 = vpop.xlane.xlu1 %1336 }
 0x270   :  { %3941 = vrsqrt.f32 %v1408_v1  ;;  %v1407_v49 = vmax.f32 %v1337_v34, 1e-24  ;;  %v1467_v41 = vmul.f32 %v3936_v50, %v4884_v25  ;;  %v1500_v10 = vmax.f32 %v1468_v33, 0.0 }
 0x272   :  { %3943 = vrsqrt.f32 %v1407_v49  ;;  %v1499_v52 = vmax.f32 %v1467_v41, 0.0 }
 0x274   :  { %3752 = vmatprep.mubr.msk.f32.mxu1 %vm945_vm1, %v1499_v52 }
 0x275   :  { %v3938_v30 = vpop.eup %3937  ;;  %3753 = vmatmul.mubr.msk.f32.gmra.mxu1 %vm945_vm1, %v1500_v10  ;;  %v1346_v22 = vpop.xlane.xlu0 %1345 }
 0x276   :  { %v1410_v15 = vmax.f32 %v1346_v22, 1e-24  ;;  %v1470_v31 = vmul.f32 %v3938_v30, %v4899_v42 }
 0x277   :  { %v3940_v27 = vpop.eup %3939  ;;  %v1343_v40 = vpop.xlane.xlu1 %1342 }
 0x278   :  { %3945 = vrsqrt.f32 %v1410_v15  ;;  %v1409_v21 = vmax.f32 %v1343_v40, 1e-24  ;;  %v1469_v29 = vmul.f32 %v3940_v27, %v4902_v44  ;;  %v1502_v59 = vmax.f32 %v1470_v31, 0.0 }
 0x27a   :  { %3947 = vrsqrt.f32 %v1409_v21  ;;  %v1501_v25 = vmax.f32 %v1469_v29, 0.0 }
 0x27c   :  { %3755 = vmatprep.mubr.msk.f32.mxu1 %vm945_vm1, %v1501_v25 }
 0x27d   :  { %v3942_v63 = vpop.eup %3941  ;;  %3756 = vmatmul.mubr.msk.f32.gmra.mxu1 %vm945_vm1, %v1502_v59  ;;  %v1352_v17 = vpop.xlane.xlu0 %1351 }
 0x27e   :  { %v1412_v23 = vmax.f32 %v1352_v17, 1e-24  ;;  %v1472_v3 = vmul.f32 %v3942_v63, %v4911_v61 }
 0x27f   :  { %v3944_v36 = vpop.eup %3943  ;;  %v1349_v20 = vpop.xlane.xlu1 %1348 }
 0x280   :  { %3949 = vrsqrt.f32 %v1412_v23  ;;  %v1411_v42 = vmax.f32 %v1349_v20, 1e-24  ;;  %v1471_v9 = vmul.f32 %v3944_v36, %v4914_v16  ;;  %v1504_v1 = vmax.f32 %v1472_v3, 0.0 }
 0x282   :  { %3951 = vrsqrt.f32 %v1411_v42  ;;  %v1503_v44 = vmax.f32 %v1471_v9, 0.0 }
 0x284   :  { %3758 = vmatprep.mubr.msk.f32.mxu1 %vm945_vm1, %v1503_v44 }
 0x285   :  { %v3946_v50 = vpop.eup %3945  ;;  %3759 = vmatmul.mubr.msk.f32.gmra.mxu1 %vm945_vm1, %v1504_v1  ;;  %v1358_v34 = vpop.xlane.xlu0 %1357 }
 0x286   :  { %v1414_v33 = vmax.f32 %v1358_v34, 1e-24  ;;  %v1474_v52 = vmul.f32 %v3946_v50, %v4923_v32 }
 0x287   :  { %v3948_v49 = vpop.eup %3947  ;;  %v1355_v41 = vpop.xlane.xlu1 %1354 }
 0x288   :  { %3953 = vrsqrt.f32 %v1414_v33  ;;  %v1413_v61 = vmax.f32 %v1355_v41, 1e-24  ;;  %v1473_v10 = vmul.f32 %v3948_v49, %v4926_v35  ;;  %v1506_v30 = vmax.f32 %v1474_v52, 0.0 }
 0x28a   :  { %3955 = vrsqrt.f32 %v1413_v61  ;;  %v1505_v16 = vmax.f32 %v1473_v10, 0.0 }
 0x28c   :  { %3761 = vmatprep.mubr.msk.f32.mxu1 %vm945_vm1, %v1505_v16 }
 0x28d   :  { %v3950_v22 = vpop.eup %3949  ;;  %3762 = vmatmul.mubr.msk.f32.gmra.mxu1 %vm945_vm1, %v1506_v30  ;;  %v1364_v15 = vpop.xlane.xlu0 %1363 }
 0x28e   :  { %v1416_v27 = vmax.f32 %v1364_v15, 1e-24  ;;  %v1476_v21 = vmul.f32 %v3950_v22, %v4935_v51 }
 0x28f   :  { %v3952_v40 = vpop.eup %3951  ;;  %v1361_v31 = vpop.xlane.xlu1 %1360 }
 0x290   :  { %3957 = vrsqrt.f32 %v1416_v27  ;;  %v1415_v32 = vmax.f32 %v1361_v31, 1e-24  ;;  %v1475_v29 = vmul.f32 %v3952_v40, %v4938_v43  ;;  %v1508_v25 = vmax.f32 %v1476_v21, 0.0 }
 0x292   :  { %3959 = vrsqrt.f32 %v1415_v32  ;;  %v1507_v35 = vmax.f32 %v1475_v29, 0.0 }
 0x294   :  { %3764 = vmatprep.mubr.msk.f32.mxu1 %vm945_vm1, %v1507_v35 }
 0x295   :  { %v3954_v59 = vpop.eup %3953  ;;  %3765 = vmatmul.mubr.msk.f32.gmra.mxu1 %vm945_vm1, %v1508_v25  ;;  %v1370_v63 = vpop.xlane.xlu0 %1369 }
 0x296   :  { %v1418_v17 = vmax.f32 %v1370_v63, 1e-24  ;;  %v1478_v20 = vmul.f32 %v3954_v59, %v4947_v7 }
 0x297   :  { %v3956_v23 = vpop.eup %3955  ;;  %v1367_v36 = vpop.xlane.xlu1 %1366 }
 0x298   :  { %3961 = vrsqrt.f32 %v1418_v17  ;;  %v1417_v51 = vmax.f32 %v1367_v36, 1e-24  ;;  %v1477_v3 = vmul.f32 %v3956_v23, %v4950_v38  ;;  %v1510_v42 = vmax.f32 %v1478_v20, 0.0 }
 0x29a   :  { %3963 = vrsqrt.f32 %v1417_v51  ;;  %v1509_v43 = vmax.f32 %v1477_v3, 0.0 }
 0x29c   :  { %3767 = vmatprep.mubr.msk.f32.mxu1 %vm945_vm1, %v1509_v43 }
 0x29d   :  { %v3958_v9 = vpop.eup %3957  ;;  %3768 = vmatmul.mubr.msk.f32.gmra.mxu1 %vm945_vm1, %v1510_v42  ;;  %v1376_v44 = vpop.xlane.xlu0 %1375 }
 0x29e   :  { %v1420_v1 = vmax.f32 %v1376_v44, 1e-24  ;;  %v1480_v33 = vmul.f32 %v3958_v9, %v4959_v12 }
 0x29f   :  { %v3960_v50 = vpop.eup %3959  ;;  %v1373_v34 = vpop.xlane.xlu1 %1372 }
 0x2a0   :  { %3965 = vrsqrt.f32 %v1420_v1  ;;  %v1419_v7 = vmax.f32 %v1373_v34, 1e-24  ;;  %v1479_v49 = vmul.f32 %v3960_v50, %v4962_v19  ;;  %v1512_v41 = vmax.f32 %v1480_v33, 0.0 }
 0x2a2   :  { %3967 = vrsqrt.f32 %v1419_v7  ;;  %v1511_v38 = vmax.f32 %v1479_v49, 0.0 }
 0x2a4   :  { %3770 = vmatprep.mubr.msk.f32.mxu1 %vm945_vm1, %v1511_v38 }
 0x2a5   :  { %v3962_v52 = vpop.eup %3961  ;;  %3771 = vmatmul.mubr.msk.f32.gmra.mxu1 %vm945_vm1, %v1512_v41  ;;  %v1382_v61 = vpop.xlane.xlu0 %1381 }
 0x2a6   :  { %v1422_v10 = vmax.f32 %v1382_v61, 1e-24  ;;  %v1482_v22 = vmul.f32 %v3962_v52, %v4971_v46 }
 0x2a7   :  { %v3964_v16 = vpop.eup %3963  ;;  %v1379_v30 = vpop.xlane.xlu1 %1378 }
 0x2a8   :  { %3969 = vrsqrt.f32 %v1422_v10  ;;  %v1421_v12 = vmax.f32 %v1379_v30, 1e-24  ;;  %v1481_v15 = vmul.f32 %v3964_v16, %v4974_v57  ;;  %v1514_v27 = vmax.f32 %v1482_v22, 0.0 }
 0x2aa   :  { %3971 = vrsqrt.f32 %v1421_v12  ;;  %v1513_v19 = vmax.f32 %v1481_v15, 0.0 }
 0x2ac   :  { %3773 = vmatprep.mubr.msk.f32.mxu1 %vm945_vm1, %v1513_v19 }
 0x2ad   :  { %v3966_v40 = vpop.eup %3965  ;;  %3774 = vmatmul.mubr.msk.f32.gmra.mxu1 %vm945_vm1, %v1514_v27  ;;  %v1388_v31 = vpop.xlane.xlu0 %1387 }
 0x2ae   :  { %v1424_v21 = vmax.f32 %v1388_v31, 1e-24  ;;  %v1484_v35 = vmul.f32 %v3966_v40, %v4983_v39 }
 0x2af   :  { %v3968_v32 = vpop.eup %3967  ;;  %v1385_v29 = vpop.xlane.xlu1 %1384 }
 0x2b0   :  { %3973 = vrsqrt.f32 %v1424_v21  ;;  %v1423_v46 = vmax.f32 %v1385_v29, 1e-24  ;;  %v1483_v25 = vmul.f32 %v3968_v32, %v4986_v48  ;;  %v1516_v59 = vmax.f32 %v1484_v35, 0.0 }
 0x2b2   :  { %3975 = vrsqrt.f32 %v1423_v46  ;;  %v1515_v57 = vmax.f32 %v1483_v25, 0.0 }
 0x2b4   :  { %3776 = vmatprep.mubr.msk.f32.mxu1 %vm945_vm1, %v1515_v57 }
 0x2b5   :  { %v3970_v63 = vpop.eup %3969  ;;  %3777 = vmatmul.mubr.msk.f32.gmra.mxu1 %vm945_vm1, %v1516_v59  ;;  %v1394_v17 = vpop.xlane.xlu0 %1393 }
 0x2b6   :  { %v1426_v23 = vmax.f32 %v1394_v17, 1e-24  ;;  %v1486_v51 = vmul.f32 %v3970_v63, %v4995_v26 }
 0x2b7   :  { %v3972_v36 = vpop.eup %3971  ;;  %v1391_v20 = vpop.xlane.xlu1 %1390 }
 0x2b8   :  { %3977 = vrsqrt.f32 %v1426_v23  ;;  %v1425_v39 = vmax.f32 %v1391_v20, 1e-24  ;;  %v1485_v3 = vmul.f32 %v3972_v36, %v4998_v13  ;;  %v1518_v43 = vmax.f32 %v1486_v51, 0.0 }
 0x2ba   :  { %3979 = vrsqrt.f32 %v1425_v39  ;;  %v1517_v48 = vmax.f32 %v1485_v3, 0.0 }
 0x2bc   :  { %3779 = vmatprep.mubr.msk.f32.mxu1 %vm945_vm1, %v1517_v48 }
 0x2bd   :  { %v3974_v42 = vpop.eup %3973  ;;  %3780 = vmatmul.mubr.msk.f32.gmra.mxu1 %vm945_vm1, %v1518_v43 }
 0x2be   :  { %v1488_v44 = vmul.f32 %v3974_v42, %v5007_v24  ;;  %v4173_v24 = vld [vmem:[%s6063_s0 + $0x4] ss:$8 sps:$4 sm:$0xff]  }
 0x2bf   :  { %v3976_v9 = vpop.eup %3975 }
 0x2c0   :  { %v1487_v1 = vmul.f32 %v3976_v9, %v5010_v14  ;;  %v1520_v34 = vmax.f32 %v1488_v44, 0.0 }
 0x2c2   :  { %v1519_v50 = vmax.f32 %v1487_v1, 0.0 }
 0x2c4   :  { %3782 = vmatprep.mubr.msk.f32.mxu1 %vm945_vm1, %v1519_v50 }
 0x2c5   :  { %v3978_v26 = vpop.eup %3977  ;;  %3783 = vmatmul.mubr.msk.f32.gmra.mxu1 %vm945_vm1, %v1520_v34 }
 0x2c6   :  { %v1490_v33 = vmul.f32 %v3978_v26, %v5019_v45 }
 0x2c7   :  { %v3980_v13 = vpop.eup %3979 }
 0x2c8   :  { %v1489_v7 = vmul.f32 %v3980_v13, %v5022_v5  ;;  %v1522_v38 = vmax.f32 %v1490_v33, 0.0 }
 0x2ca   :  { %v1521_v49 = vmax.f32 %v1489_v7, 0.0 }
 0x2cc   :  { %3785 = vmatprep.mubr.msk.f32.mxu1 %vm945_vm1, %v1521_v49 }
 0x2cd   :  { %3786 = vmatmul.mubr.msk.f32.gmra.mxu1 %vm945_vm1, %v1522_v38 }
 0x2ce   :  { %1896 = vmatprep.mubr.bf16.mxu1 %v4173_v24 }
 0x315   :  { %v5097_v14 = vpop.f32.mrf.mxu1 }
 0x316   :  { %2091 = vrot.lane.b32.xlu0 %v5097_v14, %s4207_s27 }
 0x317   :  { %v5101_v45 = vpop.f32.mrf.mxu1 }
 0x318   :  { %v1848_v5 = vpack.c.bf16 %v5097_v14, %v5101_v45  ;;  %2089 = vrot.lane.b32.xlu1 %v5101_v45, %s4207_s27  ;;  %v4177_v14 = vld [vmem:[%s6063_s0 + $0x24] ss:$8 sps:$4 sm:$0xff]   ;;  %v4178_v45 = vld [vmem:[%s6063_s0 + $0x20] ss:$8 sps:$4 sm:$0xff]  }
 0x320   :  { %v5107_v41 = vpop.f32.mrf.mxu1 }
 0x321   :  { %2095 = vrot.lane.b32.xlu1 %v5107_v41, %s4207_s27 }
 0x322   :  { %v5111_v52 = vpop.f32.mrf.mxu1 }
 0x323   :  { %v1849_v61 = vpack.c.bf16 %v5107_v41, %v5111_v52  ;;  %v4176_v41 = vld [vmem:[%s6063_s0 + $0x10] ss:$8 sps:$4 sm:$0xff]  }
 0x325   :  { %2093 = vrot.lane.b32.xlu1 %v5111_v52, %s4207_s27  ;;  %v5117_v10 = vpop.f32.mrf.mxu1  ;;  %v4180_v52 = vld [vmem:[%s6063_s0 + $0x30] ss:$8 sps:$4 sm:$0xff]  }
 0x327   :  { %v5119_v16 = vpop.f32.mrf.mxu1 }
 0x328   :  { %v1850_v30 = vpack.c.bf16 %v5117_v10, %v5119_v16  ;;  %2097 = vrot.lane.b32.xlu0 %v5119_v16, %s4207_s27  ;;  %v4182_v16 = vld [vmem:[%s6063_s0 + $0x40] ss:$8 sps:$4 sm:$0xff]  }
 0x329   :  { %2099 = vrot.lane.b32.xlu1 %v5117_v10, %s4207_s27  ;;  %v4175_v10 = vld [vmem:[%s6063_s0 + $0x14] ss:$8 sps:$4 sm:$0xff]  }
 0x32d   :  { %v5127_v22 = vpop.f32.mrf.mxu1 }
 0x32e   :  { %2103 = vrot.lane.b32.xlu1 %v5127_v22, %s4207_s27 }
 0x32f   :  { %v5131_v12 = vpop.f32.mrf.mxu1 }
 0x330   :  { %v1851_v15 = vpack.c.bf16 %v5127_v22, %v5131_v12  ;;  %2101 = vrot.lane.b32.xlu0 %v5131_v12, %s4207_s27  ;;  %v4174_v22 = vld [vmem:[%s6063_s0] ss:$8 sps:$4 sm:$0xff]   ;;  %v4184_v12 = vld [vmem:[%s6063_s0 + $0x50] ss:$8 sps:$4 sm:$0xff]  }
 0x335   :  { %v5137_v19 = vpop.f32.mrf.mxu1 }
 0x336   :  { %2107 = vrot.lane.b32.xlu1 %v5137_v19, %s4207_s27 }
 0x337   :  { %v5141_v27 = vpop.f32.mrf.mxu1 }
 0x338   :  { %v1852_v40 = vpack.c.bf16 %v5137_v19, %v5141_v27  ;;  %2105 = vrot.lane.b32.xlu0 %v5141_v27, %s4207_s27  ;;  %v4186_v19 = vld [vmem:[%s6063_s0 + $0x60] ss:$8 sps:$4 sm:$0xff]   ;;  %v4187_v27 = vld [vmem:[%s6063_s0 + $0x74] ss:$8 sps:$4 sm:$0xff]  }
 0x33d   :  { %v3757_v31 = vpop.f32.mrf.mxu1 }
 0x33e   :  { %2111 = vrot.lane.b32.xlu1 %v3757_v31, %s4207_s27 }
 0x33f   :  { %v1739_v21 = vpop.f32.mrf.mxu1 }
 0x340   :  { %v1853_v32 = vpack.c.bf16 %v3757_v31, %v1739_v21  ;;  %2109 = vrot.lane.b32.xlu0 %v1739_v21, %s4207_s27  ;;  %v4189_v21 = vld [vmem:[%s6063_s0 + $0x84] ss:$8 sps:$4 sm:$0xff]  }
 0x345   :  { %v3760_v29 = vpop.f32.mrf.mxu1 }
 0x346   :  { %2115 = vrot.lane.b32.xlu1 %v3760_v29, %s4207_s27 }
 0x347   :  { %v1749_v35 = vpop.f32.mrf.mxu1 }
 0x348   :  { %v1854_v46 = vpack.c.bf16 %v3760_v29, %v1749_v35  ;;  %2113 = vrot.lane.b32.xlu0 %v1749_v35, %s4207_s27  ;;  %v4191_v29 = vld [vmem:[%s6063_s0 + $0x94] ss:$8 sps:$4 sm:$0xff]   ;;  %v4192_v35 = vld [vmem:[%s6063_s0 + $0x90] ss:$8 sps:$4 sm:$0xff]  }
 0x34d   :  { %v3763_v25 = vpop.f32.mrf.mxu1 }
 0x34e   :  { %2119 = vrot.lane.b32.xlu1 %v3763_v25, %s4207_s27 }
 0x34f   :  { %v1759_v57 = vpop.f32.mrf.mxu1 }
 0x350   :  { %v1855_v59 = vpack.c.bf16 %v3763_v25, %v1759_v57  ;;  %2117 = vrot.lane.b32.xlu0 %v1759_v57, %s4207_s27  ;;  %v4194_v25 = vld [vmem:[%s6063_s0 + $0xa0] ss:$8 sps:$4 sm:$0xff]   ;;  %v4195_v57 = vld [vmem:[%s6063_s0 + $0xb4] ss:$8 sps:$4 sm:$0xff]  }
 0x355   :  { %v3766_v63 = vpop.f32.mrf.mxu1 }
 0x356   :  { %2123 = vrot.lane.b32.xlu1 %v3766_v63, %s4207_s27 }
 0x357   :  { %v1769_v17 = vpop.f32.mrf.mxu1 }
 0x358   :  { %v1856_v23 = vpack.c.bf16 %v3766_v63, %v1769_v17  ;;  %2121 = vrot.lane.b32.xlu0 %v1769_v17, %s4207_s27  ;;  %v4197_v63 = vld [vmem:[%s6063_s0 + $0xc4] ss:$8 sps:$4 sm:$0xff]   ;;  %v4198_v17 = vld [vmem:[%s6063_s0 + $0xc0] ss:$8 sps:$4 sm:$0xff]  }
 0x35d   :  { %v3769_v36 = vpop.f32.mrf.mxu1 }
 0x35e   :  { %2127 = vrot.lane.b32.xlu1 %v3769_v36, %s4207_s27 }
 0x35f   :  { %v1779_v20 = vpop.f32.mrf.mxu1 }
 0x360   :  { %v1857_v51 = vpack.c.bf16 %v3769_v36, %v1779_v20  ;;  %2125 = vrot.lane.b32.xlu0 %v1779_v20, %s4207_s27  ;;  %v4200_v36 = vld [vmem:[%s6063_s0 + $0xd0] ss:$8 sps:$4 sm:$0xff]   ;;  %v4201_v20 = vld [vmem:[%s6063_s0 + $0xe4] ss:$8 sps:$4 sm:$0xff]  }
 0x365   :  { %v3772_v39 = vpop.f32.mrf.mxu1 }
 0x366   :  { %2131 = vrot.lane.b32.xlu1 %v3772_v39, %s4207_s27 }
 0x367   :  { %v1789_v3 = vpop.f32.mrf.mxu1 }
 0x368   :  { %2129 = vrot.lane.b32.xlu0 %v1789_v3, %s4207_s27  ;;  %v1858_v31 = vpack.c.bf16 %v3772_v39, %v1789_v3  ;;  %v4203_v39 = vld [vmem:[%s6063_s0 + $0xf4] ss:$8 sps:$4 sm:$0xff]   ;;  %v4204_v3 = vld [vmem:[%s6063_s0 + $0xf0] ss:$8 sps:$4 sm:$0xff]  }
 0x36d   :  { %v3775_v48 = vpop.f32.mrf.mxu1 }
 0x36e   :  { %2135 = vrot.lane.b32.xlu1 %v3775_v48, %s4207_s27 }
 0x36f   :  { %v1799_v43 = vpop.f32.mrf.mxu1 }
 0x370   :  { %2133 = vrot.lane.b32.xlu0 %v1799_v43, %s4207_s27  ;;  %v1859_v24 = vpack.c.bf16 %v3775_v48, %v1799_v43 }
 0x375   :  { %v3778_v42 = vpop.f32.mrf.mxu1 }
 0x376   :  { %2139 = vrot.lane.b32.xlu1 %v3778_v42, %s4207_s27 }
 0x377   :  { %v1809_v9 = vpop.f32.mrf.mxu1 }
 0x378   :  { %2137 = vrot.lane.b32.xlu0 %v1809_v9, %s4207_s27  ;;  %v1860_v38 = vpack.c.bf16 %v3778_v42, %v1809_v9 }
 0x37d   :  { %v3781_v44 = vpop.f32.mrf.mxu1 }
 0x37e   :  { %2143 = vrot.lane.b32.xlu1 %v3781_v44, %s4207_s27 }
 0x37f   :  { %v1819_v1 = vpop.f32.mrf.mxu1 }
 0x380   :  { %2141 = vrot.lane.b32.xlu0 %v1819_v1, %s4207_s27  ;;  %v1861_v49 = vpack.c.bf16 %v3781_v44, %v1819_v1 }
 0x385   :  { %v3784_v50 = vpop.f32.mrf.mxu1 }
 0x386   :  { %2147 = vrot.lane.b32.xlu1 %v3784_v50, %s4207_s27 }
 0x387   :  { %v1829_v34 = vpop.f32.mrf.mxu1 }
 0x388   :  { %2145 = vrot.lane.b32.xlu0 %v1829_v34, %s4207_s27  ;;  %v1862_v7 = vpack.c.bf16 %v3784_v50, %v1829_v34  ;;  %v5281_v34 = vld [vmem:[%s6068_s7] ss:$0 sm:$0xff] }
 0x38a   :  { %v2090_v9 = vpop.permute.xlu1 %2089 }
 0x38d   :  { %v3787_v26 = vpop.f32.mrf.mxu1 }
 0x38e   :  { %2151 = vrot.lane.b32.xlu1 %v3787_v26, %s4207_s27 }
 0x38f   :  { %v1839_v13 = vpop.f32.mrf.mxu1 }
 0x390   :  { %v1863_v33 = vpack.c.bf16 %v3787_v26, %v1839_v13  ;;  %2149 = vrot.lane.b32.xlu0 %v1839_v13, %s4207_s27 }
 0x392   :  { %3530 = vmatprep.subr.bf16.mxu1 %v1863_v33 }
 0x393   :  { %3531 = vmatpush3.bf16.msra.mxu1 %v1855_v59  ;;  %v4196_v59 = vld [vmem:[%s6063_s0 + $0xb0] ss:$8 sps:$4 sm:$0xff]   ;;  %v2096_v33 = vpop.permute.xlu1 %2095 }
 0x394   :  { %3532 = vmatprep.subr.bf16.mxu1 %v1862_v7 }
 0x397   :  { %3533 = vmatpush3.bf16.msra.mxu1 %v1854_v46  ;;  %v4193_v46 = vld [vmem:[%s6063_s0 + $0xa4] ss:$8 sps:$4 sm:$0xff]  }
 0x398   :  { %3534 = vmatprep.subr.bf16.mxu1 %v1861_v49 }
 0x39b   :  { %3535 = vmatpush3.bf16.msra.mxu1 %v1853_v32  ;;  %v4190_v32 = vld [vmem:[%s6063_s0 + $0x80] ss:$8 sps:$4 sm:$0xff]  }
 0x39c   :  { %3536 = vmatprep.subr.bf16.mxu1 %v1860_v38 }
 0x39f   :  { %3537 = vmatpush3.bf16.msra.mxu1 %v1852_v40  ;;  %v4188_v40 = vld [vmem:[%s6063_s0 + $0x70] ss:$8 sps:$4 sm:$0xff]  }
 0x3a0   :  { %3538 = vmatprep.subr.bf16.mxu1 %v1859_v24  ;;  %v2092_v24 = vpop.permute.xlu0 %2091 }
 0x3a3   :  { %3539 = vmatpush3.bf16.msra.mxu1 %v1851_v15  ;;  %v4185_v15 = vld [vmem:[%s6063_s0 + $0x64] ss:$8 sps:$4 sm:$0xff]  }
 0x3a4   :  { %3540 = vmatprep.subr.bf16.mxu1 %v1858_v31 }
 0x3a7   :  { %3541 = vmatpush3.bf16.msra.mxu1 %v1850_v30  ;;  %v4183_v30 = vld [vmem:[%s6063_s0 + $0x54] ss:$8 sps:$4 sm:$0xff]  }
 0x3a8   :  { %3542 = vmatprep.subr.bf16.mxu1 %v1857_v51  ;;  %v4202_v51 = vld [vmem:[%s6063_s0 + $0xe0] ss:$8 sps:$4 sm:$0xff]  }
 0x3ab   :  { %3543 = vmatpush3.bf16.msra.mxu1 %v1849_v61  ;;  %v4181_v61 = vld [vmem:[%s6063_s0 + $0x44] ss:$8 sps:$4 sm:$0xff]  }
 0x3ac   :  { %3544 = vmatprep.subr.bf16.mxu1 %v1856_v23  ;;  %v4199_v23 = vld [vmem:[%s6063_s0 + $0xd4] ss:$8 sps:$4 sm:$0xff]  }
 0x3af   :  { %3545 = vmatpush3.bf16.msra.mxu1 %v1848_v5  ;;  %v4179_v5 = vld [vmem:[%s6063_s0 + $0x34] ss:$8 sps:$4 sm:$0xff]  }
 0x3b2   :  { %1897 = vmatmul.mubr.bf16.vlgmr.msra.gmra.mxu1 %v4174_v22 }
 0x3b3   :  { %1904 = vmatprep.mubr.bf16.mxu1 %v4175_v10 }
 0x3ba   :  { %1905 = vmatmul.mubr.bf16.gmra.mxu1 %v4176_v41 }
 0x3bb   :  { %1912 = vmatprep.mubr.bf16.mxu1 %v4177_v14 }
 0x3c2   :  { %1913 = vmatmul.mubr.bf16.gmra.mxu1 %v4178_v45 }
 0x3c3   :  { %1920 = vmatprep.mubr.bf16.mxu1 %v4179_v5 }
 0x3ca   :  { %1921 = vmatmul.mubr.bf16.gmra.mxu1 %v4180_v52  ;;  %v2094_v52 = vpop.permute.xlu1 %2093 }
 0x3cb   :  { %1928 = vmatprep.mubr.bf16.mxu1 %v4181_v61 }
 0x3d2   :  { %1929 = vmatmul.mubr.bf16.gmra.mxu1 %v4182_v16 }
 0x3d3   :  { %1936 = vmatprep.mubr.bf16.mxu1 %v4183_v30 }
 0x3da   :  { %1937 = vmatmul.mubr.bf16.gmra.mxu1 %v4184_v12 }
 0x3db   :  { %1944 = vmatprep.mubr.bf16.mxu1 %v4185_v15 }
 0x3e2   :  { %1945 = vmatmul.mubr.bf16.gmra.mxu1 %v4186_v19 }
 0x3e3   :  { %1952 = vmatprep.mubr.bf16.mxu1 %v4187_v27 }
 0x3ea   :  { %1953 = vmatmul.mubr.bf16.gmra.mxu1 %v4188_v40 }
 0x3eb   :  { %1960 = vmatprep.mubr.bf16.mxu1 %v4189_v21 }
 0x3f2   :  { %1961 = vmatmul.mubr.bf16.gmra.mxu1 %v4190_v32 }
 0x3f3   :  { %1968 = vmatprep.mubr.bf16.mxu1 %v4191_v29 }
 0x3fa   :  { %1969 = vmatmul.mubr.bf16.gmra.mxu1 %v4192_v35 }
 0x3fb   :  { %1976 = vmatprep.mubr.bf16.mxu1 %v4193_v46 }
 0x402   :  { %1977 = vmatmul.mubr.bf16.gmra.mxu1 %v4194_v25 }
 0x403   :  { %1984 = vmatprep.mubr.bf16.mxu1 %v4195_v57 }
 0x40a   :  { %1985 = vmatmul.mubr.bf16.gmra.mxu1 %v4196_v59 }
 0x40b   :  { %1992 = vmatprep.mubr.bf16.mxu1 %v4197_v63 }
 0x412   :  { %1993 = vmatmul.mubr.bf16.gmra.mxu1 %v4198_v17 }
 0x413   :  { %2000 = vmatprep.mubr.bf16.mxu1 %v4199_v23 }
 0x41a   :  { %2001 = vmatmul.mubr.bf16.gmra.mxu1 %v4200_v36 }
 0x41b   :  { %2008 = vmatprep.mubr.bf16.mxu1 %v4201_v20 }
 0x422   :  { %2009 = vmatmul.mubr.bf16.gmra.mxu1 %v4202_v51  ;;  %v2100_v51 = vpop.permute.xlu1 %2099 }
 0x423   :  { %2016 = vmatprep.mubr.bf16.mxu1 %v4203_v39 }
 0x42a   :  { %2017 = vmatmul.mubr.bf16.gmra.mxu1 %v4204_v3 }
 0x472   :  { %v3546_v48 = vpop.f32.mrf.mxu1 }
 0x474   :  { %v3547_v43 = vpop.f32.mrf.mxu1 }
 0x475   :  { %v3548_v42 = vadd.f32 %v3547_v43, %v3546_v48 }
 0x476   :  { %v3549_v44 = vpop.f32.mrf.mxu1 }
 0x477   :  { %v2025_v1 = vmul.f32 %v3548_v42, %v4643_v53 }
 0x478   :  { %v3550_v50 = vpop.f32.mrf.mxu1 }
 0x479   :  { %v2185_v26 = vadd.f32 %v2090_v9, %v2025_v1  ;;  %v3551_v13 = vadd.f32 %v3550_v50, %v3549_v44 }
 0x47a   :  { %v3552_v7 = vpop.f32.mrf.mxu1 }
 0x47b   :  { %v2026_v49 = vmul.f32 %v3551_v13, %v4647_v55  ;;  %v5285_v38 = vadd.f32 %v5281_v34, %v2185_v26 }
 0x47c   :  { %v3553_v31 = vpop.f32.mrf.mxu1 }
 0x47d   :  { %v2186_v22 = vadd.f32 %v2092_v24, %v2026_v49  ;;  %v3554_v10 = vadd.f32 %v3553_v31, %v3552_v7  ;;  %v2256_v53 = vmul.f32 %v5285_v38, %v5285_v38  ;;  %v2104_v31 = vpop.permute.xlu1 %2103 }
 0x47e   :  { %v3555_v41 = vpop.f32.mrf.mxu1 }
 0x47f   :  { %v2027_v14 = vmul.f32 %v3554_v10, %v4645_v54  ;;  %v2288_v45 = vsel %vm901_vm0, %v2256_v53, 0.0  ;;  %v5292_v5 = vadd.f32 %v5281_v34, %v2186_v22 }
 0x480   :  { %v3556_v55 = vpop.f32.mrf.mxu1  ;;  %2289 = vadd.xlane.f32.xlu0 %v2288_v45 }
 0x481   :  { %v2187_v61 = vadd.f32 %v2094_v52, %v2027_v14  ;;  %v3557_v16 = vadd.f32 %v3556_v55, %v3555_v41  ;;  %v2257_v30 = vmul.f32 %v5292_v5, %v5292_v5 }
 0x482   :  { %v3558_v12 = vpop.f32.mrf.mxu1 }
 0x483   :  { %v2028_v15 = vmul.f32 %v3557_v16, %v4649_v56  ;;  %v2291_v19 = vsel %vm901_vm0, %v2257_v30, 0.0  ;;  %v5299_v54 = vadd.f32 %v5281_v34, %v2187_v61  ;;  %v2098_v56 = vpop.permute.xlu0 %2097 }
 0x484   :  { %v3559_v27 = vpop.f32.mrf.mxu1  ;;  %2292 = vadd.xlane.f32.xlu1 %v2291_v19 }
 0x485   :  { %v2188_v40 = vadd.f32 %v2096_v33, %v2028_v15  ;;  %v3560_v21 = vadd.f32 %v3559_v27, %v3558_v12  ;;  %v2258_v32 = vmul.f32 %v5299_v54, %v5299_v54 }
 0x486   :  { %v3561_v29 = vpop.f32.mrf.mxu1 }
 0x487   :  { %v2029_v35 = vmul.f32 %v3560_v21, %v4651_v58  ;;  %v2294_v46 = vsel %vm901_vm0, %v2258_v32, 0.0  ;;  %v5306_v25 = vadd.f32 %v5281_v34, %v2188_v40  ;;  %v2102_v1 = vpop.permute.xlu0 %2101  ;;  %v2108_v40 = vpop.permute.xlu1 %2107  ;;  %v2481_v32 = vld [vmem:[%s6069_s8 + $0x8] sm:$0xff] }
 0x488   :  { %v3562_v57 = vpop.f32.mrf.mxu1  ;;  %2295 = vadd.xlane.f32.xlu0 %v2294_v46  ;;  %3788 = vmatprep.subr.mxu0 %v2481_v32 }
 0x489   :  { %v2189_v59 = vadd.f32 %v2098_v56, %v2029_v35  ;;  %v3563_v63 = vadd.f32 %v3562_v57, %v3561_v29  ;;  %v2259_v17 = vmul.f32 %v5306_v25, %v5306_v25  ;;  %3789 = vmatpush3.msra.mxu0 %v2481_v32 }
 0x48a   :  { %v3564_v23 = vpop.f32.mrf.mxu1 }
 0x48b   :  { %v2030_v36 = vmul.f32 %v3563_v63, %v4653_v60  ;;  %v2297_v20 = vsel %vm901_vm0, %v2259_v17, 0.0  ;;  %v5313_v58 = vadd.f32 %v5281_v34, %v2189_v59  ;;  %v2106_v55 = vpop.permute.xlu0 %2105 }
 0x48c   :  { %v3565_v39 = vpop.f32.mrf.mxu1  ;;  %2298 = vadd.xlane.f32.xlu0 %v2297_v20 }
 0x48d   :  { %v2190_v3 = vadd.f32 %v2100_v51, %v2030_v36  ;;  %v3566_v48 = vadd.f32 %v3565_v39, %v3564_v23  ;;  %v2260_v43 = vmul.f32 %v5313_v58, %v5313_v58 }
 0x48e   :  { %v3567_v42 = vpop.f32.mrf.mxu1 }
 0x48f   :  { %v2031_v9 = vmul.f32 %v3566_v48, %v4655_v62  ;;  %v2300_v44 = vsel %vm901_vm0, %v2260_v43, 0.0  ;;  %v5320_v60 = vadd.f32 %v5281_v34, %v2190_v3  ;;  %v2110_v17 = vpop.permute.xlu0 %2109  ;;  %v2112_v43 = vpop.permute.xlu1 %2111 }
 0x490   :  { %v3568_v50 = vpop.f32.mrf.mxu1  ;;  %2301 = vadd.xlane.f32.xlu1 %v2300_v44 }
 0x491   :  { %v2191_v26 = vadd.f32 %v2102_v1, %v2031_v9  ;;  %v3569_v13 = vadd.f32 %v3568_v50, %v3567_v42  ;;  %v2261_v33 = vmul.f32 %v5320_v60, %v5320_v60 }
 0x492   :  { %v3570_v7 = vpop.f32.mrf.mxu1 }
 0x493   :  { %v2032_v49 = vmul.f32 %v3569_v13, %v4657_v0  ;;  %v2303_v24 = vsel %vm901_vm0, %v2261_v33, 0.0  ;;  %v5327_v62 = vadd.f32 %v5281_v34, %v2191_v26  ;;  %v2114_v33 = vpop.permute.xlu0 %2113 }
 0x494   :  { %v3571_v22 = vpop.f32.mrf.mxu1  ;;  %2304 = vadd.xlane.f32.xlu0 %v2303_v24 }
 0x495   :  { %v2192_v10 = vadd.f32 %v2104_v31, %v2032_v49  ;;  %v3572_v53 = vadd.f32 %v3571_v22, %v3570_v7  ;;  %v2262_v41 = vmul.f32 %v5327_v62, %v5327_v62 }
 0x496   :  { %v3573_v14 = vpop.f32.mrf.mxu1 }
 0x497   :  { %v2033_v45 = vmul.f32 %v3572_v53, %v4659_v2  ;;  %v2306_v52 = vsel %vm901_vm0, %v2262_v41, 0.0  ;;  %v5334_v0 = vadd.f32 %v5281_v34, %v2192_v10  ;;  %v2116_v41 = vpop.permute.xlu1 %2115 }
 0x498   :  { %v3574_v61 = vpop.f32.mrf.mxu1  ;;  %2307 = vadd.xlane.f32.xlu1 %v2306_v52 }
 0x499   :  { %v2193_v16 = vadd.f32 %v2106_v55, %v2033_v45  ;;  %v3575_v30 = vadd.f32 %v3574_v61, %v3573_v14  ;;  %v2263_v12 = vmul.f32 %v5334_v0, %v5334_v0 }
 0x49a   :  { %v3576_v15 = vpop.f32.mrf.mxu1 }
 0x49b   :  { %v2034_v19 = vmul.f32 %v3575_v30, %v4661_v4  ;;  %v2309_v27 = vsel %vm901_vm0, %v2263_v12, 0.0  ;;  %v5341_v2 = vadd.f32 %v5281_v34, %v2193_v16  ;;  %v2480_v4 = vld [vmem:[%s6069_s8] sm:$0xff]  ;;  %v2118_v12 = vpop.permute.xlu0 %2117 }
 0x49c   :  { %v3577_v21 = vpop.f32.mrf.mxu1  ;;  %2310 = vadd.xlane.f32.xlu0 %v2309_v27  ;;  %3790 = vmatprep.subr.mxu0 %v2480_v4 }
 0x49d   :  { %v2194_v29 = vadd.f32 %v2108_v40, %v2034_v19  ;;  %v3578_v35 = vadd.f32 %v3577_v21, %v3576_v15  ;;  %v2264_v46 = vmul.f32 %v5341_v2, %v5341_v2  ;;  %3791 = vmatpush3.msra.mxu0 %v2480_v4 }
 0x49e   :  { %v3579_v56 = vpop.f32.mrf.mxu1 }
 0x49f   :  { %v2035_v57 = vmul.f32 %v3578_v35, %v4663_v6  ;;  %v2312_v59 = vsel %vm901_vm0, %v2264_v46, 0.0  ;;  %v5354_v63 = vadd.f32 %v5281_v34, %v2194_v29  ;;  %v2120_v35 = vpop.permute.xlu1 %2119 }
 0x4a0   :  { %v3580_v23 = vpop.f32.mrf.mxu1  ;;  %2313 = vadd.xlane.f32.xlu1 %v2312_v59 }
 0x4a1   :  { %v2195_v36 = vadd.f32 %v2110_v17, %v2035_v57  ;;  %v3581_v20 = vadd.f32 %v3580_v23, %v3579_v56  ;;  %v2265_v51 = vmul.f32 %v5354_v63, %v5354_v63 }
 0x4a2   :  { %v3582_v39 = vpop.f32.mrf.mxu1 }
 0x4a3   :  { %v2036_v3 = vmul.f32 %v3581_v20, %v4667_v8  ;;  %v2315_v6 = vsel %vm901_vm0, %v2265_v51, 0.0  ;;  %v5361_v48 = vadd.f32 %v5281_v34, %v2195_v36  ;;  %v2122_v36 = vpop.permute.xlu0 %2121 }
 0x4a4   :  { %v3583_v42 = vpop.f32.mrf.mxu1  ;;  %2316 = vadd.xlane.f32.xlu0 %v2315_v6 }
 0x4a5   :  { %v2196_v9 = vadd.f32 %v2112_v43, %v2036_v3  ;;  %v3584_v44 = vadd.f32 %v3583_v42, %v3582_v39  ;;  %v2266_v1 = vmul.f32 %v5361_v48, %v5361_v48  ;;  %v6102_v43 = vld [vmem:[#allocation2_spill] sm:$0xff] }
 0x4a6   :  { %v3585_v50 = vpop.f32.mrf.mxu1 }
 0x4a7   :  { %v2037_v26 = vmul.f32 %v3584_v44, %v4671_v11  ;;  %v2318_v13 = vsel %vm901_vm0, %v2266_v1, 0.0  ;;  %v5368_v8 = vadd.f32 %v5281_v34, %v2196_v9  ;;  %v2124_v44 = vpop.permute.xlu1 %2123 }
 0x4a8   :  { %v3586_v7 = vpop.f32.mrf.mxu1  ;;  %2319 = vadd.xlane.f32.xlu1 %v2318_v13 }
 0x4a9   :  { %v2197_v49 = vadd.f32 %v2114_v33, %v2037_v26  ;;  %v3587_v24 = vadd.f32 %v3586_v7, %v3585_v50  ;;  %v2267_v31 = vmul.f32 %v5368_v8, %v5368_v8  ;;  %v6103_v7 = vld [vmem:[#allocation3_spill] sm:$0xff] }
 0x4aa   :  { %v3588_v22 = vpop.f32.mrf.mxu1 }
 0x4ab   :  { %v2038_v10 = vmul.f32 %v3587_v24, %v4676_v18  ;;  %v2321_v53 = vsel %vm901_vm0, %v2267_v31, 0.0  ;;  %v5375_v11 = vadd.f32 %v5281_v34, %v2197_v49 }
 0x4ac   :  { %v3589_v14 = vpop.f32.mrf.mxu1  ;;  %2322 = vadd.xlane.f32.xlu0 %v2321_v53 }
 0x4ad   :  { %v2198_v45 = vadd.f32 %v2116_v41, %v2038_v10  ;;  %v3590_v52 = vadd.f32 %v3589_v14, %v3588_v22  ;;  %v2268_v55 = vmul.f32 %v5375_v11, %v5375_v11  ;;  %v2126_v22 = vpop.permute.xlu0 %2125 }
 0x4ae   :  { %v3591_v61 = vpop.f32.mrf.mxu1 }
 0x4af   :  { %v2039_v16 = vmul.f32 %v3590_v52, %v4685_v28  ;;  %v2324_v30 = vsel %vm901_vm0, %v2268_v55, 0.0  ;;  %v5382_v18 = vadd.f32 %v5281_v34, %v2198_v45  ;;  %v6104_v52 = vld [vmem:[#allocation4_spill] sm:$0xff] }
 0x4b0   :  { %v3592_v15 = vpop.f32.mrf.mxu1  ;;  %2325 = vadd.xlane.f32.xlu1 %v2324_v30  ;;  %v2128_v30 = vpop.permute.xlu1 %2127 }
 0x4b1   :  { %v2199_v19 = vadd.f32 %v2118_v12, %v2039_v16  ;;  %v3593_v27 = vadd.f32 %v3592_v15, %v3591_v61  ;;  %v2269_v40 = vmul.f32 %v5382_v18, %v5382_v18 }
 0x4b2   :  { %v3594_v21 = vpop.f32.mrf.mxu1 }
 0x4b3   :  { %v2040_v32 = vmul.f32 %v3593_v27, %v4693_v37  ;;  %v2327_v29 = vsel %vm901_vm0, %v2269_v40, 0.0  ;;  %v5389_v28 = vadd.f32 %v5281_v34, %v2199_v19 }
 0x4b4   :  { %v3595_v46 = vpop.f32.mrf.mxu1  ;;  %2328 = vadd.xlane.f32.xlu0 %v2327_v29 }
 0x4b5   :  { %v2200_v56 = vadd.f32 %v2120_v35, %v2040_v32  ;;  %v3596_v4 = vadd.f32 %v3595_v46, %v3594_v21  ;;  %v2270_v57 = vmul.f32 %v5389_v28, %v5389_v28  ;;  %v6105_v21 = vld [vmem:[#allocation5_spill] sm:$0xff]  ;;  %v2130_v46 = vpop.permute.xlu0 %2129 }
 0x4b6   :  { %v3597_v59 = vpop.f32.mrf.mxu1 }
 0x4b7   :  { %v2041_v17 = vmul.f32 %v3596_v4, %v4702_v47  ;;  %v2330_v23 = vsel %vm901_vm0, %v2270_v57, 0.0  ;;  %v5396_v37 = vadd.f32 %v5281_v34, %v2200_v56 }
 0x4b8   :  { %v3598_v20 = vpop.f32.mrf.mxu1  ;;  %2331 = vadd.xlane.f32.xlu1 %v2330_v23  ;;  %v6106_v23 = vld [vmem:[#allocation6_spill] sm:$0xff] }
 0x4b9   :  { %v2201_v51 = vadd.f32 %v2122_v36, %v2041_v17  ;;  %v3599_v39 = vadd.f32 %v3598_v20, %v3597_v59  ;;  %v2271_v3 = vmul.f32 %v5396_v37, %v5396_v37 }
 0x4ba   :  { %v3600_v6 = vpop.f32.mrf.mxu1 }
 0x4bb   :  { %v2042_v42 = vmul.f32 %v3599_v39, %v6102_v43  ;;  %v2333_v9 = vsel %vm901_vm0, %v2271_v3, 0.0  ;;  %v5403_v47 = vadd.f32 %v5281_v34, %v2201_v51  ;;  %v2132_v39 = vpop.permute.xlu1 %2131 }
 0x4bc   :  { %v3601_v1 = vpop.f32.mrf.mxu1  ;;  %2334 = vadd.xlane.f32.xlu0 %v2333_v9 }
 0x4bd   :  { %v2202_v50 = vadd.f32 %v2124_v44, %v2042_v42  ;;  %v3602_v26 = vadd.f32 %v3601_v1, %v3600_v6  ;;  %v2272_v13 = vmul.f32 %v5403_v47, %v5403_v47  ;;  %v6107_v44 = vld [vmem:[#allocation7_spill] sm:$0xff] }
 0x4be   :  { %v3603_v33 = vpop.f32.mrf.mxu1 }
 0x4bf   :  { %v2043_v49 = vmul.f32 %v3602_v26, %v6103_v7  ;;  %v2336_v24 = vsel %vm901_vm0, %v2272_v13, 0.0  ;;  %v5410_v31 = vadd.f32 %v5281_v34, %v2202_v50  ;;  %v2134_v13 = vpop.permute.xlu0 %2133 }
 0x4c0   :  { %v3604_v10 = vpop.f32.mrf.mxu1  ;;  %2337 = vadd.xlane.f32.xlu1 %v2336_v24 }
 0x4c1   :  { %v2203_v53 = vadd.f32 %v2126_v22, %v2043_v49  ;;  %v3605_v41 = vadd.f32 %v3604_v10, %v3603_v33  ;;  %v2273_v14 = vmul.f32 %v5410_v31, %v5410_v31  ;;  %v6108_v10 = vld [vmem:[#allocation8_spill] sm:$0xff] }
 0x4c2   :  { %v3606_v45 = vpop.f32.mrf.mxu1 }
 0x4c3   :  { %v2044_v55 = vmul.f32 %v3605_v41, %v6104_v52  ;;  %v2339_v61 = vsel %vm901_vm0, %v2273_v14, 0.0  ;;  %v5417_v16 = vadd.f32 %v5281_v34, %v2203_v53 }
 0x4c4   :  { %v3607_v12 = vpop.f32.mrf.mxu1  ;;  %2340 = vadd.xlane.f32.xlu0 %v2339_v61 }
 0x4c5   :  { %v2204_v15 = vadd.f32 %v2128_v30, %v2044_v55  ;;  %v3608_v19 = vadd.f32 %v3607_v12, %v3606_v45  ;;  %v2274_v27 = vmul.f32 %v5417_v16, %v5417_v16  ;;  %v2136_v45 = vpop.permute.xlu1 %2135 }
 0x4c6   :  { %v3609_v40 = vpop.f32.mrf.mxu1 }
 0x4c7   :  { %v2045_v32 = vmul.f32 %v3608_v19, %v6105_v21  ;;  %v2342_v29 = vsel %vm901_vm0, %v2274_v27, 0.0  ;;  %v5424_v35 = vadd.f32 %v5281_v34, %v2204_v15  ;;  %v6109_v15 = vld [vmem:[#allocation9_spill] sm:$0xff]  ;;  %v2138_v21 = vpop.permute.xlu0 %2137 }
 0x4c8   :  { %v3610_v56 = vpop.f32.mrf.mxu1  ;;  %2343 = vadd.xlane.f32.xlu1 %v2342_v29 }
 0x4c9   :  { %v2205_v4 = vadd.f32 %v2130_v46, %v2045_v32  ;;  %v3611_v57 = vadd.f32 %v3610_v56, %v3609_v40  ;;  %v2275_v59 = vmul.f32 %v5424_v35, %v5424_v35 }
 0x4ca   :  { %v3612_v17 = vpop.f32.mrf.mxu1 }
 0x4cb   :  { %v2046_v36 = vmul.f32 %v3611_v57, %v6106_v23  ;;  %v2345_v20 = vsel %vm901_vm0, %v2275_v59, 0.0  ;;  %v5431_v51 = vadd.f32 %v5281_v34, %v2205_v4  ;;  %v6110_v57 = vld [vmem:[#allocation10_spill] sm:$0xff] }
 0x4cc   :  { %v3613_v3 = vpop.f32.mrf.mxu1  ;;  %2346 = vadd.xlane.f32.xlu0 %v2345_v20 }
 0x4cd   :  { %v2206_v6 = vadd.f32 %v2132_v39, %v2046_v36  ;;  %v3614_v43 = vadd.f32 %v3613_v3, %v3612_v17  ;;  %v2276_v42 = vmul.f32 %v5431_v51, %v5431_v51  ;;  %v2140_v36 = vpop.permute.xlu1 %2139 }
 0x4ce   :  { %v3615_v9 = vpop.f32.mrf.mxu1 }
 0x4cf   :  { %v2047_v1 = vmul.f32 %v3614_v43, %v6107_v44  ;;  %v2348_v50 = vsel %vm901_vm0, %v2276_v42, 0.0  ;;  %v5438_v26 = vadd.f32 %v5281_v34, %v2206_v6  ;;  %v6111_v42 = vld [vmem:[#allocation11_spill] sm:$0xff] }
 0x4d0   :  { %v3616_v33 = vpop.f32.mrf.mxu1  ;;  %2349 = vadd.xlane.f32.xlu1 %v2348_v50  ;;  %v2142_v50 = vpop.permute.xlu0 %2141 }
 0x4d1   :  { %v2207_v7 = vadd.f32 %v2134_v13, %v2047_v1  ;;  %v3617_v49 = vadd.f32 %v3616_v33, %v3615_v9  ;;  %v2277_v24 = vmul.f32 %v5438_v26, %v5438_v26 }
 0x4d2   :  { %v3618_v22 = vpop.f32.mrf.mxu1 }
 0x4d3   :  { %v2048_v53 = vmul.f32 %v3617_v49, %v6108_v10  ;;  %v2351_v41 = vsel %vm901_vm0, %v2277_v24, 0.0  ;;  %v5445_v14 = vadd.f32 %v5281_v34, %v2207_v7 }
 0x4d4   :  { %v3619_v52 = vpop.f32.mrf.mxu1  ;;  %2352 = vadd.xlane.f32.xlu0 %v2351_v41 }
 0x4d5   :  { %v2208_v55 = vadd.f32 %v2136_v45, %v2048_v53  ;;  %v3620_v61 = vadd.f32 %v3619_v52, %v3618_v22  ;;  %v2278_v30 = vmul.f32 %v5445_v14, %v5445_v14  ;;  %v6112_v22 = vld [vmem:[#allocation12_spill] sm:$0xff]  ;;  %v2144_v45 = vpop.permute.xlu1 %2143 }
 0x4d6   :  { %v3621_v12 = vpop.f32.mrf.mxu1 }
 0x4d7   :  { %v2049_v19 = vmul.f32 %v3620_v61, %v6109_v15  ;;  %v2354_v27 = vsel %vm901_vm0, %v2278_v30, 0.0  ;;  %v5452_v40 = vadd.f32 %v5281_v34, %v2208_v55  ;;  %v6113_v15 = vld [vmem:[#allocation13_spill] sm:$0xff] }
 0x4d8   :  { %v3622_v32 = vpop.f32.mrf.mxu1  ;;  %2355 = vadd.xlane.f32.xlu1 %v2354_v27 }
 0x4d9   :  { %v2209_v29 = vadd.f32 %v2138_v21, %v2049_v19  ;;  %v3623_v46 = vadd.f32 %v3622_v32, %v3621_v12  ;;  %v2279_v56 = vmul.f32 %v5452_v40, %v5452_v40  ;;  %v2146_v32 = vpop.permute.xlu0 %2145 }
 0x4da   :  { %v3624_v4 = vpop.f32.mrf.mxu1 }
 0x4db   :  { %v2050_v59 = vmul.f32 %v3623_v46, %v6110_v57  ;;  %v2357_v17 = vsel %vm901_vm0, %v2279_v56, 0.0  ;;  %v5459_v23 = vadd.f32 %v5281_v34, %v2209_v29 }
 0x4dc   :  { %v3625_v20 = vpop.f32.mrf.mxu1  ;;  %2358 = vadd.xlane.f32.xlu0 %v2357_v17 }
 0x4dd   :  { %v2210_v39 = vadd.f32 %v2140_v36, %v2050_v59  ;;  %v3626_v3 = vadd.f32 %v3625_v20, %v3624_v4  ;;  %v2280_v6 = vmul.f32 %v5459_v23, %v5459_v23  ;;  %v6114_v59 = vld [vmem:[#allocation14_spill] sm:$0xff] }
 0x4de   :  { %v3627_v43 = vpop.f32.mrf.mxu1 }
 0x4df   :  { %v2051_v9 = vmul.f32 %v3626_v3, %v6111_v42  ;;  %v2360_v44 = vsel %vm901_vm0, %v2280_v6, 0.0  ;;  %v5466_v1 = vadd.f32 %v5281_v34, %v2210_v39  ;;  %v2148_v39 = vpop.permute.xlu1 %2147 }
 0x4e0   :  { %v3628_v13 = vpop.f32.mrf.mxu1  ;;  %2361 = vadd.xlane.f32.xlu1 %v2360_v44  ;;  %v6115_v44 = vld [vmem:[#allocation15_spill] sm:$0xff] }
 0x4e1   :  { %v2211_v33 = vadd.f32 %v2142_v50, %v2051_v9  ;;  %v3629_v7 = vadd.f32 %v3628_v13, %v3627_v43  ;;  %v2281_v49 = vmul.f32 %v5466_v1, %v5466_v1 }
 0x4e2   :  { %v3630_v24 = vpop.f32.mrf.mxu1 }
 0x4e3   :  { %v2052_v10 = vmul.f32 %v3629_v7, %v6112_v22  ;;  %v2363_v53 = vsel %vm901_vm0, %v2281_v49, 0.0  ;;  %v5473_v41 = vadd.f32 %v5281_v34, %v2211_v33  ;;  %v2150_v7 = vpop.permute.xlu0 %2149 }
 0x4e4   :  { %v3631_v52 = vpop.f32.mrf.mxu1  ;;  %2364 = vadd.xlane.f32.xlu0 %v2363_v53  ;;  %v6116_v53 = vld [vmem:[#allocation16_spill] sm:$0xff] }
 0x4e5   :  { %v2212_v55 = vadd.f32 %v2144_v45, %v2052_v10  ;;  %v3632_v61 = vadd.f32 %v3631_v52, %v3630_v24  ;;  %v2282_v30 = vmul.f32 %v5473_v41, %v5473_v41 }
 0x4e6   :  { %v3633_v12 = vpop.f32.mrf.mxu1 }
 0x4e7   :  { %v2053_v19 = vmul.f32 %v3632_v61, %v6113_v15  ;;  %v2366_v27 = vsel %vm901_vm0, %v2282_v30, 0.0  ;;  %v5480_v21 = vadd.f32 %v5281_v34, %v2212_v55  ;;  %v2152_v61 = vpop.permute.xlu1 %2151 }
 0x4e8   :  { %v3634_v29 = vpop.f32.mrf.mxu1  ;;  %2367 = vadd.xlane.f32.xlu1 %v2366_v27 }
 0x4e9   :  { %v2213_v46 = vadd.f32 %v2146_v32, %v2053_v19  ;;  %v3635_v56 = vadd.f32 %v3634_v29, %v3633_v12  ;;  %v2283_v4 = vmul.f32 %v5480_v21, %v5480_v21 }
 0x4ea   :  { %v3636_v57 = vpop.f32.mrf.mxu1 }
 0x4eb   :  { %v2054_v17 = vmul.f32 %v3635_v56, %v6114_v59  ;;  %v2369_v36 = vsel %vm901_vm0, %v2283_v4, 0.0  ;;  %v5487_v20 = vadd.f32 %v5281_v34, %v2213_v46 }
 0x4ec   :  { %v3637_v3 = vpop.f32.mrf.mxu1  ;;  %2370 = vadd.xlane.f32.xlu0 %v2369_v36 }
 0x4ed   :  { %v2214_v6 = vadd.f32 %v2148_v39, %v2054_v17  ;;  %v3638_v43 = vadd.f32 %v3637_v3, %v3636_v57  ;;  %v2284_v42 = vmul.f32 %v5487_v20, %v5487_v20 }
 0x4ee   :  { %v3639_v9 = vpop.f32.mrf.mxu1 }
 0x4ef   :  { %v2055_v50 = vmul.f32 %v3638_v43, %v6115_v44  ;;  %v2372_v13 = vsel %vm901_vm0, %v2284_v42, 0.0  ;;  %v5494_v33 = vadd.f32 %v5281_v34, %v2214_v6 }
 0x4f0   :  { %v3640_v49 = vpop.f32.mrf.mxu1  ;;  %2373 = vadd.xlane.f32.xlu1 %v2372_v13 }
 0x4f1   :  { %v2215_v24 = vadd.f32 %v2150_v7, %v2055_v50  ;;  %v3641_v22 = vadd.f32 %v3640_v49, %v3639_v9  ;;  %v2285_v10 = vmul.f32 %v5494_v33, %v5494_v33 }
 0x4f3   :  { %v2056_v45 = vmul.f32 %v3641_v22, %v6116_v53  ;;  %v2375_v52 = vsel %vm901_vm0, %v2285_v10, 0.0  ;;  %v5501_v55 = vadd.f32 %v5281_v34, %v2215_v24 }
 0x4f4   :  { %2376 = vadd.xlane.f32.xlu0 %v2375_v52 }
 0x4f5   :  { %v2216_v30 = vadd.f32 %v2152_v61, %v2056_v45  ;;  %v2286_v12 = vmul.f32 %v5501_v55, %v5501_v55 }
 0x4f7   :  { %v2378_v15 = vsel %vm901_vm0, %v2286_v12, 0.0  ;;  %v5507_v19 = vadd.f32 %v5281_v34, %v2216_v30 }
 0x4f8   :  { %2379 = vadd.xlane.f32.xlu1 %v2378_v15 }
 0x4f9   :  { %v2287_v27 = vmul.f32 %v5507_v19, %v5507_v19 }
 0x4fb   :  { %v2381_v32 = vsel %vm901_vm0, %v2287_v27, 0.0 }
 0x4fc   :  { %2382 = vadd.xlane.f32.xlu0 %v2381_v32 }
 0x509   :  { %v2290_v29 = vpop.xlane.xlu0 %2289 }
 0x50a   :  { %v2384_v46 = vmax.f32 %v2290_v29, 1e-24 }
 0x50c   :  { %3981 = vrsqrt.f32 %v2384_v46 }
 0x50d   :  { %v2293_v56 = vpop.xlane.xlu1 %2292 }
 0x50e   :  { %v2385_v4 = vmax.f32 %v2293_v56, 1e-24 }
 0x510   :  { %3983 = vrsqrt.f32 %v2385_v4 }
 0x511   :  { %v2296_v57 = vpop.xlane.xlu0 %2295 }
 0x512   :  { %v2386_v59 = vmax.f32 %v2296_v57, 1e-24 }
 0x514   :  { %3985 = vrsqrt.f32 %v2386_v59 }
 0x515   :  { %v2299_v17 = vpop.xlane.xlu0 %2298 }
 0x516   :  { %v2387_v36 = vmax.f32 %v2299_v17, 1e-24 }
 0x518   :  { %3987 = vrsqrt.f32 %v2387_v36 }
 0x519   :  { %v3982_v34 = vpop.eup %3981  ;;  %v2302_v39 = vpop.xlane.xlu1 %2301 }
 0x51a   :  { %v2388_v3 = vmax.f32 %v2302_v39, 1e-24  ;;  %v2448_v6 = vmul.f32 %v3982_v34, %v5285_v38 }
 0x51c   :  { %3989 = vrsqrt.f32 %v2388_v3  ;;  %3792 = vmatprep.mubr.msk.f32.mxu0 %vm901_vm0, %v2448_v6 }
 0x51d   :  { %v3984_v43 = vpop.eup %3983  ;;  %v2305_v42 = vpop.xlane.xlu0 %2304 }
 0x51e   :  { %v2449_v9 = vmul.f32 %v3984_v43, %v5292_v5  ;;  %v2389_v44 = vmax.f32 %v2305_v42, 1e-24 }
 0x520   :  { %3991 = vrsqrt.f32 %v2389_v44  ;;  %3793 = vmatmul.mubr.msk.f32.vlgmr.msra.gmra.mxu0 %vm901_vm0, %v2449_v9 }
 0x521   :  { %v3986_v50 = vpop.eup %3985  ;;  %v2308_v13 = vpop.xlane.xlu1 %2307 }
 0x522   :  { %v2390_v7 = vmax.f32 %v2308_v13, 1e-24  ;;  %v2450_v49 = vmul.f32 %v3986_v50, %v5299_v54 }
 0x524   :  { %3993 = vrsqrt.f32 %v2390_v7  ;;  %3795 = vmatprep.mubr.msk.f32.mxu0 %vm901_vm0, %v2450_v49 }
 0x525   :  { %v3988_v38 = vpop.eup %3987  ;;  %v2311_v24 = vpop.xlane.xlu0 %2310 }
 0x526   :  { %v2391_v22 = vmax.f32 %v2311_v24, 1e-24  ;;  %v2451_v10 = vmul.f32 %v3988_v38, %v5306_v25 }
 0x528   :  { %3995 = vrsqrt.f32 %v2391_v22  ;;  %3796 = vmatmul.mubr.msk.f32.gmra.mxu0 %vm901_vm0, %v2451_v10 }
 0x529   :  { %v3990_v5 = vpop.eup %3989  ;;  %v2314_v53 = vpop.xlane.xlu1 %2313 }
 0x52a   :  { %v2392_v45 = vmax.f32 %v2314_v53, 1e-24  ;;  %v2452_v52 = vmul.f32 %v3990_v5, %v5313_v58 }
 0x52c   :  { %3997 = vrsqrt.f32 %v2392_v45  ;;  %3798 = vmatprep.mubr.msk.f32.mxu0 %vm901_vm0, %v2452_v52 }
 0x52d   :  { %v3992_v54 = vpop.eup %3991  ;;  %v2317_v61 = vpop.xlane.xlu0 %2316 }
 0x52e   :  { %v2393_v30 = vmax.f32 %v2317_v61, 1e-24  ;;  %v2453_v12 = vmul.f32 %v3992_v54, %v5320_v60 }
 0x530   :  { %3999 = vrsqrt.f32 %v2393_v30  ;;  %3799 = vmatmul.mubr.msk.f32.gmra.mxu0 %vm901_vm0, %v2453_v12 }
 0x531   :  { %v3994_v25 = vpop.eup %3993  ;;  %v2320_v15 = vpop.xlane.xlu1 %2319 }
 0x532   :  { %v2394_v27 = vmax.f32 %v2320_v15, 1e-24  ;;  %v2454_v32 = vmul.f32 %v3994_v25, %v5327_v62 }
 0x534   :  { %4001 = vrsqrt.f32 %v2394_v27  ;;  %3801 = vmatprep.mubr.msk.f32.mxu0 %vm901_vm0, %v2454_v32 }
 0x535   :  { %v3996_v58 = vpop.eup %3995  ;;  %v2323_v29 = vpop.xlane.xlu0 %2322 }
 0x536   :  { %v2395_v46 = vmax.f32 %v2323_v29, 1e-24  ;;  %v2455_v56 = vmul.f32 %v3996_v58, %v5334_v0 }
 0x538   :  { %4003 = vrsqrt.f32 %v2395_v46  ;;  %3802 = vmatmul.mubr.msk.f32.gmra.mxu0 %vm901_vm0, %v2455_v56 }
 0x539   :  { %v3998_v60 = vpop.eup %3997  ;;  %v2326_v4 = vpop.xlane.xlu1 %2325 }
 0x53a   :  { %v2396_v57 = vmax.f32 %v2326_v4, 1e-24  ;;  %v2456_v59 = vmul.f32 %v3998_v60, %v5341_v2 }
 0x53c   :  { %4005 = vrsqrt.f32 %v2396_v57  ;;  %3804 = vmatprep.mubr.msk.f32.mxu0 %vm901_vm0, %v2456_v59 }
 0x53d   :  { %v4000_v62 = vpop.eup %3999  ;;  %v2329_v17 = vpop.xlane.xlu0 %2328 }
 0x53e   :  { %v2397_v36 = vmax.f32 %v2329_v17, 1e-24  ;;  %v2457_v34 = vmul.f32 %v4000_v62, %v5354_v63 }
 0x540   :  { %4007 = vrsqrt.f32 %v2397_v36  ;;  %3805 = vmatmul.mubr.msk.f32.gmra.mxu0 %vm901_vm0, %v2457_v34 }
 0x541   :  { %v4002_v0 = vpop.eup %4001  ;;  %v2332_v39 = vpop.xlane.xlu1 %2331 }
 0x542   :  { %v2398_v3 = vmax.f32 %v2332_v39, 1e-24  ;;  %v2458_v6 = vmul.f32 %v4002_v0, %v5361_v48 }
 0x544   :  { %4009 = vrsqrt.f32 %v2398_v3  ;;  %3807 = vmatprep.mubr.msk.f32.mxu0 %vm901_vm0, %v2458_v6 }
 0x545   :  { %v4004_v2 = vpop.eup %4003  ;;  %v2335_v43 = vpop.xlane.xlu0 %2334 }
 0x546   :  { %v2399_v42 = vmax.f32 %v2335_v43, 1e-24  ;;  %v2459_v9 = vmul.f32 %v4004_v2, %v5368_v8 }
 0x548   :  { %4011 = vrsqrt.f32 %v2399_v42  ;;  %3808 = vmatmul.mubr.msk.f32.gmra.mxu0 %vm901_vm0, %v2459_v9 }
 0x549   :  { %v4006_v63 = vpop.eup %4005  ;;  %v2338_v44 = vpop.xlane.xlu1 %2337 }
 0x54a   :  { %v2400_v50 = vmax.f32 %v2338_v44, 1e-24  ;;  %v2460_v13 = vmul.f32 %v4006_v63, %v5375_v11 }
 0x54c   :  { %4013 = vrsqrt.f32 %v2400_v50  ;;  %3810 = vmatprep.mubr.msk.f32.mxu0 %vm901_vm0, %v2460_v13 }
 0x54d   :  { %v4008_v48 = vpop.eup %4007  ;;  %v2341_v7 = vpop.xlane.xlu0 %2340 }
 0x54e   :  { %v2401_v49 = vmax.f32 %v2341_v7, 1e-24  ;;  %v2461_v38 = vmul.f32 %v4008_v48, %v5382_v18 }
 0x550   :  { %4015 = vrsqrt.f32 %v2401_v49  ;;  %3811 = vmatmul.mubr.msk.f32.gmra.mxu0 %vm901_vm0, %v2461_v38 }
 0x551   :  { %v4010_v8 = vpop.eup %4009  ;;  %v2344_v24 = vpop.xlane.xlu1 %2343 }
 0x552   :  { %v2402_v22 = vmax.f32 %v2344_v24, 1e-24  ;;  %v2462_v10 = vmul.f32 %v4010_v8, %v5389_v28 }
 0x554   :  { %4017 = vrsqrt.f32 %v2402_v22  ;;  %3813 = vmatprep.mubr.msk.f32.mxu0 %vm901_vm0, %v2462_v10 }
 0x555   :  { %v4012_v11 = vpop.eup %4011  ;;  %v2347_v5 = vpop.xlane.xlu0 %2346 }
 0x556   :  { %v2403_v53 = vmax.f32 %v2347_v5, 1e-24  ;;  %v2463_v45 = vmul.f32 %v4012_v11, %v5396_v37 }
 0x558   :  { %4019 = vrsqrt.f32 %v2403_v53  ;;  %3814 = vmatmul.mubr.msk.f32.gmra.mxu0 %vm901_vm0, %v2463_v45 }
 0x559   :  { %v4014_v18 = vpop.eup %4013  ;;  %v2350_v52 = vpop.xlane.xlu1 %2349 }
 0x55a   :  { %v2404_v54 = vmax.f32 %v2350_v52, 1e-24  ;;  %v2464_v61 = vmul.f32 %v4014_v18, %v5403_v47 }
 0x55c   :  { %4021 = vrsqrt.f32 %v2404_v54  ;;  %3816 = vmatprep.mubr.msk.f32.mxu0 %vm901_vm0, %v2464_v61 }
 0x55d   :  { %v4016_v28 = vpop.eup %4015  ;;  %v2353_v30 = vpop.xlane.xlu0 %2352 }
 0x55e   :  { %v2405_v12 = vmax.f32 %v2353_v30, 1e-24  ;;  %v2465_v25 = vmul.f32 %v4016_v28, %v5410_v31 }
 0x560   :  { %4023 = vrsqrt.f32 %v2405_v12  ;;  %3817 = vmatmul.mubr.msk.f32.gmra.mxu0 %vm901_vm0, %v2465_v25 }
 0x561   :  { %v4018_v37 = vpop.eup %4017  ;;  %v2356_v15 = vpop.xlane.xlu1 %2355 }
 0x562   :  { %v2406_v27 = vmax.f32 %v2356_v15, 1e-24  ;;  %v2466_v32 = vmul.f32 %v4018_v37, %v5417_v16 }
 0x564   :  { %4025 = vrsqrt.f32 %v2406_v27  ;;  %3819 = vmatprep.mubr.msk.f32.mxu0 %vm901_vm0, %v2466_v32 }
 0x565   :  { %v4020_v47 = vpop.eup %4019  ;;  %v2359_v58 = vpop.xlane.xlu0 %2358 }
 0x566   :  { %v2407_v29 = vmax.f32 %v2359_v58, 1e-24  ;;  %v2467_v46 = vmul.f32 %v4020_v47, %v5424_v35 }
 0x568   :  { %4027 = vrsqrt.f32 %v2407_v29  ;;  %3820 = vmatmul.mubr.msk.f32.gmra.mxu0 %vm901_vm0, %v2467_v46 }
 0x569   :  { %v4022_v31 = vpop.eup %4021  ;;  %v2362_v56 = vpop.xlane.xlu1 %2361 }
 0x56a   :  { %v2408_v60 = vmax.f32 %v2362_v56, 1e-24  ;;  %v2468_v4 = vmul.f32 %v4022_v31, %v5431_v51 }
 0x56c   :  { %4029 = vrsqrt.f32 %v2408_v60  ;;  %3822 = vmatprep.mubr.msk.f32.mxu0 %vm901_vm0, %v2468_v4 }
 0x56d   :  { %v4024_v16 = vpop.eup %4023  ;;  %v2365_v57 = vpop.xlane.xlu0 %2364 }
 0x56e   :  { %v2409_v59 = vmax.f32 %v2365_v57, 1e-24  ;;  %v2469_v62 = vmul.f32 %v4024_v16, %v5438_v26 }
 0x570   :  { %4031 = vrsqrt.f32 %v2409_v59  ;;  %3823 = vmatmul.mubr.msk.f32.gmra.mxu0 %vm901_vm0, %v2469_v62 }
 0x571   :  { %v4026_v35 = vpop.eup %4025  ;;  %v2368_v17 = vpop.xlane.xlu1 %2367 }
 0x572   :  { %v2410_v36 = vmax.f32 %v2368_v17, 1e-24  ;;  %v2470_v34 = vmul.f32 %v4026_v35, %v5445_v14 }
 0x574   :  { %4033 = vrsqrt.f32 %v2410_v36  ;;  %3825 = vmatprep.mubr.msk.f32.mxu0 %vm901_vm0, %v2470_v34 }
 0x575   :  { %v4028_v51 = vpop.eup %4027  ;;  %v2371_v0 = vpop.xlane.xlu0 %2370 }
 0x576   :  { %v2411_v39 = vmax.f32 %v2371_v0, 1e-24  ;;  %v2471_v3 = vmul.f32 %v4028_v51, %v5452_v40 }
 0x578   :  { %4035 = vrsqrt.f32 %v2411_v39  ;;  %3826 = vmatmul.mubr.msk.f32.gmra.mxu0 %vm901_vm0, %v2471_v3 }
 0x579   :  { %v4030_v26 = vpop.eup %4029  ;;  %v2374_v6 = vpop.xlane.xlu1 %2373 }
 0x57a   :  { %v2412_v2 = vmax.f32 %v2374_v6, 1e-24  ;;  %v2472_v43 = vmul.f32 %v4030_v26, %v5459_v23 }
 0x57c   :  { %4037 = vrsqrt.f32 %v2412_v2  ;;  %3828 = vmatprep.mubr.msk.f32.mxu0 %vm901_vm0, %v2472_v43 }
 0x57d   :  { %v4032_v14 = vpop.eup %4031  ;;  %v2377_v42 = vpop.xlane.xlu0 %2376 }
 0x57e   :  { %v2413_v9 = vmax.f32 %v2377_v42, 1e-24  ;;  %v2473_v63 = vmul.f32 %v4032_v14, %v5466_v1 }
 0x580   :  { %4039 = vrsqrt.f32 %v2413_v9  ;;  %3829 = vmatmul.mubr.msk.f32.gmra.mxu0 %vm901_vm0, %v2473_v63 }
 0x581   :  { %v4034_v40 = vpop.eup %4033  ;;  %v2380_v44 = vpop.xlane.xlu1 %2379 }
 0x582   :  { %v2414_v50 = vmax.f32 %v2380_v44, 1e-24  ;;  %v2474_v13 = vmul.f32 %v4034_v40, %v5473_v41 }
 0x584   :  { %4041 = vrsqrt.f32 %v2414_v50  ;;  %3831 = vmatprep.mubr.msk.f32.mxu0 %vm901_vm0, %v2474_v13 }
 0x585   :  { %v4036_v23 = vpop.eup %4035  ;;  %v2383_v48 = vpop.xlane.xlu0 %2382 }
 0x586   :  { %v2415_v7 = vmax.f32 %v2383_v48, 1e-24  ;;  %v2475_v49 = vmul.f32 %v4036_v23, %v5480_v21 }
 0x588   :  { %4043 = vrsqrt.f32 %v2415_v7  ;;  %3832 = vmatmul.mubr.msk.f32.gmra.mxu0 %vm901_vm0, %v2475_v49 }
 0x589   :  { %v4038_v1 = vpop.eup %4037 }
 0x58a   :  { %v2476_v38 = vmul.f32 %v4038_v1, %v5487_v20  ;;  %v5579_v20 = vld [vmem:[%s6070_s9] ss:$0 sm:$0xff] }
 0x58c   :  { %3834 = vmatprep.mubr.msk.f32.mxu0 %vm901_vm0, %v2476_v38 }
 0x58d   :  { %v4040_v8 = vpop.eup %4039 }
 0x58e   :  { %v2477_v24 = vmul.f32 %v4040_v8, %v5494_v33 }
 0x590   :  { %3835 = vmatmul.mubr.msk.f32.gmra.mxu0 %vm901_vm0, %v2477_v24 }
 0x591   :  { %v4042_v41 = vpop.eup %4041 }
 0x592   :  { %v2478_v22 = vmul.f32 %v4042_v41, %v5501_v55 }
 0x594   :  { %3837 = vmatprep.mubr.msk.f32.mxu0 %vm901_vm0, %v2478_v22 }
 0x595   :  { %v4044_v10 = vpop.eup %4043 }
 0x596   :  { %v2479_v21 = vmul.f32 %v4044_v10, %v5507_v19 }
 0x598   :  { %3838 = vmatmul.mubr.msk.f32.gmra.mxu0 %vm901_vm0, %v2479_v21 }
 0x5e0   :  { %v3794_v11 = vpop.f32.mrf.mxu0 }
 0x5e1   :  { %v5582_v33 = vadd.f32 %v3794_v11, %v5579_v20 }
 0x5e2   :  { %v2651_v5 = vpop.f32.mrf.mxu0 }
 0x5e3   :  { %v5585_v55 = vadd.f32 %v5579_v20, %v2651_v5  ;;  %v2814_v53 = vsel %vm2810_vm2, %v5582_v33, -inf }
 0x5e4   :  { %2815 = vmax.xlane.f32.xlu0 %v2814_v53 }
 0x5e5   :  { %v2811_v19 = vsel %vm2810_vm2, %v5585_v55, -inf }
 0x5e6   :  { %2812 = vmax.xlane.f32.xlu1 %v2811_v19 }
 0x5e8   :  { %v3797_v45 = vpop.f32.mrf.mxu0 }
 0x5e9   :  { %v5592_v18 = vadd.f32 %v3797_v45, %v5579_v20 }
 0x5ea   :  { %v2661_v52 = vpop.f32.mrf.mxu0 }
 0x5eb   :  { %v5595_v54 = vadd.f32 %v5579_v20, %v2661_v52  ;;  %v2820_v61 = vsel %vm2810_vm2, %v5592_v18, -inf }
 0x5ec   :  { %2821 = vmax.xlane.f32.xlu0 %v2820_v61 }
 0x5ed   :  { %v2817_v28 = vsel %vm2810_vm2, %v5595_v54, -inf }
 0x5ee   :  { %2818 = vmax.xlane.f32.xlu1 %v2817_v28 }
 0x5f0   :  { %v3800_v30 = vpop.f32.mrf.mxu0 }
 0x5f1   :  { %v5602_v12 = vadd.f32 %v3800_v30, %v5579_v20 }
 0x5f2   :  { %v2671_v25 = vpop.f32.mrf.mxu0 }
 0x5f3   :  { %v5605_v37 = vadd.f32 %v5579_v20, %v2671_v25  ;;  %v2826_v15 = vsel %vm2810_vm2, %v5602_v12, -inf }
 0x5f4   :  { %2827 = vmax.xlane.f32.xlu0 %v2826_v15 }
 0x5f5   :  { %v2823_v27 = vsel %vm2810_vm2, %v5605_v37, -inf }
 0x5f6   :  { %2824 = vmax.xlane.f32.xlu1 %v2823_v27 }
 0x5f8   :  { %v3803_v32 = vpop.f32.mrf.mxu0 }
 0x5f9   :  { %v5612_v47 = vadd.f32 %v3803_v32, %v5579_v20 }
 0x5fa   :  { %v2681_v58 = vpop.f32.mrf.mxu0 }
 0x5fb   :  { %v5615_v29 = vadd.f32 %v5579_v20, %v2681_v58  ;;  %v2832_v46 = vsel %vm2810_vm2, %v5612_v47, -inf }
 0x5fc   :  { %2833 = vmax.xlane.f32.xlu0 %v2832_v46 }
 0x5fd   :  { %v2829_v31 = vsel %vm2810_vm2, %v5615_v29, -inf }
 0x5fe   :  { %2830 = vmax.xlane.f32.xlu1 %v2829_v31 }
 0x600   :  { %v3806_v56 = vpop.f32.mrf.mxu0 }
 0x601   :  { %v5622_v60 = vadd.f32 %v3806_v56, %v5579_v20 }
 0x602   :  { %v2691_v4 = vpop.f32.mrf.mxu0 }
 0x603   :  { %v5625_v16 = vadd.f32 %v5579_v20, %v2691_v4  ;;  %v2838_v57 = vsel %vm2810_vm2, %v5622_v60, -inf }
 0x604   :  { %2839 = vmax.xlane.f32.xlu0 %v2838_v57 }
 0x605   :  { %v2835_v59 = vsel %vm2810_vm2, %v5625_v16, -inf }
 0x606   :  { %2836 = vmax.xlane.f32.xlu1 %v2835_v59 }
 0x608   :  { %v3809_v62 = vpop.f32.mrf.mxu0 }
 0x609   :  { %v5632_v35 = vadd.f32 %v3809_v62, %v5579_v20 }
 0x60a   :  { %v2701_v17 = vpop.f32.mrf.mxu0 }
 0x60b   :  { %v5635_v36 = vadd.f32 %v5579_v20, %v2701_v17  ;;  %v2844_v34 = vsel %vm2810_vm2, %v5632_v35, -inf }
 0x60c   :  { %2845 = vmax.xlane.f32.xlu0 %v2844_v34 }
 0x60d   :  { %v2841_v51 = vsel %vm2810_vm2, %v5635_v36, -inf }
 0x60e   :  { %2842 = vmax.xlane.f32.xlu1 %v2841_v51 }
 0x610   :  { %v3812_v0 = vpop.f32.mrf.mxu0 }
 0x611   :  { %v5642_v39 = vadd.f32 %v3812_v0, %v5579_v20 }
 0x612   :  { %v2711_v3 = vpop.f32.mrf.mxu0 }
 0x613   :  { %v5645_v26 = vadd.f32 %v5579_v20, %v2711_v3  ;;  %v2850_v6 = vsel %vm2810_vm2, %v5642_v39, -inf }
 0x614   :  { %2851 = vmax.xlane.f32.xlu0 %v2850_v6 }
 0x615   :  { %v2847_v2 = vsel %vm2810_vm2, %v5645_v26, -inf }
 0x616   :  { %2848 = vmax.xlane.f32.xlu1 %v2847_v2 }
 0x618   :  { %v3815_v43 = vpop.f32.mrf.mxu0 }
 0x619   :  { %v5652_v14 = vadd.f32 %v3815_v43, %v5579_v20 }
 0x61a   :  { %v2721_v42 = vpop.f32.mrf.mxu0 }
 0x61b   :  { %v5655_v9 = vadd.f32 %v5579_v20, %v2721_v42  ;;  %v2856_v63 = vsel %vm2810_vm2, %v5652_v14, -inf }
 0x61c   :  { %2857 = vmax.xlane.f32.xlu0 %v2856_v63 }
 0x61d   :  { %v2853_v40 = vsel %vm2810_vm2, %v5655_v9, -inf }
 0x61e   :  { %2854 = vmax.xlane.f32.xlu1 %v2853_v40 }
 0x620   :  { %v3818_v44 = vpop.f32.mrf.mxu0 }
 0x621   :  { %v5662_v50 = vadd.f32 %v3818_v44, %v5579_v20 }
 0x622   :  { %v2731_v13 = vpop.f32.mrf.mxu0 }
 0x623   :  { %v5665_v23 = vadd.f32 %v5579_v20, %v2731_v13  ;;  %v2862_v48 = vsel %vm2810_vm2, %v5662_v50, -inf }
 0x624   :  { %2863 = vmax.xlane.f32.xlu0 %v2862_v48 }
 0x625   :  { %v2859_v7 = vsel %vm2810_vm2, %v5665_v23, -inf }
 0x626   :  { %2860 = vmax.xlane.f32.xlu1 %v2859_v7 }
 0x628   :  { %v3821_v49 = vpop.f32.mrf.mxu0 }
 0x629   :  { %v5672_v1 = vadd.f32 %v3821_v49, %v5579_v20 }
 0x62a   :  { %v2741_v38 = vpop.f32.mrf.mxu0 }
 0x62b   :  { %v5675_v8 = vadd.f32 %v5579_v20, %v2741_v38  ;;  %v2868_v24 = vsel %vm2810_vm2, %v5672_v1, -inf }
 0x62c   :  { %2869 = vmax.xlane.f32.xlu0 %v2868_v24 }
 0x62d   :  { %v2865_v41 = vsel %vm2810_vm2, %v5675_v8, -inf }
 0x62e   :  { %2866 = vmax.xlane.f32.xlu1 %v2865_v41 }
 0x630   :  { %v3824_v22 = vpop.f32.mrf.mxu0 }
 0x631   :  { %v5682_v10 = vadd.f32 %v3824_v22, %v5579_v20 }
 0x632   :  { %v2751_v21 = vpop.f32.mrf.mxu0 }
 0x633   :  { %v5685_v11 = vadd.f32 %v5579_v20, %v2751_v21  ;;  %v2874_v5 = vsel %vm2810_vm2, %v5682_v10, -inf }
 0x634   :  { %2875 = vmax.xlane.f32.xlu0 %v2874_v5 }
 0x635   :  { %v2871_v53 = vsel %vm2810_vm2, %v5685_v11, -inf }
 0x636   :  { %2872 = vmax.xlane.f32.xlu1 %v2871_v53 }
 0x638   :  { %v3827_v19 = vpop.f32.mrf.mxu0 }
 0x639   :  { %v5692_v45 = vadd.f32 %v3827_v19, %v5579_v20 }
 0x63a   :  { %v2761_v52 = vpop.f32.mrf.mxu0 }
 0x63b   :  { %v5695_v61 = vadd.f32 %v5579_v20, %v2761_v52  ;;  %v2880_v28 = vsel %vm2810_vm2, %v5692_v45, -inf }
 0x63c   :  { %2881 = vmax.xlane.f32.xlu0 %v2880_v28 }
 0x63d   :  { %v2877_v30 = vsel %vm2810_vm2, %v5695_v61, -inf }
 0x63e   :  { %2878 = vmax.xlane.f32.xlu1 %v2877_v30 }
 0x640   :  { %v3830_v25 = vpop.f32.mrf.mxu0 }
 0x641   :  { %v5702_v15 = vadd.f32 %v3830_v25, %v5579_v20 }
 0x642   :  { %v2771_v27 = vpop.f32.mrf.mxu0 }
 0x643   :  { %v5705_v32 = vadd.f32 %v5579_v20, %v2771_v27  ;;  %v2886_v58 = vsel %vm2810_vm2, %v5702_v15, -inf }
 0x644   :  { %2887 = vmax.xlane.f32.xlu0 %v2886_v58 }
 0x645   :  { %v2883_v46 = vsel %vm2810_vm2, %v5705_v32, -inf }
 0x646   :  { %2884 = vmax.xlane.f32.xlu1 %v2883_v46 }
 0x648   :  { %v3833_v31 = vpop.f32.mrf.mxu0 }
 0x649   :  { %v5712_v56 = vadd.f32 %v3833_v31, %v5579_v20 }
 0x64a   :  { %v2781_v4 = vpop.f32.mrf.mxu0 }
 0x64b   :  { %v5715_v57 = vadd.f32 %v5579_v20, %v2781_v4  ;;  %v2892_v59 = vsel %vm2810_vm2, %v5712_v56, -inf }
 0x64c   :  { %2893 = vmax.xlane.f32.xlu0 %v2892_v59 }
 0x64d   :  { %v2889_v62 = vsel %vm2810_vm2, %v5715_v57, -inf }
 0x64e   :  { %2890 = vmax.xlane.f32.xlu1 %v2889_v62 }
 0x650   :  { %v3836_v17 = vpop.f32.mrf.mxu0 }
 0x651   :  { %v5722_v34 = vadd.f32 %v3836_v17, %v5579_v20 }
 0x652   :  { %v2791_v51 = vpop.f32.mrf.mxu0 }
 0x653   :  { %v5725_v0 = vadd.f32 %v5579_v20, %v2791_v51  ;;  %v2898_v3 = vsel %vm2810_vm2, %v5722_v34, -inf }
 0x654   :  { %2899 = vmax.xlane.f32.xlu0 %v2898_v3 }
 0x655   :  { %v2895_v6 = vsel %vm2810_vm2, %v5725_v0, -inf }
 0x656   :  { %2896 = vmax.xlane.f32.xlu1 %v2895_v6 }
 0x658   :  { %v3839_v2 = vpop.f32.mrf.mxu0 }
 0x659   :  { %v5732_v43 = vadd.f32 %v3839_v2, %v5579_v20 }
 0x65a   :  { %v2801_v42 = vpop.f32.mrf.mxu0 }
 0x65b   :  { %v5735_v63 = vadd.f32 %v5579_v20, %v2801_v42  ;;  %v2904_v40 = vsel %vm2810_vm2, %v5732_v43, -inf }
 0x65c   :  { %2905 = vmax.xlane.f32.xlu0 %v2904_v40 }
 0x65d   :  { %v2901_v44 = vsel %vm2810_vm2, %v5735_v63, -inf }
 0x65e   :  { %2902 = vmax.xlane.f32.xlu1 %v2901_v44 }
 0x66d   :  { %v2816_v13 = vpop.xlane.xlu0 %2815 }
 0x66e   :  { %v2908_v48 = vsub.f32 %v5582_v33, %v2816_v13 }
 0x66f   :  { %v2813_v7 = vpop.xlane.xlu1 %2812 }
 0x670   :  { %v2941_v49 = vmul.f32 1.442695, %v2908_v48  ;;  %v2907_v38 = vsub.f32 %v5585_v55, %v2813_v7 }
 0x672   :  { %4045 = vpow2.f32 %v2941_v49  ;;  %v2939_v24 = vmul.f32 1.442695, %v2907_v38 }
 0x674   :  { %4047 = vpow2.f32 %v2939_v24 }
 0x675   :  { %v2822_v20 = vpop.xlane.xlu0 %2821 }
 0x676   :  { %v2910_v41 = vsub.f32 %v5592_v18, %v2822_v20 }
 0x677   :  { %v2819_v22 = vpop.xlane.xlu1 %2818 }
 0x678   :  { %v2945_v21 = vmul.f32 1.442695, %v2910_v41  ;;  %v2909_v5 = vsub.f32 %v5595_v54, %v2819_v22 }
 0x67a   :  { %4049 = vpow2.f32 %v2945_v21  ;;  %v2943_v53 = vmul.f32 1.442695, %v2909_v5 }
 0x67c   :  { %4051 = vpow2.f32 %v2943_v53 }
 0x67d   :  { %v2828_v19 = vpop.xlane.xlu0 %2827 }
 0x67e   :  { %v2912_v33 = vsub.f32 %v5602_v12, %v2828_v19 }
 0x67f   :  { %v5746_v52 = vpop.eup %4045  ;;  %v2825_v28 = vpop.xlane.xlu1 %2824 }
 0x680   :  { %v2949_v55 = vmul.f32 1.442695, %v2912_v33  ;;  %v2911_v30 = vsub.f32 %v5605_v37, %v2825_v28  ;;  %v3006_v25 = vsel %vm2810_vm2, %v5746_v52, 0.0 }
 0x681   :  { %v5751_v18 = vpop.eup %4047  ;;  %3007 = vadd.xlane.f32.xlu0 %v3006_v25 }
 0x682   :  { %4053 = vpow2.f32 %v2949_v55  ;;  %v2947_v54 = vmul.f32 1.442695, %v2911_v30  ;;  %v3003_v27 = vsel %vm2810_vm2, %v5751_v18, 0.0 }
 0x683   :  { %3004 = vadd.xlane.f32.xlu1 %v3003_v27 }
 0x684   :  { %4055 = vpow2.f32 %v2947_v54 }
 0x685   :  { %v2834_v12 = vpop.xlane.xlu0 %2833 }
 0x686   :  { %v2914_v58 = vsub.f32 %v5612_v47, %v2834_v12 }
 0x687   :  { %v5756_v46 = vpop.eup %4049  ;;  %v2831_v31 = vpop.xlane.xlu1 %2830 }
 0x688   :  { %v2953_v37 = vmul.f32 1.442695, %v2914_v58  ;;  %v2913_v4 = vsub.f32 %v5615_v29, %v2831_v31  ;;  %v3012_v59 = vsel %vm2810_vm2, %v5756_v46, 0.0 }
 0x689   :  { %v5761_v62 = vpop.eup %4051  ;;  %3013 = vadd.xlane.f32.xlu0 %v3012_v59 }
 0x68a   :  { %4057 = vpow2.f32 %v2953_v37  ;;  %v2951_v17 = vmul.f32 1.442695, %v2913_v4  ;;  %v3009_v51 = vsel %vm2810_vm2, %v5761_v62, 0.0 }
 0x68b   :  { %3010 = vadd.xlane.f32.xlu1 %v3009_v51 }
 0x68c   :  { %4059 = vpow2.f32 %v2951_v17 }
 0x68d   :  { %v2840_v47 = vpop.xlane.xlu0 %2839 }
 0x68e   :  { %v2916_v3 = vsub.f32 %v5622_v60, %v2840_v47 }
 0x68f   :  { %v5766_v6 = vpop.eup %4053  ;;  %v2837_v2 = vpop.xlane.xlu1 %2836 }
 0x690   :  { %v2957_v29 = vmul.f32 1.442695, %v2916_v3  ;;  %v2915_v42 = vsub.f32 %v5625_v16, %v2837_v2  ;;  %v3018_v40 = vsel %vm2810_vm2, %v5766_v6, 0.0 }
 0x691   :  { %v5771_v44 = vpop.eup %4055  ;;  %3019 = vadd.xlane.f32.xlu0 %v3018_v40 }
 0x692   :  { %4061 = vpow2.f32 %v2957_v29  ;;  %v2955_v13 = vmul.f32 1.442695, %v2915_v42  ;;  %v3015_v48 = vsel %vm2810_vm2, %v5771_v44, 0.0 }
 0x693   :  { %3016 = vadd.xlane.f32.xlu1 %v3015_v48 }
 0x694   :  { %4063 = vpow2.f32 %v2955_v13 }
 0x695   :  { %v2846_v60 = vpop.xlane.xlu0 %2845 }
 0x696   :  { %v2918_v7 = vsub.f32 %v5632_v35, %v2846_v60 }
 0x697   :  { %v5776_v49 = vpop.eup %4057  ;;  %v2843_v38 = vpop.xlane.xlu1 %2842 }
 0x698   :  { %v2961_v16 = vmul.f32 1.442695, %v2918_v7  ;;  %v2917_v24 = vsub.f32 %v5635_v36, %v2843_v38  ;;  %v3024_v20 = vsel %vm2810_vm2, %v5776_v49, 0.0 }
 0x699   :  { %v5781_v41 = vpop.eup %4059  ;;  %3025 = vadd.xlane.f32.xlu0 %v3024_v20 }
 0x69a   :  { %4065 = vpow2.f32 %v2961_v16  ;;  %v2959_v22 = vmul.f32 1.442695, %v2917_v24  ;;  %v3021_v21 = vsel %vm2810_vm2, %v5781_v41, 0.0 }
 0x69b   :  { %3022 = vadd.xlane.f32.xlu1 %v3021_v21 }
 0x69c   :  { %4067 = vpow2.f32 %v2959_v22 }
 0x69d   :  { %v2852_v35 = vpop.xlane.xlu0 %2851 }
 0x69e   :  { %v2920_v5 = vsub.f32 %v5642_v39, %v2852_v35 }
 0x69f   :  { %v5786_v53 = vpop.eup %4061  ;;  %v2849_v19 = vpop.xlane.xlu1 %2848 }
 0x6a0   :  { %v2965_v36 = vmul.f32 1.442695, %v2920_v5  ;;  %v2919_v33 = vsub.f32 %v5645_v26, %v2849_v19  ;;  %v3030_v28 = vsel %vm2810_vm2, %v5786_v53, 0.0 }
 0x6a1   :  { %v5791_v55 = vpop.eup %4063  ;;  %3031 = vadd.xlane.f32.xlu0 %v3030_v28 }
 0x6a2   :  { %4069 = vpow2.f32 %v2965_v36  ;;  %v2963_v30 = vmul.f32 1.442695, %v2919_v33  ;;  %v3027_v25 = vsel %vm2810_vm2, %v5791_v55, 0.0 }
 0x6a3   :  { %3028 = vadd.xlane.f32.xlu1 %v3027_v25 }
 0x6a4   :  { %4071 = vpow2.f32 %v2963_v30 }
 0x6a5   :  { %v2858_v39 = vpop.xlane.xlu0 %2857 }
 0x6a6   :  { %v2922_v54 = vsub.f32 %v5652_v14, %v2858_v39 }
 0x6a7   :  { %v5796_v27 = vpop.eup %4065  ;;  %v2855_v12 = vpop.xlane.xlu1 %2854 }
 0x6a8   :  { %v2969_v26 = vmul.f32 1.442695, %v2922_v54  ;;  %v2921_v58 = vsub.f32 %v5655_v9, %v2855_v12  ;;  %v3036_v31 = vsel %vm2810_vm2, %v5796_v27, 0.0 }
 0x6a9   :  { %v5801_v37 = vpop.eup %4067  ;;  %3037 = vadd.xlane.f32.xlu0 %v3036_v31 }
 0x6aa   :  { %4073 = vpow2.f32 %v2969_v26  ;;  %v2967_v4 = vmul.f32 1.442695, %v2921_v58  ;;  %v3033_v59 = vsel %vm2810_vm2, %v5801_v37, 0.0 }
 0x6ab   :  { %3034 = vadd.xlane.f32.xlu1 %v3033_v59 }
 0x6ac   :  { %4075 = vpow2.f32 %v2967_v4 }
 0x6ad   :  { %v2864_v14 = vpop.xlane.xlu0 %2863 }
 0x6ae   :  { %v2924_v17 = vsub.f32 %v5662_v50, %v2864_v14 }
 0x6af   :  { %v5806_v51 = vpop.eup %4069  ;;  %v2861_v47 = vpop.xlane.xlu1 %2860 }
 0x6b0   :  { %v2973_v9 = vmul.f32 1.442695, %v2924_v17  ;;  %v2923_v3 = vsub.f32 %v5665_v23, %v2861_v47  ;;  %v3042_v2 = vsel %vm2810_vm2, %v5806_v51, 0.0 }
 0x6b1   :  { %v5811_v29 = vpop.eup %4071  ;;  %3043 = vadd.xlane.f32.xlu0 %v3042_v2 }
 0x6b2   :  { %4077 = vpow2.f32 %v2973_v9  ;;  %v2971_v42 = vmul.f32 1.442695, %v2923_v3  ;;  %v3039_v40 = vsel %vm2810_vm2, %v5811_v29, 0.0 }
 0x6b3   :  { %3040 = vadd.xlane.f32.xlu1 %v3039_v40 }
 0x6b4   :  { %4079 = vpow2.f32 %v2971_v42 }
 0x6b5   :  { %v2870_v50 = vpop.xlane.xlu0 %2869 }
 0x6b6   :  { %v2926_v13 = vsub.f32 %v5672_v1, %v2870_v50 }
 0x6b7   :  { %v5816_v48 = vpop.eup %4073  ;;  %v2867_v60 = vpop.xlane.xlu1 %2866 }
 0x6b8   :  { %v2977_v23 = vmul.f32 1.442695, %v2926_v13  ;;  %v2925_v7 = vsub.f32 %v5675_v8, %v2867_v60  ;;  %v3048_v38 = vsel %vm2810_vm2, %v5816_v48, 0.0 }
 0x6b9   :  { %v5821_v16 = vpop.eup %4075  ;;  %3049 = vadd.xlane.f32.xlu0 %v3048_v38 }
 0x6ba   :  { %4081 = vpow2.f32 %v2977_v23  ;;  %v2975_v24 = vmul.f32 1.442695, %v2925_v7  ;;  %v3045_v20 = vsel %vm2810_vm2, %v5821_v16, 0.0 }
 0x6bb   :  { %3046 = vadd.xlane.f32.xlu1 %v3045_v20 }
 0x6bc   :  { %4083 = vpow2.f32 %v2975_v24 }
 0x6bd   :  { %v2876_v1 = vpop.xlane.xlu0 %2875 }
 0x6be   :  { %v2928_v22 = vsub.f32 %v5682_v10, %v2876_v1 }
 0x6bf   :  { %v5826_v21 = vpop.eup %4077  ;;  %v2873_v35 = vpop.xlane.xlu1 %2872 }
 0x6c0   :  { %v2981_v8 = vmul.f32 1.442695, %v2928_v22  ;;  %v2927_v5 = vsub.f32 %v5685_v11, %v2873_v35  ;;  %v3054_v19 = vsel %vm2810_vm2, %v5826_v21, 0.0 }
 0x6c1   :  { %v5831_v36 = vpop.eup %4079  ;;  %3055 = vadd.xlane.f32.xlu0 %v3054_v19 }
 0x6c2   :  { %4085 = vpow2.f32 %v2981_v8  ;;  %v2979_v33 = vmul.f32 1.442695, %v2927_v5  ;;  %v3051_v28 = vsel %vm2810_vm2, %v5831_v36, 0.0 }
 0x6c3   :  { %3052 = vadd.xlane.f32.xlu1 %v3051_v28 }
 0x6c4   :  { %4087 = vpow2.f32 %v2979_v33 }
 0x6c5   :  { %v2882_v10 = vpop.xlane.xlu0 %2881 }
 0x6c6   :  { %v2930_v30 = vsub.f32 %v5692_v45, %v2882_v10 }
 0x6c7   :  { %v5836_v25 = vpop.eup %4081  ;;  %v2879_v39 = vpop.xlane.xlu1 %2878 }
 0x6c8   :  { %v2985_v11 = vmul.f32 1.442695, %v2930_v30  ;;  %v2929_v54 = vsub.f32 %v5695_v61, %v2879_v39  ;;  %v3060_v12 = vsel %vm2810_vm2, %v5836_v25, 0.0 }
 0x6c9   :  { %v5841_v26 = vpop.eup %4083  ;;  %3061 = vadd.xlane.f32.xlu0 %v3060_v12 }
 0x6ca   :  { %4089 = vpow2.f32 %v2985_v11  ;;  %v2983_v58 = vmul.f32 1.442695, %v2929_v54  ;;  %v3057_v31 = vsel %vm2810_vm2, %v5841_v26, 0.0 }
 0x6cb   :  { %3058 = vadd.xlane.f32.xlu1 %v3057_v31 }
 0x6cc   :  { %4091 = vpow2.f32 %v2983_v58 }
 0x6cd   :  { %v2888_v45 = vpop.xlane.xlu0 %2887 }
 0x6ce   :  { %v2932_v4 = vsub.f32 %v5702_v15, %v2888_v45 }
 0x6cf   :  { %v5846_v59 = vpop.eup %4085  ;;  %v2885_v14 = vpop.xlane.xlu1 %2884 }
 0x6d0   :  { %v2989_v61 = vmul.f32 1.442695, %v2932_v4  ;;  %v2931_v17 = vsub.f32 %v5705_v32, %v2885_v14  ;;  %v3066_v47 = vsel %vm2810_vm2, %v5846_v59, 0.0 }
 0x6d1   :  { %v5851_v9 = vpop.eup %4087  ;;  %3067 = vadd.xlane.f32.xlu0 %v3066_v47 }
 0x6d2   :  { %4093 = vpow2.f32 %v2989_v61  ;;  %v2987_v3 = vmul.f32 1.442695, %v2931_v17  ;;  %v3063_v2 = vsel %vm2810_vm2, %v5851_v9, 0.0 }
 0x6d3   :  { %3064 = vadd.xlane.f32.xlu1 %v3063_v2 }
 0x6d4   :  { %4095 = vpow2.f32 %v2987_v3 }
 0x6d5   :  { %v2894_v15 = vpop.xlane.xlu0 %2893 }
 0x6d6   :  { %v2934_v42 = vsub.f32 %v5712_v56, %v2894_v15 }
 0x6d7   :  { %v5856_v40 = vpop.eup %4089  ;;  %v2891_v50 = vpop.xlane.xlu1 %2890 }
 0x6d8   :  { %v2993_v32 = vmul.f32 1.442695, %v2934_v42  ;;  %v2933_v13 = vsub.f32 %v5715_v57, %v2891_v50  ;;  %v3072_v60 = vsel %vm2810_vm2, %v5856_v40, 0.0 }
 0x6d9   :  { %v5861_v23 = vpop.eup %4091  ;;  %3073 = vadd.xlane.f32.xlu0 %v3072_v60 }
 0x6da   :  { %4097 = vpow2.f32 %v2993_v32  ;;  %v2991_v7 = vmul.f32 1.442695, %v2933_v13  ;;  %v3069_v38 = vsel %vm2810_vm2, %v5861_v23, 0.0 }
 0x6db   :  { %3070 = vadd.xlane.f32.xlu1 %v3069_v38 }
 0x6dc   :  { %4099 = vpow2.f32 %v2991_v7 }
 0x6dd   :  { %v2900_v56 = vpop.xlane.xlu0 %2899 }
 0x6de   :  { %v2936_v24 = vsub.f32 %v5722_v34, %v2900_v56 }
 0x6df   :  { %v5866_v20 = vpop.eup %4093  ;;  %v2897_v1 = vpop.xlane.xlu1 %2896 }
 0x6e0   :  { %v2997_v57 = vmul.f32 1.442695, %v2936_v24  ;;  %v2935_v22 = vsub.f32 %v5725_v0, %v2897_v1  ;;  %v3078_v35 = vsel %vm2810_vm2, %v5866_v20, 0.0 }
 0x6e1   :  { %v5871_v8 = vpop.eup %4095  ;;  %3079 = vadd.xlane.f32.xlu0 %v3078_v35 }
 0x6e2   :  { %4101 = vpow2.f32 %v2997_v57  ;;  %v2995_v5 = vmul.f32 1.442695, %v2935_v22  ;;  %v3075_v19 = vsel %vm2810_vm2, %v5871_v8, 0.0 }
 0x6e3   :  { %3076 = vadd.xlane.f32.xlu1 %v3075_v19 }
 0x6e4   :  { %4103 = vpow2.f32 %v2995_v5 }
 0x6e5   :  { %v2906_v34 = vpop.xlane.xlu0 %2905 }
 0x6e6   :  { %v2938_v33 = vsub.f32 %v5732_v43, %v2906_v34 }
 0x6e7   :  { %v5876_v28 = vpop.eup %4097  ;;  %v2903_v10 = vpop.xlane.xlu1 %2902 }
 0x6e8   :  { %v3001_v0 = vmul.f32 1.442695, %v2938_v33  ;;  %v2937_v30 = vsub.f32 %v5735_v63, %v2903_v10  ;;  %v3084_v39 = vsel %vm2810_vm2, %v5876_v28, 0.0 }
 0x6e9   :  { %v5881_v11 = vpop.eup %4099  ;;  %3085 = vadd.xlane.f32.xlu0 %v3084_v39 }
 0x6ea   :  { %4105 = vpow2.f32 %v3001_v0  ;;  %v2999_v54 = vmul.f32 1.442695, %v2937_v30  ;;  %v3081_v12 = vsel %vm2810_vm2, %v5881_v11, 0.0 }
 0x6eb   :  { %3082 = vadd.xlane.f32.xlu1 %v3081_v12 }
 0x6ec   :  { %4107 = vpow2.f32 %v2999_v54 }
 0x6ef   :  { %v5885_v43 = vpop.eup %4101 }
 0x6f0   :  { %v3090_v58 = vsel %vm2810_vm2, %v5885_v43, 0.0 }
 0x6f1   :  { %v5889_v31 = vpop.eup %4103  ;;  %3091 = vadd.xlane.f32.xlu0 %v3090_v58 }
 0x6f2   :  { %v3087_v63 = vsel %vm2810_vm2, %v5889_v31, 0.0 }
 0x6f3   :  { %3088 = vadd.xlane.f32.xlu1 %v3087_v63 }
 0x6f7   :  { %v5893_v45 = vpop.eup %4105 }
 0x6f8   :  { %v3096_v4 = vsel %vm2810_vm2, %v5893_v45, 0.0 }
 0x6f9   :  { %v5897_v14 = vpop.eup %4107  ;;  %3097 = vadd.xlane.f32.xlu0 %v3096_v4 }
 0x6fa   :  { %v3093_v61 = vsel %vm2810_vm2, %v5897_v14, 0.0 }
 0x6fb   :  { %3094 = vadd.xlane.f32.xlu1 %v3093_v61 }
 0x70a   :  { %v3008_v17 = vpop.xlane.xlu0 %3007 }
 0x70b   :  { %4109 = vrcp.f32 %v3008_v17 }
 0x70c   :  { %v3005_v47 = vpop.xlane.xlu1 %3004 }
 0x70d   :  { %4111 = vrcp.f32 %v3005_v47 }
 0x712   :  { %v3014_v3 = vpop.xlane.xlu0 %3013 }
 0x713   :  { %4113 = vrcp.f32 %v3014_v3 }
 0x714   :  { %v3011_v2 = vpop.xlane.xlu1 %3010 }
 0x715   :  { %4115 = vrcp.f32 %v3011_v2 }
 0x718   :  { %v4110_v15 = vpop.eup %4109 }
 0x719   :  { %v3102_v42 = vmul.f32 %v4110_v15, %v5746_v52 }
 0x71a   :  { %v4112_v50 = vpop.eup %4111  ;;  %v3020_v32 = vpop.xlane.xlu0 %3019 }
 0x71b   :  { %3164 = vst.msk [vmem:[%s6071_s10 + $0x8] sm:$0xff] %vm2810_vm2, %v3102_v42  ;;  %v3100_v13 = vmul.f32 %v4112_v50, %v5751_v18  ;;  %4117 = vrcp.f32 %v3020_v32 }
 0x71c   :  { %v3017_v60 = vpop.xlane.xlu1 %3016 }
 0x71d   :  { %3163 = vst.msk [vmem:[%s6071_s10] sm:$0xff] %vm2810_vm2, %v3100_v13  ;;  %4119 = vrcp.f32 %v3017_v60 }
 0x720   :  { %v4114_v7 = vpop.eup %4113 }
 0x721   :  { %v3106_v52 = vmul.f32 %v4114_v7, %v5756_v46 }
 0x722   :  { %v4116_v38 = vpop.eup %4115  ;;  %v3026_v56 = vpop.xlane.xlu0 %3025 }
 0x723   :  { %3166 = vst.msk [vmem:[%s6071_s10 + $0x18] sm:$0xff] %vm2810_vm2, %v3106_v52  ;;  %v3104_v18 = vmul.f32 %v4116_v38, %v5761_v62  ;;  %4121 = vrcp.f32 %v3026_v56 }
 0x724   :  { %v3023_v24 = vpop.xlane.xlu1 %3022 }
 0x725   :  { %3165 = vst.msk [vmem:[%s6071_s10 + $0x10] sm:$0xff] %vm2810_vm2, %v3104_v18  ;;  %4123 = vrcp.f32 %v3023_v24 }
 0x728   :  { %v4118_v1 = vpop.eup %4117 }
 0x729   :  { %v3110_v46 = vmul.f32 %v4118_v1, %v5766_v6 }
 0x72a   :  { %v4120_v57 = vpop.eup %4119  ;;  %v3032_v22 = vpop.xlane.xlu0 %3031 }
 0x72b   :  { %3168 = vst.msk [vmem:[%s6071_s10 + $0x28] sm:$0xff] %vm2810_vm2, %v3110_v46  ;;  %v3108_v62 = vmul.f32 %v4120_v57, %v5771_v44  ;;  %4125 = vrcp.f32 %v3032_v22 }
 0x72c   :  { %v3029_v35 = vpop.xlane.xlu1 %3028 }
 0x72d   :  { %3167 = vst.msk [vmem:[%s6071_s10 + $0x20] sm:$0xff] %vm2810_vm2, %v3108_v62  ;;  %4127 = vrcp.f32 %v3029_v35 }
 0x730   :  { %v4122_v5 = vpop.eup %4121 }
 0x731   :  { %v3114_v6 = vmul.f32 %v4122_v5, %v5776_v49 }
 0x732   :  { %v4124_v19 = vpop.eup %4123  ;;  %v3038_v34 = vpop.xlane.xlu0 %3037 }
 0x733   :  { %3170 = vst.msk [vmem:[%s6071_s10 + $0x38] sm:$0xff] %vm2810_vm2, %v3114_v6  ;;  %v3112_v44 = vmul.f32 %v4124_v19, %v5781_v41  ;;  %4129 = vrcp.f32 %v3038_v34 }
 0x734   :  { %v3035_v33 = vpop.xlane.xlu1 %3034 }
 0x735   :  { %3169 = vst.msk [vmem:[%s6071_s10 + $0x30] sm:$0xff] %vm2810_vm2, %v3112_v44  ;;  %4131 = vrcp.f32 %v3035_v33 }
 0x738   :  { %v4126_v10 = vpop.eup %4125 }
 0x739   :  { %v3118_v49 = vmul.f32 %v4126_v10, %v5786_v53 }
 0x73a   :  { %v4128_v0 = vpop.eup %4127  ;;  %v3044_v30 = vpop.xlane.xlu0 %3043 }
 0x73b   :  { %3172 = vst.msk [vmem:[%s6071_s10 + $0x48] sm:$0xff] %vm2810_vm2, %v3118_v49  ;;  %v3116_v41 = vmul.f32 %v4128_v0, %v5791_v55  ;;  %4133 = vrcp.f32 %v3044_v30 }
 0x73c   :  { %v3041_v39 = vpop.xlane.xlu1 %3040 }
 0x73d   :  { %3171 = vst.msk [vmem:[%s6071_s10 + $0x40] sm:$0xff] %vm2810_vm2, %v3116_v41  ;;  %4135 = vrcp.f32 %v3041_v39 }
 0x740   :  { %v4130_v54 = vpop.eup %4129 }
 0x741   :  { %v3122_v53 = vmul.f32 %v4130_v54, %v5796_v27 }
 0x742   :  { %v4132_v12 = vpop.eup %4131  ;;  %v3050_v58 = vpop.xlane.xlu0 %3049 }
 0x743   :  { %3174 = vst.msk [vmem:[%s6071_s10 + $0x58] sm:$0xff] %vm2810_vm2, %v3122_v53  ;;  %v3120_v55 = vmul.f32 %v4132_v12, %v5801_v37  ;;  %4137 = vrcp.f32 %v3050_v58 }
 0x744   :  { %v3047_v63 = vpop.xlane.xlu1 %3046 }
 0x745   :  { %3173 = vst.msk [vmem:[%s6071_s10 + $0x50] sm:$0xff] %vm2810_vm2, %v3120_v55  ;;  %4139 = vrcp.f32 %v3047_v63 }
 0x748   :  { %v4134_v4 = vpop.eup %4133 }
 0x749   :  { %v3126_v27 = vmul.f32 %v4134_v4, %v5806_v51 }
 0x74a   :  { %v4136_v61 = vpop.eup %4135  ;;  %v3056_v17 = vpop.xlane.xlu0 %3055 }
 0x74b   :  { %3176 = vst.msk [vmem:[%s6071_s10 + $0x68] sm:$0xff] %vm2810_vm2, %v3126_v27  ;;  %v3124_v37 = vmul.f32 %v4136_v61, %v5811_v29  ;;  %4141 = vrcp.f32 %v3056_v17 }
 0x74c   :  { %v3053_v47 = vpop.xlane.xlu1 %3052 }
 0x74d   :  { %3175 = vst.msk [vmem:[%s6071_s10 + $0x60] sm:$0xff] %vm2810_vm2, %v3124_v37  ;;  %4143 = vrcp.f32 %v3053_v47 }
 0x750   :  { %v4138_v3 = vpop.eup %4137 }
 0x751   :  { %v3130_v51 = vmul.f32 %v4138_v3, %v5816_v48 }
 0x752   :  { %v4140_v2 = vpop.eup %4139  ;;  %v3062_v15 = vpop.xlane.xlu0 %3061 }
 0x753   :  { %3178 = vst.msk [vmem:[%s6071_s10 + $0x78] sm:$0xff] %vm2810_vm2, %v3130_v51  ;;  %v3128_v29 = vmul.f32 %v4140_v2, %v5821_v16  ;;  %4145 = vrcp.f32 %v3062_v15 }
 0x754   :  { %v3059_v42 = vpop.xlane.xlu1 %3058 }
 0x755   :  { %3177 = vst.msk [vmem:[%s6071_s10 + $0x70] sm:$0xff] %vm2810_vm2, %v3128_v29  ;;  %4147 = vrcp.f32 %v3059_v42 }
 0x758   :  { %v4142_v50 = vpop.eup %4141 }
 0x759   :  { %v3134_v48 = vmul.f32 %v4142_v50, %v5826_v21 }
 0x75a   :  { %v4144_v32 = vpop.eup %4143  ;;  %v3068_v13 = vpop.xlane.xlu0 %3067 }
 0x75b   :  { %3180 = vst.msk [vmem:[%s6071_s10 + $0x88] sm:$0xff] %vm2810_vm2, %v3134_v48  ;;  %v3132_v16 = vmul.f32 %v4144_v32, %v5831_v36  ;;  %4149 = vrcp.f32 %v3068_v13 }
 0x75c   :  { %v3065_v60 = vpop.xlane.xlu1 %3064 }
 0x75d   :  { %3179 = vst.msk [vmem:[%s6071_s10 + $0x80] sm:$0xff] %vm2810_vm2, %v3132_v16  ;;  %4151 = vrcp.f32 %v3065_v60 }
 0x760   :  { %v4146_v7 = vpop.eup %4145 }
 0x761   :  { %v3138_v21 = vmul.f32 %v4146_v7, %v5836_v25 }
 0x762   :  { %v4148_v52 = vpop.eup %4147  ;;  %v3074_v38 = vpop.xlane.xlu0 %3073 }
 0x763   :  { %3182 = vst.msk [vmem:[%s6071_s10 + $0x98] sm:$0xff] %vm2810_vm2, %v3138_v21  ;;  %v3136_v36 = vmul.f32 %v4148_v52, %v5841_v26  ;;  %4153 = vrcp.f32 %v3074_v38 }
 0x764   :  { %v3071_v56 = vpop.xlane.xlu1 %3070 }
 0x765   :  { %3181 = vst.msk [vmem:[%s6071_s10 + $0x90] sm:$0xff] %vm2810_vm2, %v3136_v36  ;;  %4155 = vrcp.f32 %v3071_v56 }
 0x768   :  { %v4150_v18 = vpop.eup %4149 }
 0x769   :  { %v3142_v25 = vmul.f32 %v4150_v18, %v5846_v59 }
 0x76a   :  { %v4152_v24 = vpop.eup %4151  ;;  %v3080_v1 = vpop.xlane.xlu0 %3079 }
 0x76b   :  { %3184 = vst.msk [vmem:[%s6071_s10 + $0xa8] sm:$0xff] %vm2810_vm2, %v3142_v25  ;;  %v3140_v26 = vmul.f32 %v4152_v24, %v5851_v9  ;;  %4157 = vrcp.f32 %v3080_v1 }
 0x76c   :  { %v3077_v46 = vpop.xlane.xlu1 %3076 }
 0x76d   :  { %3183 = vst.msk [vmem:[%s6071_s10 + $0xa0] sm:$0xff] %vm2810_vm2, %v3140_v26  ;;  %4159 = vrcp.f32 %v3077_v46 }
 0x770   :  { %v4154_v57 = vpop.eup %4153 }
 0x771   :  { %v3146_v59 = vmul.f32 %v4154_v57, %v5856_v40 }
 0x772   :  { %v4156_v22 = vpop.eup %4155  ;;  %v3086_v62 = vpop.xlane.xlu0 %3085 }
 0x773   :  { %3186 = vst.msk [vmem:[%s6071_s10 + $0xb8] sm:$0xff] %vm2810_vm2, %v3146_v59  ;;  %v3144_v9 = vmul.f32 %v4156_v22, %v5861_v23  ;;  %4161 = vrcp.f32 %v3086_v62 }
 0x774   :  { %v3083_v35 = vpop.xlane.xlu1 %3082 }
 0x775   :  { %3185 = vst.msk [vmem:[%s6071_s10 + $0xb0] sm:$0xff] %vm2810_vm2, %v3144_v9  ;;  %4163 = vrcp.f32 %v3083_v35 }
 0x778   :  { %v4158_v5 = vpop.eup %4157 }
 0x779   :  { %v3150_v40 = vmul.f32 %v4158_v5, %v5866_v20 }
 0x77a   :  { %v4160_v6 = vpop.eup %4159  ;;  %v3092_v19 = vpop.xlane.xlu0 %3091 }
 0x77b   :  { %3188 = vst.msk [vmem:[%s6071_s10 + $0xc8] sm:$0xff] %vm2810_vm2, %v3150_v40  ;;  %v3148_v23 = vmul.f32 %v4160_v6, %v5871_v8  ;;  %4165 = vrcp.f32 %v3092_v19 }
 0x77c   :  { %v3089_v34 = vpop.xlane.xlu1 %3088 }
 0x77d   :  { %3187 = vst.msk [vmem:[%s6071_s10 + $0xc0] sm:$0xff] %vm2810_vm2, %v3148_v23  ;;  %4167 = vrcp.f32 %v3089_v34 }
 0x780   :  { %v4162_v44 = vpop.eup %4161 }
 0x781   :  { %v3154_v20 = vmul.f32 %v4162_v44, %v5876_v28 }
 0x782   :  { %v4164_v33 = vpop.eup %4163  ;;  %v3098_v10 = vpop.xlane.xlu0 %3097 }
 0x783   :  { %3190 = vst.msk [vmem:[%s6071_s10 + $0xd8] sm:$0xff] %vm2810_vm2, %v3154_v20  ;;  %v3152_v8 = vmul.f32 %v4164_v33, %v5881_v11  ;;  %4169 = vrcp.f32 %v3098_v10 }
 0x784   :  { %v3095_v49 = vpop.xlane.xlu1 %3094 }
 0x785   :  { %3189 = vst.msk [vmem:[%s6071_s10 + $0xd0] sm:$0xff] %vm2810_vm2, %v3152_v8  ;;  %4171 = vrcp.f32 %v3095_v49 }
 0x788   :  { %v4166_v0 = vpop.eup %4165 }
 0x789   :  { %v3158_v28 = vmul.f32 %v4166_v0, %v5885_v43 }
 0x78a   :  { %v4168_v30 = vpop.eup %4167 }
 0x78b   :  { %3192 = vst.msk [vmem:[%s6071_s10 + $0xe8] sm:$0xff] %vm2810_vm2, %v3158_v28  ;;  %v3156_v41 = vmul.f32 %v4168_v30, %v5889_v31 }
 0x78d   :  { %3191 = vst.msk [vmem:[%s6071_s10 + $0xe0] sm:$0xff] %vm2810_vm2, %v3156_v41 }
 0x790   :  { %v4170_v11 = vpop.eup %4169 }
 0x791   :  { %v3162_v39 = vmul.f32 %v4170_v11, %v5893_v45 }
 0x792   :  { %v4172_v54 = vpop.eup %4171 }
 0x793   :  { %3194 = vst.msk [vmem:[%s6071_s10 + $0xf8] sm:$0xff] %vm2810_vm2, %v3162_v39  ;;  %v3160_v43 = vmul.f32 %v4172_v54, %v5897_v14 }
 0x795   :  { %3193 = vst.msk [vmem:[%s6071_s10 + $0xf0] sm:$0xff] %vm2810_vm2, %v3160_v43 }

</bundles_post_ra>
